<compile_context>
chip_gen: v7x
topology: tpu7x:2x2x1
jax: 0.10.0
libtpu: 0.0.40
codegen_flags: <defaults>
</compile_context>

<pallas_src>
import jax
import jax.numpy as jnp
from jax.experimental import pallas as pl
from jax.experimental.pallas import tpu as pltpu

KSZ = 7                 # SpatialGate conv kernel size
PAD = (KSZ - 1) // 2    # = 3
BN_EPS = 1e-5


# ---------------------------------------------------------------------------
# Kernel 1: ChannelGate (avg/max pool -> shared MLP -> sigmoid) + ChannelPool
# ---------------------------------------------------------------------------
def _channel_gate_kernel(x_ref, w1_ref, b1_ref, w2_ref, b2_ref,
                         cscale_ref, cmax_ref, cmean_ref):
    # x_ref: (1, C, HW); w1 (Cr, C), b1 (Cr, 1), w2 (C, Cr), b2 (C, 1)
    xv = x_ref[0].astype(jnp.float32)                         # (C, HW)
    c, hw = xv.shape

    avg = jnp.sum(xv, axis=1, keepdims=True) * (1.0 / hw)     # (C, 1)
    mx = jnp.max(xv, axis=1, keepdims=True)                   # (C, 1)

    w1 = w1_ref[...]
    b1 = b1_ref[...]
    w2 = w2_ref[...]
    b2 = b2_ref[...]

    def mlp(p):                                               # p: (C, 1)
        h = jnp.dot(w1, p, preferred_element_type=jnp.float32) + b1    # (Cr, 1)
        h = jnp.maximum(h, 0.0)                                         # ReLU
        return jnp.dot(w2, h, preferred_element_type=jnp.float32) + b2  # (C, 1)

    att = mlp(avg) + mlp(mx)                                  # (C, 1)
    cscale = jax.nn.sigmoid(att)                              # (C, 1)
    cscale_ref[0] = cscale

    xg = xv * cscale                                          # (C, HW), lane broadcast
    cmax_ref[0] = jnp.max(xg, axis=0, keepdims=True)          # (1, HW)
    cmean_ref[0] = jnp.sum(xg, axis=0, keepdims=True) * (1.0 / c)


# ---------------------------------------------------------------------------
# Kernel 2: SpatialGate 7x7 conv + folded BatchNorm + sigmoid
# ---------------------------------------------------------------------------
def _spatial_gate_kernel(cpad_ref, wt_ref, bias_ref, sscale_ref):
    # cpad_ref: (1, 2, H+2*PAD, W+2*PAD); wt_ref SMEM (2*7*7,); bias_ref SMEM (1,)
    h = sscale_ref.shape[2]
    w = sscale_ref.shape[3]
    acc = jnp.zeros((h, w), jnp.float32) + bias_ref[0]
    for c in range(2):                                        # static unroll: 98 FMAs
        for dh in range(KSZ):
            for dw in range(KSZ):
                wgt = wt_ref[c * KSZ * KSZ + dh * KSZ + dw]
                acc = acc + wgt * cpad_ref[0, c, dh:dh + h, dw:dw + w]
    sscale_ref[0, 0] = jax.nn.sigmoid(acc)


# ---------------------------------------------------------------------------
# Kernel 3: final modulation  y = x * channel_scale * spatial_scale
# ---------------------------------------------------------------------------
def _modulate_kernel(x_ref, cscale_ref, sscale_ref, out_ref):
    out_ref[0] = (x_ref[0].astype(jnp.float32)
                  * cscale_ref[0]                             # (C, 1)
                  * sscale_ref[0]                             # (1, HW)
                  ).astype(out_ref.dtype)


# ---------------------------------------------------------------------------
# Wrapper
# ---------------------------------------------------------------------------
@jax.jit
def cbam_forward(x, params):
    """x: (B, C, H, W) NCHW -> (B, C, H, W). BatchNorm in eval mode (running stats)."""
    (w1, b1, w2, b2, wconv, bn_g, bn_b, bn_mean, bn_var) = params
    B, C, H, W = x.shape
    HW = H * W
    Cr = w1.shape[0]

    x2 = x.reshape(B, C, HW)                   # bitcast view: pixels on lanes

    # ---- Kernel 1: channel attention + channel pool ------------------------
    cscale, cmax, cmean = pl.pallas_call(
        _channel_gate_kernel,
        out_shape=(jax.ShapeDtypeStruct((B, C, 1), jnp.float32),
                   jax.ShapeDtypeStruct((B, 1, HW), jnp.float32),
                   jax.ShapeDtypeStruct((B, 1, HW), jnp.float32)),
        grid_spec=pltpu.PrefetchScalarGridSpec(
            num_scalar_prefetch=0,
            grid=(B,),
            in_specs=[
                pl.BlockSpec((1, C, HW), lambda b: (b, 0, 0)),
                pl.BlockSpec((Cr, C), lambda b: (0, 0)),
                pl.BlockSpec((Cr, 1), lambda b: (0, 0)),
                pl.BlockSpec((C, Cr), lambda b: (0, 0)),
                pl.BlockSpec((C, 1), lambda b: (0, 0)),
            ],
            out_specs=[
                pl.BlockSpec((1, C, 1), lambda b: (b, 0, 0)),
                pl.BlockSpec((1, 1, HW), lambda b: (b, 0, 0)),
                pl.BlockSpec((1, 1, HW), lambda b: (b, 0, 0)),
            ]),
        compiler_params=pltpu.CompilerParams(dimension_semantics=("parallel",)),
    )(x2, w1, b1.reshape(Cr, 1), w2, b2.reshape(C, 1))

    # ---- glue: tiny padded 2-channel pooled map + BN folding ---------------
    cpool = jnp.concatenate([cmax, cmean], axis=1).reshape(B, 2, H, W)
    cpad = jnp.pad(cpool, ((0, 0), (0, 0), (PAD, PAD), (PAD, PAD)))

    a = bn_g / jnp.sqrt(bn_var + BN_EPS)                       # (1,)
    wconv_f = (wconv * a.reshape(1, 1, 1, 1)).reshape(-1)      # (2*7*7,)
    bias_f = bn_b - bn_mean * a                                 # (1,)

    # ---- Kernel 2: 7x7 spatial conv + BN + sigmoid --------------------------
    sscale4 = pl.pallas_call(
        _spatial_gate_kernel,
        out_shape=jax.ShapeDtypeStruct((B, 1, H, W), jnp.float32),
        grid_spec=pltpu.PrefetchScalarGridSpec(
            num_scalar_prefetch=0,
            grid=(B,),
            in_specs=[
                pl.BlockSpec((1, 2, H + 2 * PAD, W + 2 * PAD),
                             lambda b: (b, 0, 0, 0)),
                pl.BlockSpec((2 * KSZ * KSZ,), lambda b: (0,),
                             memory_space=pltpu.MemorySpace.SMEM),
                pl.BlockSpec((1,), lambda b: (0,),
                             memory_space=pltpu.MemorySpace.SMEM),
            ],
            out_specs=pl.BlockSpec((1, 1, H, W), lambda b: (b, 0, 0, 0))),
        compiler_params=pltpu.CompilerParams(dimension_semantics=("parallel",)),
    )(cpad, wconv_f, bias_f)

    sscale = sscale4.reshape(B, 1, HW)

    # ---- Kernel 3: y = x * channel_scale * spatial_scale --------------------
    y2 = pl.pallas_call(
        _modulate_kernel,
        out_shape=jax.ShapeDtypeStruct((B, C, HW), x.dtype),
        grid_spec=pltpu.PrefetchScalarGridSpec(
            num_scalar_prefetch=0,
            grid=(B,),
            in_specs=[
                pl.BlockSpec((1, C, HW), lambda b: (b, 0, 0)),
                pl.BlockSpec((1, C, 1), lambda b: (b, 0, 0)),
                pl.BlockSpec((1, 1, HW), lambda b: (b, 0, 0)),
            ],
            out_specs=pl.BlockSpec((1, C, HW), lambda b: (b, 0, 0))),
        compiler_params=pltpu.CompilerParams(dimension_semantics=("parallel",)),
    )(x2, cscale, sscale)

    return y2.reshape(B, C, H, W)


# ---------------------------------------------------------------------------
# Pure-JAX reference mirroring the PyTorch forward (eval-mode BN)
# ---------------------------------------------------------------------------
def cbam_reference(x, params):
    (w1, b1, w2, b2, wconv, bn_g, bn_b, bn_mean, bn_var) = params
    avg = jnp.mean(x, axis=(2, 3))                            # (B, C)
    mx = jnp.max(x, axis=(2, 3))                              # (B, C)

    def mlp(p):
        h = jax.nn.relu(p @ w1.T + b1)
        return h @ w2.T + b2

    cscale = jax.nn.sigmoid(mlp(avg) + mlp(mx))[:, :, None, None]
    xg = x * cscale
    cpool = jnp.concatenate([jnp.max(xg, axis=1, keepdims=True),
                             jnp.mean(xg, axis=1, keepdims=True)], axis=1)
    conv = jax.lax.conv_general_dilated(
        cpool, wconv, window_strides=(1, 1),
        padding=((PAD, PAD), (PAD, PAD)),
        dimension_numbers=("NCHW", "OIHW", "NCHW"))
    a = bn_g.reshape(1, -1, 1, 1) / jnp.sqrt(bn_var.reshape(1, -1, 1, 1) + BN_EPS)
    bn = (conv - bn_mean.reshape(1, -1, 1, 1)) * a + bn_b.reshape(1, -1, 1, 1)
    return xg * jax.nn.sigmoid(bn)


def init_params(key, C, reduction_ratio=16):
    """Deterministic synthetic params matching the PyTorch layer shapes."""
    Cr = C // reduction_ratio
    ks = jax.random.split(key, 9)

    def u(k, shape, fan_in):
        bound = 1.0 / (fan_in ** 0.5)
        return jax.random.uniform(k, shape, jnp.float32, -bound, bound)

    w1 = u(ks[0], (Cr, C), C)                        # Linear(C -> C//r)
    b1 = u(ks[1], (Cr,), C)
    w2 = u(ks[2], (C, Cr), Cr)                       # Linear(C//r -> C)
    b2 = u(ks[3], (C,), Cr)
    wconv = u(ks[4], (1, 2, KSZ, KSZ), 2 * KSZ * KSZ)  # Conv2d(2->1, 7x7, bias=False)
    bn_g = jax.random.uniform(ks[5], (1,), jnp.float32, 0.5, 1.5)
    bn_b = 0.1 * jax.random.normal(ks[6], (1,), jnp.float32)
    bn_mean = 0.1 * jax.random.normal(ks[7], (1,), jnp.float32)
    bn_var = jax.random.uniform(ks[8], (1,), jnp.float32, 0.5, 1.5)
    return (w1, b1, w2, b2, wconv, bn_g, bn_b, bn_mean, bn_var)


if __name__ == "__main__":
    # gate_channels=32, reduction_ratio=16 -> hidden width 2
    B, C, H, W = 2, 32, 16, 16
    key = jax.random.PRNGKey(0)
    k_x, k_p = jax.random.split(key)
    x = jax.random.normal(k_x, (B, C, H, W), jnp.float32)
    params = init_params(k_p, C)

    out = cbam_forward(x, params)
    out = jax.block_until_ready(out)

    ref = cbam_reference(x, params)
    assert out.shape == (B, C, H, W), out.shape
    err = float(jnp.max(jnp.abs(out - ref)))
    assert err < 5e-3, err
    print("KERNEL_OK")
</pallas_src>

<mosaic_0001>
module attributes {stable_mosaic.version = 11 : i64} {
  func.func @_channel_gate_kernel(%arg0: i32, %arg1: memref<1x32x256xf32, #tpu.memory_space<vmem>>, %arg2: memref<2x32xf32, #tpu.memory_space<vmem>>, %arg3: memref<2x1xf32, #tpu.memory_space<vmem>>, %arg4: memref<32x2xf32, #tpu.memory_space<vmem>>, %arg5: memref<32x1xf32, #tpu.memory_space<vmem>>, %arg6: memref<1x32x1xf32, #tpu.memory_space<vmem>>, %arg7: memref<1x1x256xf32, #tpu.memory_space<vmem>>, %arg8: memref<1x1x256xf32, #tpu.memory_space<vmem>>) attributes {dimension_semantics = [#tpu.dimension_semantics<parallel>], iteration_bounds = array<i64: 2>, scalar_prefetch = 0 : i64, scratch_operands = 0 : i64, tpu.core_type = #tpu.core_type<tc>, window_params = [{transform_indices = @transform_0, window_bounds = array<i64: 1, 32, 256>}, {pipeline_mode = #tpu.pipeline_mode<synchronous>, transform_indices = @transform_1, window_bounds = array<i64: 2, 32>}, {pipeline_mode = #tpu.pipeline_mode<synchronous>, transform_indices = @transform_2, window_bounds = array<i64: 2, 1>}, {pipeline_mode = #tpu.pipeline_mode<synchronous>, transform_indices = @transform_3, window_bounds = array<i64: 32, 2>}, {pipeline_mode = #tpu.pipeline_mode<synchronous>, transform_indices = @transform_4, window_bounds = array<i64: 32, 1>}, {transform_indices = @transform_5, window_bounds = array<i64: 1, 32, 1>}, {transform_indices = @transform_6, window_bounds = array<i64: 1, 1, 256>}, {transform_indices = @transform_7, window_bounds = array<i64: 1, 1, 256>}]} {
    %c0 = arith.constant 0 : index
    %c0_0 = arith.constant 0 : index
    %c0_1 = arith.constant 0 : index
    %0 = vector.load %arg1[%c0, %c0_0, %c0_1] : memref<1x32x256xf32, #tpu.memory_space<vmem>>, vector<1x32x256xf32>
    %1 = vector.shape_cast %0 : vector<1x32x256xf32> to vector<32x256xf32>
    %cst = arith.constant dense<0.000000e+00> : vector<32xf32>
    %2 = vector.multi_reduction <add>, %1, %cst [1] : vector<32x256xf32> to vector<32xf32>
    %3 = vector.shape_cast %2 : vector<32xf32> to vector<32x1xf32>
    %cst_2 = arith.constant 3.906250e-03 : f32
    %4 = vector.broadcast %cst_2 : f32 to vector<32x1xf32>
    %5 = arith.mulf %3, %4 : vector<32x1xf32>
    %cst_3 = arith.constant dense<0xFF800000> : vector<32xf32>
    %6 = vector.multi_reduction <maximumf>, %1, %cst_3 [1] : vector<32x256xf32> to vector<32xf32>
    %7 = vector.shape_cast %6 : vector<32xf32> to vector<32x1xf32>
    %c0_4 = arith.constant 0 : index
    %c0_5 = arith.constant 0 : index
    %8 = vector.load %arg2[%c0_4, %c0_5] : memref<2x32xf32, #tpu.memory_space<vmem>>, vector<2x32xf32>
    %c0_6 = arith.constant 0 : index
    %c0_7 = arith.constant 0 : index
    %9 = vector.load %arg3[%c0_6, %c0_7] : memref<2x1xf32, #tpu.memory_space<vmem>>, vector<2x1xf32>
    %c0_8 = arith.constant 0 : index
    %c0_9 = arith.constant 0 : index
    %10 = vector.load %arg4[%c0_8, %c0_9] : memref<32x2xf32, #tpu.memory_space<vmem>>, vector<32x2xf32>
    %c0_10 = arith.constant 0 : index
    %c0_11 = arith.constant 0 : index
    %11 = vector.load %arg5[%c0_10, %c0_11] : memref<32x1xf32, #tpu.memory_space<vmem>>, vector<32x1xf32>
    %cst_12 = arith.constant dense<0.000000e+00> : vector<2x1xf32>
    %12 = tpu.matmul %8, %5, %cst_12 {dimension_numbers = #tpu.dot_dimension_numbers<[1], [0], [0], [1], [0, 0, 1, 1], [], []>} : vector<2x32xf32>, vector<32x1xf32>, vector<2x1xf32> -> vector<2x1xf32>
    %13 = arith.addf %12, %9 : vector<2x1xf32>
    %cst_13 = arith.constant 0.000000e+00 : f32
    %14 = vector.broadcast %cst_13 : f32 to vector<2x1xf32>
    %15 = arith.maximumf %13, %14 : vector<2x1xf32>
    %cst_14 = arith.constant dense<0.000000e+00> : vector<32x1xf32>
    %16 = tpu.matmul %10, %15, %cst_14 {dimension_numbers = #tpu.dot_dimension_numbers<[1], [0], [0], [1], [0, 0, 1, 1], [], []>} : vector<32x2xf32>, vector<2x1xf32>, vector<32x1xf32> -> vector<32x1xf32>
    %17 = arith.addf %16, %11 : vector<32x1xf32>
    %cst_15 = arith.constant dense<0.000000e+00> : vector<2x1xf32>
    %18 = tpu.matmul %8, %7, %cst_15 {dimension_numbers = #tpu.dot_dimension_numbers<[1], [0], [0], [1], [0, 0, 1, 1], [], []>} : vector<2x32xf32>, vector<32x1xf32>, vector<2x1xf32> -> vector<2x1xf32>
    %19 = arith.addf %18, %9 : vector<2x1xf32>
    %cst_16 = arith.constant 0.000000e+00 : f32
    %20 = vector.broadcast %cst_16 : f32 to vector<2x1xf32>
    %21 = arith.maximumf %19, %20 : vector<2x1xf32>
    %cst_17 = arith.constant dense<0.000000e+00> : vector<32x1xf32>
    %22 = tpu.matmul %10, %21, %cst_17 {dimension_numbers = #tpu.dot_dimension_numbers<[1], [0], [0], [1], [0, 0, 1, 1], [], []>} : vector<32x2xf32>, vector<2x1xf32>, vector<32x1xf32> -> vector<32x1xf32>
    %23 = arith.addf %22, %11 : vector<32x1xf32>
    %24 = arith.addf %17, %23 : vector<32x1xf32>
    %25 = arith.negf %24 : vector<32x1xf32>
    %26 = math.exp %25 : vector<32x1xf32>
    %cst_18 = arith.constant 1.000000e+00 : f32
    %27 = vector.broadcast %cst_18 : f32 to vector<32x1xf32>
    %28 = arith.addf %27, %26 : vector<32x1xf32>
    %29 = arith.divf %27, %28 : vector<32x1xf32>
    %c0_19 = arith.constant 0 : index
    %c0_20 = arith.constant 0 : index
    %c0_21 = arith.constant 0 : index
    %30 = vector.load %arg6[%c0_19, %c0_20, %c0_21] : memref<1x32x1xf32, #tpu.memory_space<vmem>>, vector<1x32x1xf32>
    %31 = vector.shape_cast %30 : vector<1x32x1xf32> to vector<32x1xf32>
    %32 = vector.shape_cast %29 : vector<32x1xf32> to vector<1x32x1xf32>
    tpu.vector_store %arg6[%c0_19, %c0_20, %c0_21], %32 {strides = array<i32>} : memref<1x32x1xf32, #tpu.memory_space<vmem>>, vector<1x32x1xf32>,
    %33 = vector.broadcast %29 : vector<32x1xf32> to vector<32x256xf32>
    %34 = arith.mulf %1, %33 : vector<32x256xf32>
    %cst_22 = arith.constant dense<0xFF800000> : vector<256xf32>
    %35 = vector.multi_reduction <maximumf>, %34, %cst_22 [0] : vector<32x256xf32> to vector<256xf32>
    %36 = vector.shape_cast %35 : vector<256xf32> to vector<1x256xf32>
    %c0_23 = arith.constant 0 : index
    %c0_24 = arith.constant 0 : index
    %c0_25 = arith.constant 0 : index
    %37 = vector.load %arg7[%c0_23, %c0_24, %c0_25] : memref<1x1x256xf32, #tpu.memory_space<vmem>>, vector<1x1x256xf32>
    %38 = vector.shape_cast %37 : vector<1x1x256xf32> to vector<1x256xf32>
    %39 = vector.shape_cast %36 : vector<1x256xf32> to vector<1x1x256xf32>
    tpu.vector_store %arg7[%c0_23, %c0_24, %c0_25], %39 {strides = array<i32>} : memref<1x1x256xf32, #tpu.memory_space<vmem>>, vector<1x1x256xf32>,
    %cst_26 = arith.constant dense<0.000000e+00> : vector<256xf32>
    %40 = vector.multi_reduction <add>, %34, %cst_26 [0] : vector<32x256xf32> to vector<256xf32>
    %41 = vector.shape_cast %40 : vector<256xf32> to vector<1x256xf32>
    %cst_27 = arith.constant 3.125000e-02 : f32
    %42 = vector.broadcast %cst_27 : f32 to vector<1x256xf32>
    %43 = arith.mulf %41, %42 : vector<1x256xf32>
    %c0_28 = arith.constant 0 : index
    %c0_29 = arith.constant 0 : index
    %c0_30 = arith.constant 0 : index
    %44 = vector.load %arg8[%c0_28, %c0_29, %c0_30] : memref<1x1x256xf32, #tpu.memory_space<vmem>>, vector<1x1x256xf32>
    %45 = vector.shape_cast %44 : vector<1x1x256xf32> to vector<1x256xf32>
    %46 = vector.shape_cast %43 : vector<1x256xf32> to vector<1x1x256xf32>
    tpu.vector_store %arg8[%c0_28, %c0_29, %c0_30], %46 {strides = array<i32>} : memref<1x1x256xf32, #tpu.memory_space<vmem>>, vector<1x1x256xf32>,
    return
  }
  func.func @transform_0(%arg0: i32) -> (i32, i32, i32) {
    %c0_i32 = arith.constant 0 : i32
    %c0_i32_0 = arith.constant 0 : i32
    %c0_i32_1 = arith.constant 0 : i32
    return %arg0, %c0_i32, %c0_i32_0 : i32, i32, i32
  }
  func.func @transform_1(%arg0: i32) -> (i32, i32) {
    %c0_i32 = arith.constant 0 : i32
    %c0_i32_0 = arith.constant 0 : i32
    %c0_i32_1 = arith.constant 0 : i32
    return %c0_i32, %c0_i32_0 : i32, i32
  }
  func.func @transform_2(%arg0: i32) -> (i32, i32) {
    %c0_i32 = arith.constant 0 : i32
    %c0_i32_0 = arith.constant 0 : i32
    %c0_i32_1 = arith.constant 0 : i32
    return %c0_i32, %c0_i32_0 : i32, i32
  }
  func.func @transform_3(%arg0: i32) -> (i32, i32) {
    %c0_i32 = arith.constant 0 : i32
    %c0_i32_0 = arith.constant 0 : i32
    %c0_i32_1 = arith.constant 0 : i32
    return %c0_i32, %c0_i32_0 : i32, i32
  }
  func.func @transform_4(%arg0: i32) -> (i32, i32) {
    %c0_i32 = arith.constant 0 : i32
    %c0_i32_0 = arith.constant 0 : i32
    %c0_i32_1 = arith.constant 0 : i32
    return %c0_i32, %c0_i32_0 : i32, i32
  }
  func.func @transform_5(%arg0: i32) -> (i32, i32, i32) {
    %c0_i32 = arith.constant 0 : i32
    %c0_i32_0 = arith.constant 0 : i32
    %c0_i32_1 = arith.constant 0 : i32
    return %arg0, %c0_i32, %c0_i32_0 : i32, i32, i32
  }
  func.func @transform_6(%arg0: i32) -> (i32, i32, i32) {
    %c0_i32 = arith.constant 0 : i32
    %c0_i32_0 = arith.constant 0 : i32
    %c0_i32_1 = arith.constant 0 : i32
    return %arg0, %c0_i32, %c0_i32_0 : i32, i32, i32
  }
  func.func @transform_7(%arg0: i32) -> (i32, i32, i32) {
    %c0_i32 = arith.constant 0 : i32
    %c0_i32_0 = arith.constant 0 : i32
    %c0_i32_1 = arith.constant 0 : i32
    return %arg0, %c0_i32, %c0_i32_0 : i32, i32, i32
  }
}

module attributes {stable_mosaic.version = 11 : i64} {
  func.func @_modulate_kernel(%arg0: i32, %arg1: memref<1x32x256xf32, #tpu.memory_space<vmem>>, %arg2: memref<1x32x1xf32, #tpu.memory_space<vmem>>, %arg3: memref<1x1x256xf32, #tpu.memory_space<vmem>>, %arg4: memref<1x32x256xf32, #tpu.memory_space<vmem>>) attributes {dimension_semantics = [#tpu.dimension_semantics<parallel>], iteration_bounds = array<i64: 2>, scalar_prefetch = 0 : i64, scratch_operands = 0 : i64, tpu.core_type = #tpu.core_type<tc>, window_params = [{transform_indices = @transform_0, window_bounds = array<i64: 1, 32, 256>}, {transform_indices = @transform_1, window_bounds = array<i64: 1, 32, 1>}, {transform_indices = @transform_2, window_bounds = array<i64: 1, 1, 256>}, {transform_indices = @transform_3, window_bounds = array<i64: 1, 32, 256>}]} {
    %c0 = arith.constant 0 : index
    %c0_0 = arith.constant 0 : index
    %c0_1 = arith.constant 0 : index
    %0 = vector.load %arg1[%c0, %c0_0, %c0_1] : memref<1x32x256xf32, #tpu.memory_space<vmem>>, vector<1x32x256xf32>
    %1 = vector.shape_cast %0 : vector<1x32x256xf32> to vector<32x256xf32>
    %c0_2 = arith.constant 0 : index
    %c0_3 = arith.constant 0 : index
    %c0_4 = arith.constant 0 : index
    %2 = vector.load %arg2[%c0_2, %c0_3, %c0_4] : memref<1x32x1xf32, #tpu.memory_space<vmem>>, vector<1x32x1xf32>
    %3 = vector.shape_cast %2 : vector<1x32x1xf32> to vector<32x1xf32>
    %4 = vector.broadcast %3 : vector<32x1xf32> to vector<32x256xf32>
    %5 = arith.mulf %1, %4 : vector<32x256xf32>
    %c0_5 = arith.constant 0 : index
    %c0_6 = arith.constant 0 : index
    %c0_7 = arith.constant 0 : index
    %6 = vector.load %arg3[%c0_5, %c0_6, %c0_7] : memref<1x1x256xf32, #tpu.memory_space<vmem>>, vector<1x1x256xf32>
    %7 = vector.shape_cast %6 : vector<1x1x256xf32> to vector<1x256xf32>
    %8 = vector.broadcast %7 : vector<1x256xf32> to vector<32x256xf32>
    %9 = arith.mulf %5, %8 : vector<32x256xf32>
    %c0_8 = arith.constant 0 : index
    %c0_9 = arith.constant 0 : index
    %c0_10 = arith.constant 0 : index
    %10 = vector.load %arg4[%c0_8, %c0_9, %c0_10] : memref<1x32x256xf32, #tpu.memory_space<vmem>>, vector<1x32x256xf32>
    %11 = vector.shape_cast %10 : vector<1x32x256xf32> to vector<32x256xf32>
    %12 = vector.shape_cast %9 : vector<32x256xf32> to vector<1x32x256xf32>
    tpu.vector_store %arg4[%c0_8, %c0_9, %c0_10], %12 {strides = array<i32>} : memref<1x32x256xf32, #tpu.memory_space<vmem>>, vector<1x32x256xf32>,
    return
  }
  func.func @transform_0(%arg0: i32) -> (i32, i32, i32) {
    %c0_i32 = arith.constant 0 : i32
    %c0_i32_0 = arith.constant 0 : i32
    %c0_i32_1 = arith.constant 0 : i32
    return %arg0, %c0_i32, %c0_i32_0 : i32, i32, i32
  }
  func.func @transform_1(%arg0: i32) -> (i32, i32, i32) {
    %c0_i32 = arith.constant 0 : i32
    %c0_i32_0 = arith.constant 0 : i32
    %c0_i32_1 = arith.constant 0 : i32
    return %arg0, %c0_i32, %c0_i32_0 : i32, i32, i32
  }
  func.func @transform_2(%arg0: i32) -> (i32, i32, i32) {
    %c0_i32 = arith.constant 0 : i32
    %c0_i32_0 = arith.constant 0 : i32
    %c0_i32_1 = arith.constant 0 : i32
    return %arg0, %c0_i32, %c0_i32_0 : i32, i32, i32
  }
  func.func @transform_3(%arg0: i32) -> (i32, i32, i32) {
    %c0_i32 = arith.constant 0 : i32
    %c0_i32_0 = arith.constant 0 : i32
    %c0_i32_1 = arith.constant 0 : i32
    return %arg0, %c0_i32, %c0_i32_0 : i32, i32, i32
  }
}

module attributes {stable_mosaic.version = 11 : i64} {
  func.func @_spatial_gate_kernel(%arg0: i32, %arg1: memref<1x2x22x22xf32, #tpu.memory_space<vmem>>, %arg2: memref<98xf32, #tpu.memory_space<smem>>, %arg3: memref<1xf32, #tpu.memory_space<smem>>, %arg4: memref<1x1x16x16xf32, #tpu.memory_space<vmem>>) attributes {dimension_semantics = [#tpu.dimension_semantics<parallel>], iteration_bounds = array<i64: 2>, scalar_prefetch = 0 : i64, scratch_operands = 0 : i64, tpu.core_type = #tpu.core_type<tc>, window_params = [{transform_indices = @transform_0, window_bounds = array<i64: 1, 2, 22, 22>}, {transform_indices = @transform_1, window_bounds = array<i64: 98>}, {transform_indices = @transform_2, window_bounds = array<i64: 1>}, {transform_indices = @transform_3, window_bounds = array<i64: 1, 1, 16, 16>}]} {
    %cst = arith.constant 0.000000e+00 : f32
    %0 = vector.broadcast %cst : f32 to vector<16x16xf32>
    %c0 = arith.constant 0 : index
    %1 = memref.load %arg3[%c0] : memref<1xf32, #tpu.memory_space<smem>>
    %2 = vector.broadcast %1 : f32 to vector<16x16xf32>
    %3 = arith.addf %0, %2 : vector<16x16xf32>
    %c0_0 = arith.constant 0 : index
    %4 = memref.load %arg2[%c0_0] : memref<98xf32, #tpu.memory_space<smem>>
    %c0_1 = arith.constant 0 : index
    %c0_2 = arith.constant 0 : index
    %c0_3 = arith.constant 0 : index
    %c0_4 = arith.constant 0 : index
    %5 = vector.load %arg1[%c0_1, %c0_2, %c0_3, %c0_4] : memref<1x2x22x22xf32, #tpu.memory_space<vmem>>, vector<1x1x16x16xf32>
    %6 = vector.shape_cast %5 : vector<1x1x16x16xf32> to vector<16x16xf32>
    %7 = vector.broadcast %4 : f32 to vector<16x16xf32>
    %8 = arith.mulf %7, %6 : vector<16x16xf32>
    %9 = arith.addf %3, %8 : vector<16x16xf32>
    %c1 = arith.constant 1 : index
    %10 = memref.load %arg2[%c1] : memref<98xf32, #tpu.memory_space<smem>>
    %c0_5 = arith.constant 0 : index
    %c0_6 = arith.constant 0 : index
    %c0_7 = arith.constant 0 : index
    %c1_8 = arith.constant 1 : index
    %11 = vector.load %arg1[%c0_5, %c0_6, %c0_7, %c1_8] : memref<1x2x22x22xf32, #tpu.memory_space<vmem>>, vector<1x1x16x16xf32>
    %12 = vector.shape_cast %11 : vector<1x1x16x16xf32> to vector<16x16xf32>
    %13 = vector.broadcast %10 : f32 to vector<16x16xf32>
    %14 = arith.mulf %13, %12 : vector<16x16xf32>
    %15 = arith.addf %9, %14 : vector<16x16xf32>
    %c2 = arith.constant 2 : index
    %16 = memref.load %arg2[%c2] : memref<98xf32, #tpu.memory_space<smem>>
    %c0_9 = arith.constant 0 : index
    %c0_10 = arith.constant 0 : index
    %c0_11 = arith.constant 0 : index
    %c2_12 = arith.constant 2 : index
    %17 = vector.load %arg1[%c0_9, %c0_10, %c0_11, %c2_12] : memref<1x2x22x22xf32, #tpu.memory_space<vmem>>, vector<1x1x16x16xf32>
    %18 = vector.shape_cast %17 : vector<1x1x16x16xf32> to vector<16x16xf32>
    %19 = vector.broadcast %16 : f32 to vector<16x16xf32>
    %20 = arith.mulf %19, %18 : vector<16x16xf32>
    %21 = arith.addf %15, %20 : vector<16x16xf32>
    %c3 = arith.constant 3 : index
    %22 = memref.load %arg2[%c3] : memref<98xf32, #tpu.memory_space<smem>>
    %c0_13 = arith.constant 0 : index
    %c0_14 = arith.constant 0 : index
    %c0_15 = arith.constant 0 : index
    %c3_16 = arith.constant 3 : index
    %23 = vector.load %arg1[%c0_13, %c0_14, %c0_15, %c3_16] : memref<1x2x22x22xf32, #tpu.memory_space<vmem>>, vector<1x1x16x16xf32>
    %24 = vector.shape_cast %23 : vector<1x1x16x16xf32> to vector<16x16xf32>
    %25 = vector.broadcast %22 : f32 to vector<16x16xf32>
    %26 = arith.mulf %25, %24 : vector<16x16xf32>
    %27 = arith.addf %21, %26 : vector<16x16xf32>
    %c4 = arith.constant 4 : index
    %28 = memref.load %arg2[%c4] : memref<98xf32, #tpu.memory_space<smem>>
    %c0_17 = arith.constant 0 : index
    %c0_18 = arith.constant 0 : index
    %c0_19 = arith.constant 0 : index
    %c4_20 = arith.constant 4 : index
    %29 = vector.load %arg1[%c0_17, %c0_18, %c0_19, %c4_20] : memref<1x2x22x22xf32, #tpu.memory_space<vmem>>, vector<1x1x16x16xf32>
    %30 = vector.shape_cast %29 : vector<1x1x16x16xf32> to vector<16x16xf32>
    %31 = vector.broadcast %28 : f32 to vector<16x16xf32>
    %32 = arith.mulf %31, %30 : vector<16x16xf32>
    %33 = arith.addf %27, %32 : vector<16x16xf32>
    %c5 = arith.constant 5 : index
    %34 = memref.load %arg2[%c5] : memref<98xf32, #tpu.memory_space<smem>>
    %c0_21 = arith.constant 0 : index
    %c0_22 = arith.constant 0 : index
    %c0_23 = arith.constant 0 : index
    %c5_24 = arith.constant 5 : index
    %35 = vector.load %arg1[%c0_21, %c0_22, %c0_23, %c5_24] : memref<1x2x22x22xf32, #tpu.memory_space<vmem>>, vector<1x1x16x16xf32>
    %36 = vector.shape_cast %35 : vector<1x1x16x16xf32> to vector<16x16xf32>
    %37 = vector.broadcast %34 : f32 to vector<16x16xf32>
    %38 = arith.mulf %37, %36 : vector<16x16xf32>
    %39 = arith.addf %33, %38 : vector<16x16xf32>
    %c6 = arith.constant 6 : index
    %40 = memref.load %arg2[%c6] : memref<98xf32, #tpu.memory_space<smem>>
    %c0_25 = arith.constant 0 : index
    %c0_26 = arith.constant 0 : index
    %c0_27 = arith.constant 0 : index
    %c6_28 = arith.constant 6 : index
    %41 = vector.load %arg1[%c0_25, %c0_26, %c0_27, %c6_28] : memref<1x2x22x22xf32, #tpu.memory_space<vmem>>, vector<1x1x16x16xf32>
    %42 = vector.shape_cast %41 : vector<1x1x16x16xf32> to vector<16x16xf32>
    %43 = vector.broadcast %40 : f32 to vector<16x16xf32>
    %44 = arith.mulf %43, %42 : vector<16x16xf32>
    %45 = arith.addf %39, %44 : vector<16x16xf32>
    %c7 = arith.constant 7 : index
    %46 = memref.load %arg2[%c7] : memref<98xf32, #tpu.memory_space<smem>>
    %c0_29 = arith.constant 0 : index
    %c0_30 = arith.constant 0 : index
    %c1_31 = arith.constant 1 : index
    %c0_32 = arith.constant 0 : index
    %47 = vector.load %arg1[%c0_29, %c0_30, %c1_31, %c0_32] : memref<1x2x22x22xf32, #tpu.memory_space<vmem>>, vector<1x1x16x16xf32>
    %48 = vector.shape_cast %47 : vector<1x1x16x16xf32> to vector<16x16xf32>
    %49 = vector.broadcast %46 : f32 to vector<16x16xf32>
    %50 = arith.mulf %49, %48 : vector<16x16xf32>
    %51 = arith.addf %45, %50 : vector<16x16xf32>
    %c8 = arith.constant 8 : index
    %52 = memref.load %arg2[%c8] : memref<98xf32, #tpu.memory_space<smem>>
    %c0_33 = arith.constant 0 : index
    %c0_34 = arith.constant 0 : index
    %c1_35 = arith.constant 1 : index
    %c1_36 = arith.constant 1 : index
    %53 = vector.load %arg1[%c0_33, %c0_34, %c1_35, %c1_36] : memref<1x2x22x22xf32, #tpu.memory_space<vmem>>, vector<1x1x16x16xf32>
    %54 = vector.shape_cast %53 : vector<1x1x16x16xf32> to vector<16x16xf32>
    %55 = vector.broadcast %52 : f32 to vector<16x16xf32>
    %56 = arith.mulf %55, %54 : vector<16x16xf32>
    %57 = arith.addf %51, %56 : vector<16x16xf32>
    %c9 = arith.constant 9 : index
    %58 = memref.load %arg2[%c9] : memref<98xf32, #tpu.memory_space<smem>>
    %c0_37 = arith.constant 0 : index
    %c0_38 = arith.constant 0 : index
    %c1_39 = arith.constant 1 : index
    %c2_40 = arith.constant 2 : index
    %59 = vector.load %arg1[%c0_37, %c0_38, %c1_39, %c2_40] : memref<1x2x22x22xf32, #tpu.memory_space<vmem>>, vector<1x1x16x16xf32>
    %60 = vector.shape_cast %59 : vector<1x1x16x16xf32> to vector<16x16xf32>
    %61 = vector.broadcast %58 : f32 to vector<16x16xf32>
    %62 = arith.mulf %61, %60 : vector<16x16xf32>
    %63 = arith.addf %57, %62 : vector<16x16xf32>
    %c10 = arith.constant 10 : index
    %64 = memref.load %arg2[%c10] : memref<98xf32, #tpu.memory_space<smem>>
    %c0_41 = arith.constant 0 : index
    %c0_42 = arith.constant 0 : index
    %c1_43 = arith.constant 1 : index
    %c3_44 = arith.constant 3 : index
    %65 = vector.load %arg1[%c0_41, %c0_42, %c1_43, %c3_44] : memref<1x2x22x22xf32, #tpu.memory_space<vmem>>, vector<1x1x16x16xf32>
    %66 = vector.shape_cast %65 : vector<1x1x16x16xf32> to vector<16x16xf32>
    %67 = vector.broadcast %64 : f32 to vector<16x16xf32>
    %68 = arith.mulf %67, %66 : vector<16x16xf32>
    %69 = arith.addf %63, %68 : vector<16x16xf32>
    %c11 = arith.constant 11 : index
    %70 = memref.load %arg2[%c11] : memref<98xf32, #tpu.memory_space<smem>>
    %c0_45 = arith.constant 0 : index
    %c0_46 = arith.constant 0 : index
    %c1_47 = arith.constant 1 : index
    %c4_48 = arith.constant 4 : index
    %71 = vector.load %arg1[%c0_45, %c0_46, %c1_47, %c4_48] : memref<1x2x22x22xf32, #tpu.memory_space<vmem>>, vector<1x1x16x16xf32>
    %72 = vector.shape_cast %71 : vector<1x1x16x16xf32> to vector<16x16xf32>
    %73 = vector.broadcast %70 : f32 to vector<16x16xf32>
    %74 = arith.mulf %73, %72 : vector<16x16xf32>
    %75 = arith.addf %69, %74 : vector<16x16xf32>
    %c12 = arith.constant 12 : index
    %76 = memref.load %arg2[%c12] : memref<98xf32, #tpu.memory_space<smem>>
    %c0_49 = arith.constant 0 : index
    %c0_50 = arith.constant 0 : index
    %c1_51 = arith.constant 1 : index
    %c5_52 = arith.constant 5 : index
    %77 = vector.load %arg1[%c0_49, %c0_50, %c1_51, %c5_52] : memref<1x2x22x22xf32, #tpu.memory_space<vmem>>, vector<1x1x16x16xf32>
    %78 = vector.shape_cast %77 : vector<1x1x16x16xf32> to vector<16x16xf32>
    %79 = vector.broadcast %76 : f32 to vector<16x16xf32>
    %80 = arith.mulf %79, %78 : vector<16x16xf32>
    %81 = arith.addf %75, %80 : vector<16x16xf32>
    %c13 = arith.constant 13 : index
    %82 = memref.load %arg2[%c13] : memref<98xf32, #tpu.memory_space<smem>>
    %c0_53 = arith.constant 0 : index
    %c0_54 = arith.constant 0 : index
    %c1_55 = arith.constant 1 : index
    %c6_56 = arith.constant 6 : index
    %83 = vector.load %arg1[%c0_53, %c0_54, %c1_55, %c6_56] : memref<1x2x22x22xf32, #tpu.memory_space<vmem>>, vector<1x1x16x16xf32>
    %84 = vector.shape_cast %83 : vector<1x1x16x16xf32> to vector<16x16xf32>
    %85 = vector.broadcast %82 : f32 to vector<16x16xf32>
    %86 = arith.mulf %85, %84 : vector<16x16xf32>
    %87 = arith.addf %81, %86 : vector<16x16xf32>
    %c14 = arith.constant 14 : index
    %88 = memref.load %arg2[%c14] : memref<98xf32, #tpu.memory_space<smem>>
    %c0_57 = arith.constant 0 : index
    %c0_58 = arith.constant 0 : index
    %c2_59 = arith.constant 2 : index
    %c0_60 = arith.constant 0 : index
    %89 = vector.load %arg1[%c0_57, %c0_58, %c2_59, %c0_60] : memref<1x2x22x22xf32, #tpu.memory_space<vmem>>, vector<1x1x16x16xf32>
    %90 = vector.shape_cast %89 : vector<1x1x16x16xf32> to vector<16x16xf32>
    %91 = vector.broadcast %88 : f32 to vector<16x16xf32>
    %92 = arith.mulf %91, %90 : vector<16x16xf32>
    %93 = arith.addf %87, %92 : vector<16x16xf32>
    %c15 = arith.constant 15 : index
    %94 = memref.load %arg2[%c15] : memref<98xf32, #tpu.memory_space<smem>>
    %c0_61 = arith.constant 0 : index
    %c0_62 = arith.constant 0 : index
    %c2_63 = arith.constant 2 : index
    %c1_64 = arith.constant 1 : index
    %95 = vector.load %arg1[%c0_61, %c0_62, %c2_63, %c1_64] : memref<1x2x22x22xf32, #tpu.memory_space<vmem>>, vector<1x1x16x16xf32>
    %96 = vector.shape_cast %95 : vector<1x1x16x16xf32> to vector<16x16xf32>
    %97 = vector.broadcast %94 : f32 to vector<16x16xf32>
    %98 = arith.mulf %97, %96 : vector<16x16xf32>
    %99 = arith.addf %93, %98 : vector<16x16xf32>
    %c16 = arith.constant 16 : index
    %100 = memref.load %arg2[%c16] : memref<98xf32, #tpu.memory_space<smem>>
    %c0_65 = arith.constant 0 : index
    %c0_66 = arith.constant 0 : index
    %c2_67 = arith.constant 2 : index
    %c2_68 = arith.constant 2 : index
    %101 = vector.load %arg1[%c0_65, %c0_66, %c2_67, %c2_68] : memref<1x2x22x22xf32, #tpu.memory_space<vmem>>, vector<1x1x16x16xf32>
    %102 = vector.shape_cast %101 : vector<1x1x16x16xf32> to vector<16x16xf32>
    %103 = vector.broadcast %100 : f32 to vector<16x16xf32>
    %104 = arith.mulf %103, %102 : vector<16x16xf32>
    %105 = arith.addf %99, %104 : vector<16x16xf32>
    %c17 = arith.constant 17 : index
    %106 = memref.load %arg2[%c17] : memref<98xf32, #tpu.memory_space<smem>>
    %c0_69 = arith.constant 0 : index
    %c0_70 = arith.constant 0 : index
    %c2_71 = arith.constant 2 : index
    %c3_72 = arith.constant 3 : index
    %107 = vector.load %arg1[%c0_69, %c0_70, %c2_71, %c3_72] : memref<1x2x22x22xf32, #tpu.memory_space<vmem>>, vector<1x1x16x16xf32>
    %108 = vector.shape_cast %107 : vector<1x1x16x16xf32> to vector<16x16xf32>
    %109 = vector.broadcast %106 : f32 to vector<16x16xf32>
    %110 = arith.mulf %109, %108 : vector<16x16xf32>
    %111 = arith.addf %105, %110 : vector<16x16xf32>
    %c18 = arith.constant 18 : index
    %112 = memref.load %arg2[%c18] : memref<98xf32, #tpu.memory_space<smem>>
    %c0_73 = arith.constant 0 : index
    %c0_74 = arith.constant 0 : index
    %c2_75 = arith.constant 2 : index
    %c4_76 = arith.constant 4 : index
    %113 = vector.load %arg1[%c0_73, %c0_74, %c2_75, %c4_76] : memref<1x2x22x22xf32, #tpu.memory_space<vmem>>, vector<1x1x16x16xf32>
    %114 = vector.shape_cast %113 : vector<1x1x16x16xf32> to vector<16x16xf32>
    %115 = vector.broadcast %112 : f32 to vector<16x16xf32>
    %116 = arith.mulf %115, %114 : vector<16x16xf32>
    %117 = arith.addf %111, %116 : vector<16x16xf32>
    %c19 = arith.constant 19 : index
    %118 = memref.load %arg2[%c19] : memref<98xf32, #tpu.memory_space<smem>>
    %c0_77 = arith.constant 0 : index
    %c0_78 = arith.constant 0 : index
    %c2_79 = arith.constant 2 : index
    %c5_80 = arith.constant 5 : index
    %119 = vector.load %arg1[%c0_77, %c0_78, %c2_79, %c5_80] : memref<1x2x22x22xf32, #tpu.memory_space<vmem>>, vector<1x1x16x16xf32>
    %120 = vector.shape_cast %119 : vector<1x1x16x16xf32> to vector<16x16xf32>
    %121 = vector.broadcast %118 : f32 to vector<16x16xf32>
    %122 = arith.mulf %121, %120 : vector<16x16xf32>
    %123 = arith.addf %117, %122 : vector<16x16xf32>
    %c20 = arith.constant 20 : index
    %124 = memref.load %arg2[%c20] : memref<98xf32, #tpu.memory_space<smem>>
    %c0_81 = arith.constant 0 : index
    %c0_82 = arith.constant 0 : index
    %c2_83 = arith.constant 2 : index
    %c6_84 = arith.constant 6 : index
    %125 = vector.load %arg1[%c0_81, %c0_82, %c2_83, %c6_84] : memref<1x2x22x22xf32, #tpu.memory_space<vmem>>, vector<1x1x16x16xf32>
    %126 = vector.shape_cast %125 : vector<1x1x16x16xf32> to vector<16x16xf32>
    %127 = vector.broadcast %124 : f32 to vector<16x16xf32>
    %128 = arith.mulf %127, %126 : vector<16x16xf32>
    %129 = arith.addf %123, %128 : vector<16x16xf32>
    %c21 = arith.constant 21 : index
    %130 = memref.load %arg2[%c21] : memref<98xf32, #tpu.memory_space<smem>>
    %c0_85 = arith.constant 0 : index
    %c0_86 = arith.constant 0 : index
    %c3_87 = arith.constant 3 : index
    %c0_88 = arith.constant 0 : index
    %131 = vector.load %arg1[%c0_85, %c0_86, %c3_87, %c0_88] : memref<1x2x22x22xf32, #tpu.memory_space<vmem>>, vector<1x1x16x16xf32>
    %132 = vector.shape_cast %131 : vector<1x1x16x16xf32> to vector<16x16xf32>
    %133 = vector.broadcast %130 : f32 to vector<16x16xf32>
    %134 = arith.mulf %133, %132 : vector<16x16xf32>
    %135 = arith.addf %129, %134 : vector<16x16xf32>
    %c22 = arith.constant 22 : index
    %136 = memref.load %arg2[%c22] : memref<98xf32, #tpu.memory_space<smem>>
    %c0_89 = arith.constant 0 : index
    %c0_90 = arith.constant 0 : index
    %c3_91 = arith.constant 3 : index
    %c1_92 = arith.constant 1 : index
    %137 = vector.load %arg1[%c0_89, %c0_90, %c3_91, %c1_92] : memref<1x2x22x22xf32, #tpu.memory_space<vmem>>, vector<1x1x16x16xf32>
    %138 = vector.shape_cast %137 : vector<1x1x16x16xf32> to vector<16x16xf32>
    %139 = vector.broadcast %136 : f32 to vector<16x16xf32>
    %140 = arith.mulf %139, %138 : vector<16x16xf32>
    %141 = arith.addf %135, %140 : vector<16x16xf32>
    %c23 = arith.constant 23 : index
    %142 = memref.load %arg2[%c23] : memref<98xf32, #tpu.memory_space<smem>>
    %c0_93 = arith.constant 0 : index
    %c0_94 = arith.constant 0 : index
    %c3_95 = arith.constant 3 : index
    %c2_96 = arith.constant 2 : index
    %143 = vector.load %arg1[%c0_93, %c0_94, %c3_95, %c2_96] : memref<1x2x22x22xf32, #tpu.memory_space<vmem>>, vector<1x1x16x16xf32>
    %144 = vector.shape_cast %143 : vector<1x1x16x16xf32> to vector<16x16xf32>
    %145 = vector.broadcast %142 : f32 to vector<16x16xf32>
    %146 = arith.mulf %145, %144 : vector<16x16xf32>
    %147 = arith.addf %141, %146 : vector<16x16xf32>
    %c24 = arith.constant 24 : index
    %148 = memref.load %arg2[%c24] : memref<98xf32, #tpu.memory_space<smem>>
    %c0_97 = arith.constant 0 : index
    %c0_98 = arith.constant 0 : index
    %c3_99 = arith.constant 3 : index
    %c3_100 = arith.constant 3 : index
    %149 = vector.load %arg1[%c0_97, %c0_98, %c3_99, %c3_100] : memref<1x2x22x22xf32, #tpu.memory_space<vmem>>, vector<1x1x16x16xf32>
    %150 = vector.shape_cast %149 : vector<1x1x16x16xf32> to vector<16x16xf32>
    %151 = vector.broadcast %148 : f32 to vector<16x16xf32>
    %152 = arith.mulf %151, %150 : vector<16x16xf32>
    %153 = arith.addf %147, %152 : vector<16x16xf32>
    %c25 = arith.constant 25 : index
    %154 = memref.load %arg2[%c25] : memref<98xf32, #tpu.memory_space<smem>>
    %c0_101 = arith.constant 0 : index
    %c0_102 = arith.constant 0 : index
    %c3_103 = arith.constant 3 : index
    %c4_104 = arith.constant 4 : index
    %155 = vector.load %arg1[%c0_101, %c0_102, %c3_103, %c4_104] : memref<1x2x22x22xf32, #tpu.memory_space<vmem>>, vector<1x1x16x16xf32>
    %156 = vector.shape_cast %155 : vector<1x1x16x16xf32> to vector<16x16xf32>
    %157 = vector.broadcast %154 : f32 to vector<16x16xf32>
    %158 = arith.mulf %157, %156 : vector<16x16xf32>
    %159 = arith.addf %153, %158 : vector<16x16xf32>
    %c26 = arith.constant 26 : index
    %160 = memref.load %arg2[%c26] : memref<98xf32, #tpu.memory_space<smem>>
    %c0_105 = arith.constant 0 : index
    %c0_106 = arith.constant 0 : index
    %c3_107 = arith.constant 3 : index
    %c5_108 = arith.constant 5 : index
    %161 = vector.load %arg1[%c0_105, %c0_106, %c3_107, %c5_108] : memref<1x2x22x22xf32, #tpu.memory_space<vmem>>, vector<1x1x16x16xf32>
    %162 = vector.shape_cast %161 : vector<1x1x16x16xf32> to vector<16x16xf32>
    %163 = vector.broadcast %160 : f32 to vector<16x16xf32>
    %164 = arith.mulf %163, %162 : vector<16x16xf32>
    %165 = arith.addf %159, %164 : vector<16x16xf32>
    %c27 = arith.constant 27 : index
    %166 = memref.load %arg2[%c27] : memref<98xf32, #tpu.memory_space<smem>>
    %c0_109 = arith.constant 0 : index
    %c0_110 = arith.constant 0 : index
    %c3_111 = arith.constant 3 : index
    %c6_112 = arith.constant 6 : index
    %167 = vector.load %arg1[%c0_109, %c0_110, %c3_111, %c6_112] : memref<1x2x22x22xf32, #tpu.memory_space<vmem>>, vector<1x1x16x16xf32>
    %168 = vector.shape_cast %167 : vector<1x1x16x16xf32> to vector<16x16xf32>
    %169 = vector.broadcast %166 : f32 to vector<16x16xf32>
    %170 = arith.mulf %169, %168 : vector<16x16xf32>
    %171 = arith.addf %165, %170 : vector<16x16xf32>
    %c28 = arith.constant 28 : index
    %172 = memref.load %arg2[%c28] : memref<98xf32, #tpu.memory_space<smem>>
    %c0_113 = arith.constant 0 : index
    %c0_114 = arith.constant 0 : index
    %c4_115 = arith.constant 4 : index
    %c0_116 = arith.constant 0 : index
    %173 = vector.load %arg1[%c0_113, %c0_114, %c4_115, %c0_116] : memref<1x2x22x22xf32, #tpu.memory_space<vmem>>, vector<1x1x16x16xf32>
    %174 = vector.shape_cast %173 : vector<1x1x16x16xf32> to vector<16x16xf32>
    %175 = vector.broadcast %172 : f32 to vector<16x16xf32>
    %176 = arith.mulf %175, %174 : vector<16x16xf32>
    %177 = arith.addf %171, %176 : vector<16x16xf32>
    %c29 = arith.constant 29 : index
    %178 = memref.load %arg2[%c29] : memref<98xf32, #tpu.memory_space<smem>>
    %c0_117 = arith.constant 0 : index
    %c0_118 = arith.constant 0 : index
    %c4_119 = arith.constant 4 : index
    %c1_120 = arith.constant 1 : index
    %179 = vector.load %arg1[%c0_117, %c0_118, %c4_119, %c1_120] : memref<1x2x22x22xf32, #tpu.memory_space<vmem>>, vector<1x1x16x16xf32>
    %180 = vector.shape_cast %179 : vector<1x1x16x16xf32> to vector<16x16xf32>
    %181 = vector.broadcast %178 : f32 to vector<16x16xf32>
    %182 = arith.mulf %181, %180 : vector<16x16xf32>
    %183 = arith.addf %177, %182 : vector<16x16xf32>
    %c30 = arith.constant 30 : index
    %184 = memref.load %arg2[%c30] : memref<98xf32, #tpu.memory_space<smem>>
    %c0_121 = arith.constant 0 : index
    %c0_122 = arith.constant 0 : index
    %c4_123 = arith.constant 4 : index
    %c2_124 = arith.constant 2 : index
    %185 = vector.load %arg1[%c0_121, %c0_122, %c4_123, %c2_124] : memref<1x2x22x22xf32, #tpu.memory_space<vmem>>, vector<1x1x16x16xf32>
    %186 = vector.shape_cast %185 : vector<1x1x16x16xf32> to vector<16x16xf32>
    %187 = vector.broadcast %184 : f32 to vector<16x16xf32>
    %188 = arith.mulf %187, %186 : vector<16x16xf32>
    %189 = arith.addf %183, %188 : vector<16x16xf32>
    %c31 = arith.constant 31 : index
    %190 = memref.load %arg2[%c31] : memref<98xf32, #tpu.memory_space<smem>>
    %c0_125 = arith.constant 0 : index
    %c0_126 = arith.constant 0 : index
    %c4_127 = arith.constant 4 : index
    %c3_128 = arith.constant 3 : index
    %191 = vector.load %arg1[%c0_125, %c0_126, %c4_127, %c3_128] : memref<1x2x22x22xf32, #tpu.memory_space<vmem>>, vector<1x1x16x16xf32>
    %192 = vector.shape_cast %191 : vector<1x1x16x16xf32> to vector<16x16xf32>
    %193 = vector.broadcast %190 : f32 to vector<16x16xf32>
    %194 = arith.mulf %193, %192 : vector<16x16xf32>
    %195 = arith.addf %189, %194 : vector<16x16xf32>
    %c32 = arith.constant 32 : index
    %196 = memref.load %arg2[%c32] : memref<98xf32, #tpu.memory_space<smem>>
    %c0_129 = arith.constant 0 : index
    %c0_130 = arith.constant 0 : index
    %c4_131 = arith.constant 4 : index
    %c4_132 = arith.constant 4 : index
    %197 = vector.load %arg1[%c0_129, %c0_130, %c4_131, %c4_132] : memref<1x2x22x22xf32, #tpu.memory_space<vmem>>, vector<1x1x16x16xf32>
    %198 = vector.shape_cast %197 : vector<1x1x16x16xf32> to vector<16x16xf32>
    %199 = vector.broadcast %196 : f32 to vector<16x16xf32>
    %200 = arith.mulf %199, %198 : vector<16x16xf32>
    %201 = arith.addf %195, %200 : vector<16x16xf32>
    %c33 = arith.constant 33 : index
    %202 = memref.load %arg2[%c33] : memref<98xf32, #tpu.memory_space<smem>>
    %c0_133 = arith.constant 0 : index
    %c0_134 = arith.constant 0 : index
    %c4_135 = arith.constant 4 : index
    %c5_136 = arith.constant 5 : index
    %203 = vector.load %arg1[%c0_133, %c0_134, %c4_135, %c5_136] : memref<1x2x22x22xf32, #tpu.memory_space<vmem>>, vector<1x1x16x16xf32>
    %204 = vector.shape_cast %203 : vector<1x1x16x16xf32> to vector<16x16xf32>
    %205 = vector.broadcast %202 : f32 to vector<16x16xf32>
    %206 = arith.mulf %205, %204 : vector<16x16xf32>
    %207 = arith.addf %201, %206 : vector<16x16xf32>
    %c34 = arith.constant 34 : index
    %208 = memref.load %arg2[%c34] : memref<98xf32, #tpu.memory_space<smem>>
    %c0_137 = arith.constant 0 : index
    %c0_138 = arith.constant 0 : index
    %c4_139 = arith.constant 4 : index
    %c6_140 = arith.constant 6 : index
    %209 = vector.load %arg1[%c0_137, %c0_138, %c4_139, %c6_140] : memref<1x2x22x22xf32, #tpu.memory_space<vmem>>, vector<1x1x16x16xf32>
    %210 = vector.shape_cast %209 : vector<1x1x16x16xf32> to vector<16x16xf32>
    %211 = vector.broadcast %208 : f32 to vector<16x16xf32>
    %212 = arith.mulf %211, %210 : vector<16x16xf32>
    %213 = arith.addf %207, %212 : vector<16x16xf32>
    %c35 = arith.constant 35 : index
    %214 = memref.load %arg2[%c35] : memref<98xf32, #tpu.memory_space<smem>>
    %c0_141 = arith.constant 0 : index
    %c0_142 = arith.constant 0 : index
    %c5_143 = arith.constant 5 : index
    %c0_144 = arith.constant 0 : index
    %215 = vector.load %arg1[%c0_141, %c0_142, %c5_143, %c0_144] : memref<1x2x22x22xf32, #tpu.memory_space<vmem>>, vector<1x1x16x16xf32>
    %216 = vector.shape_cast %215 : vector<1x1x16x16xf32> to vector<16x16xf32>
    %217 = vector.broadcast %214 : f32 to vector<16x16xf32>
    %218 = arith.mulf %217, %216 : vector<16x16xf32>
    %219 = arith.addf %213, %218 : vector<16x16xf32>
    %c36 = arith.constant 36 : index
    %220 = memref.load %arg2[%c36] : memref<98xf32, #tpu.memory_space<smem>>
    %c0_145 = arith.constant 0 : index
    %c0_146 = arith.constant 0 : index
    %c5_147 = arith.constant 5 : index
    %c1_148 = arith.constant 1 : index
    %221 = vector.load %arg1[%c0_145, %c0_146, %c5_147, %c1_148] : memref<1x2x22x22xf32, #tpu.memory_space<vmem>>, vector<1x1x16x16xf32>
    %222 = vector.shape_cast %221 : vector<1x1x16x16xf32> to vector<16x16xf32>
    %223 = vector.broadcast %220 : f32 to vector<16x16xf32>
    %224 = arith.mulf %223, %222 : vector<16x16xf32>
    %225 = arith.addf %219, %224 : vector<16x16xf32>
    %c37 = arith.constant 37 : index
    %226 = memref.load %arg2[%c37] : memref<98xf32, #tpu.memory_space<smem>>
    %c0_149 = arith.constant 0 : index
    %c0_150 = arith.constant 0 : index
    %c5_151 = arith.constant 5 : index
    %c2_152 = arith.constant 2 : index
    %227 = vector.load %arg1[%c0_149, %c0_150, %c5_151, %c2_152] : memref<1x2x22x22xf32, #tpu.memory_space<vmem>>, vector<1x1x16x16xf32>
    %228 = vector.shape_cast %227 : vector<1x1x16x16xf32> to vector<16x16xf32>
    %229 = vector.broadcast %226 : f32 to vector<16x16xf32>
    %230 = arith.mulf %229, %228 : vector<16x16xf32>
    %231 = arith.addf %225, %230 : vector<16x16xf32>
    %c38 = arith.constant 38 : index
    %232 = memref.load %arg2[%c38] : memref<98xf32, #tpu.memory_space<smem>>
    %c0_153 = arith.constant 0 : index
    %c0_154 = arith.constant 0 : index
    %c5_155 = arith.constant 5 : index
    %c3_156 = arith.constant 3 : index
    %233 = vector.load %arg1[%c0_153, %c0_154, %c5_155, %c3_156] : memref<1x2x22x22xf32, #tpu.memory_space<vmem>>, vector<1x1x16x16xf32>
    %234 = vector.shape_cast %233 : vector<1x1x16x16xf32> to vector<16x16xf32>
    %235 = vector.broadcast %232 : f32 to vector<16x16xf32>
    %236 = arith.mulf %235, %234 : vector<16x16xf32>
    %237 = arith.addf %231, %236 : vector<16x16xf32>
    %c39 = arith.constant 39 : index
    %238 = memref.load %arg2[%c39] : memref<98xf32, #tpu.memory_space<smem>>
    %c0_157 = arith.constant 0 : index
    %c0_158 = arith.constant 0 : index
    %c5_159 = arith.constant 5 : index
    %c4_160 = arith.constant 4 : index
    %239 = vector.load %arg1[%c0_157, %c0_158, %c5_159, %c4_160] : memref<1x2x22x22xf32, #tpu.memory_space<vmem>>, vector<1x1x16x16xf32>
    %240 = vector.shape_cast %239 : vector<1x1x16x16xf32> to vector<16x16xf32>
    %241 = vector.broadcast %238 : f32 to vector<16x16xf32>
    %242 = arith.mulf %241, %240 : vector<16x16xf32>
    %243 = arith.addf %237, %242 : vector<16x16xf32>
    %c40 = arith.constant 40 : index
    %244 = memref.load %arg2[%c40] : memref<98xf32, #tpu.memory_space<smem>>
    %c0_161 = arith.constant 0 : index
    %c0_162 = arith.constant 0 : index
    %c5_163 = arith.constant 5 : index
    %c5_164 = arith.constant 5 : index
    %245 = vector.load %arg1[%c0_161, %c0_162, %c5_163, %c5_164] : memref<1x2x22x22xf32, #tpu.memory_space<vmem>>, vector<1x1x16x16xf32>
    %246 = vector.shape_cast %245 : vector<1x1x16x16xf32> to vector<16x16xf32>
    %247 = vector.broadcast %244 : f32 to vector<16x16xf32>
    %248 = arith.mulf %247, %246 : vector<16x16xf32>
    %249 = arith.addf %243, %248 : vector<16x16xf32>
    %c41 = arith.constant 41 : index
    %250 = memref.load %arg2[%c41] : memref<98xf32, #tpu.memory_space<smem>>
    %c0_165 = arith.constant 0 : index
    %c0_166 = arith.constant 0 : index
    %c5_167 = arith.constant 5 : index
    %c6_168 = arith.constant 6 : index
    %251 = vector.load %arg1[%c0_165, %c0_166, %c5_167, %c6_168] : memref<1x2x22x22xf32, #tpu.memory_space<vmem>>, vector<1x1x16x16xf32>
    %252 = vector.shape_cast %251 : vector<1x1x16x16xf32> to vector<16x16xf32>
    %253 = vector.broadcast %250 : f32 to vector<16x16xf32>
    %254 = arith.mulf %253, %252 : vector<16x16xf32>
    %255 = arith.addf %249, %254 : vector<16x16xf32>
    %c42 = arith.constant 42 : index
    %256 = memref.load %arg2[%c42] : memref<98xf32, #tpu.memory_space<smem>>
    %c0_169 = arith.constant 0 : index
    %c0_170 = arith.constant 0 : index
    %c6_171 = arith.constant 6 : index
    %c0_172 = arith.constant 0 : index
    %257 = vector.load %arg1[%c0_169, %c0_170, %c6_171, %c0_172] : memref<1x2x22x22xf32, #tpu.memory_space<vmem>>, vector<1x1x16x16xf32>
    %258 = vector.shape_cast %257 : vector<1x1x16x16xf32> to vector<16x16xf32>
    %259 = vector.broadcast %256 : f32 to vector<16x16xf32>
    %260 = arith.mulf %259, %258 : vector<16x16xf32>
    %261 = arith.addf %255, %260 : vector<16x16xf32>
    %c43 = arith.constant 43 : index
    %262 = memref.load %arg2[%c43] : memref<98xf32, #tpu.memory_space<smem>>
    %c0_173 = arith.constant 0 : index
    %c0_174 = arith.constant 0 : index
    %c6_175 = arith.constant 6 : index
    %c1_176 = arith.constant 1 : index
    %263 = vector.load %arg1[%c0_173, %c0_174, %c6_175, %c1_176] : memref<1x2x22x22xf32, #tpu.memory_space<vmem>>, vector<1x1x16x16xf32>
    %264 = vector.shape_cast %263 : vector<1x1x16x16xf32> to vector<16x16xf32>
    %265 = vector.broadcast %262 : f32 to vector<16x16xf32>
    %266 = arith.mulf %265, %264 : vector<16x16xf32>
    %267 = arith.addf %261, %266 : vector<16x16xf32>
    %c44 = arith.constant 44 : index
    %268 = memref.load %arg2[%c44] : memref<98xf32, #tpu.memory_space<smem>>
    %c0_177 = arith.constant 0 : index
    %c0_178 = arith.constant 0 : index
    %c6_179 = arith.constant 6 : index
    %c2_180 = arith.constant 2 : index
    %269 = vector.load %arg1[%c0_177, %c0_178, %c6_179, %c2_180] : memref<1x2x22x22xf32, #tpu.memory_space<vmem>>, vector<1x1x16x16xf32>
    %270 = vector.shape_cast %269 : vector<1x1x16x16xf32> to vector<16x16xf32>
    %271 = vector.broadcast %268 : f32 to vector<16x16xf32>
    %272 = arith.mulf %271, %270 : vector<16x16xf32>
    %273 = arith.addf %267, %272 : vector<16x16xf32>
    %c45 = arith.constant 45 : index
    %274 = memref.load %arg2[%c45] : memref<98xf32, #tpu.memory_space<smem>>
    %c0_181 = arith.constant 0 : index
    %c0_182 = arith.constant 0 : index
    %c6_183 = arith.constant 6 : index
    %c3_184 = arith.constant 3 : index
    %275 = vector.load %arg1[%c0_181, %c0_182, %c6_183, %c3_184] : memref<1x2x22x22xf32, #tpu.memory_space<vmem>>, vector<1x1x16x16xf32>
    %276 = vector.shape_cast %275 : vector<1x1x16x16xf32> to vector<16x16xf32>
    %277 = vector.broadcast %274 : f32 to vector<16x16xf32>
    %278 = arith.mulf %277, %276 : vector<16x16xf32>
    %279 = arith.addf %273, %278 : vector<16x16xf32>
    %c46 = arith.constant 46 : index
    %280 = memref.load %arg2[%c46] : memref<98xf32, #tpu.memory_space<smem>>
    %c0_185 = arith.constant 0 : index
    %c0_186 = arith.constant 0 : index
    %c6_187 = arith.constant 6 : index
    %c4_188 = arith.constant 4 : index
    %281 = vector.load %arg1[%c0_185, %c0_186, %c6_187, %c4_188] : memref<1x2x22x22xf32, #tpu.memory_space<vmem>>, vector<1x1x16x16xf32>
    %282 = vector.shape_cast %281 : vector<1x1x16x16xf32> to vector<16x16xf32>
    %283 = vector.broadcast %280 : f32 to vector<16x16xf32>
    %284 = arith.mulf %283, %282 : vector<16x16xf32>
    %285 = arith.addf %279, %284 : vector<16x16xf32>
    %c47 = arith.constant 47 : index
    %286 = memref.load %arg2[%c47] : memref<98xf32, #tpu.memory_space<smem>>
    %c0_189 = arith.constant 0 : index
    %c0_190 = arith.constant 0 : index
    %c6_191 = arith.constant 6 : index
    %c5_192 = arith.constant 5 : index
    %287 = vector.load %arg1[%c0_189, %c0_190, %c6_191, %c5_192] : memref<1x2x22x22xf32, #tpu.memory_space<vmem>>, vector<1x1x16x16xf32>
    %288 = vector.shape_cast %287 : vector<1x1x16x16xf32> to vector<16x16xf32>
    %289 = vector.broadcast %286 : f32 to vector<16x16xf32>
    %290 = arith.mulf %289, %288 : vector<16x16xf32>
    %291 = arith.addf %285, %290 : vector<16x16xf32>
    %c48 = arith.constant 48 : index
    %292 = memref.load %arg2[%c48] : memref<98xf32, #tpu.memory_space<smem>>
    %c0_193 = arith.constant 0 : index
    %c0_194 = arith.constant 0 : index
    %c6_195 = arith.constant 6 : index
    %c6_196 = arith.constant 6 : index
    %293 = vector.load %arg1[%c0_193, %c0_194, %c6_195, %c6_196] : memref<1x2x22x22xf32, #tpu.memory_space<vmem>>, vector<1x1x16x16xf32>
    %294 = vector.shape_cast %293 : vector<1x1x16x16xf32> to vector<16x16xf32>
    %295 = vector.broadcast %292 : f32 to vector<16x16xf32>
    %296 = arith.mulf %295, %294 : vector<16x16xf32>
    %297 = arith.addf %291, %296 : vector<16x16xf32>
    %c49 = arith.constant 49 : index
    %298 = memref.load %arg2[%c49] : memref<98xf32, #tpu.memory_space<smem>>
    %c0_197 = arith.constant 0 : index
    %c1_198 = arith.constant 1 : index
    %c0_199 = arith.constant 0 : index
    %c0_200 = arith.constant 0 : index
    %299 = vector.load %arg1[%c0_197, %c1_198, %c0_199, %c0_200] : memref<1x2x22x22xf32, #tpu.memory_space<vmem>>, vector<1x1x16x16xf32>
    %300 = vector.shape_cast %299 : vector<1x1x16x16xf32> to vector<16x16xf32>
    %301 = vector.broadcast %298 : f32 to vector<16x16xf32>
    %302 = arith.mulf %301, %300 : vector<16x16xf32>
    %303 = arith.addf %297, %302 : vector<16x16xf32>
    %c50 = arith.constant 50 : index
    %304 = memref.load %arg2[%c50] : memref<98xf32, #tpu.memory_space<smem>>
    %c0_201 = arith.constant 0 : index
    %c1_202 = arith.constant 1 : index
    %c0_203 = arith.constant 0 : index
    %c1_204 = arith.constant 1 : index
    %305 = vector.load %arg1[%c0_201, %c1_202, %c0_203, %c1_204] : memref<1x2x22x22xf32, #tpu.memory_space<vmem>>, vector<1x1x16x16xf32>
    %306 = vector.shape_cast %305 : vector<1x1x16x16xf32> to vector<16x16xf32>
    %307 = vector.broadcast %304 : f32 to vector<16x16xf32>
    %308 = arith.mulf %307, %306 : vector<16x16xf32>
    %309 = arith.addf %303, %308 : vector<16x16xf32>
    %c51 = arith.constant 51 : index
    %310 = memref.load %arg2[%c51] : memref<98xf32, #tpu.memory_space<smem>>
    %c0_205 = arith.constant 0 : index
    %c1_206 = arith.constant 1 : index
    %c0_207 = arith.constant 0 : index
    %c2_208 = arith.constant 2 : index
    %311 = vector.load %arg1[%c0_205, %c1_206, %c0_207, %c2_208] : memref<1x2x22x22xf32, #tpu.memory_space<vmem>>, vector<1x1x16x16xf32>
    %312 = vector.shape_cast %311 : vector<1x1x16x16xf32> to vector<16x16xf32>
    %313 = vector.broadcast %310 : f32 to vector<16x16xf32>
    %314 = arith.mulf %313, %312 : vector<16x16xf32>
    %315 = arith.addf %309, %314 : vector<16x16xf32>
    %c52 = arith.constant 52 : index
    %316 = memref.load %arg2[%c52] : memref<98xf32, #tpu.memory_space<smem>>
    %c0_209 = arith.constant 0 : index
    %c1_210 = arith.constant 1 : index
    %c0_211 = arith.constant 0 : index
    %c3_212 = arith.constant 3 : index
    %317 = vector.load %arg1[%c0_209, %c1_210, %c0_211, %c3_212] : memref<1x2x22x22xf32, #tpu.memory_space<vmem>>, vector<1x1x16x16xf32>
    %318 = vector.shape_cast %317 : vector<1x1x16x16xf32> to vector<16x16xf32>
    %319 = vector.broadcast %316 : f32 to vector<16x16xf32>
    %320 = arith.mulf %319, %318 : vector<16x16xf32>
    %321 = arith.addf %315, %320 : vector<16x16xf32>
    %c53 = arith.constant 53 : index
    %322 = memref.load %arg2[%c53] : memref<98xf32, #tpu.memory_space<smem>>
    %c0_213 = arith.constant 0 : index
    %c1_214 = arith.constant 1 : index
    %c0_215 = arith.constant 0 : index
    %c4_216 = arith.constant 4 : index
    %323 = vector.load %arg1[%c0_213, %c1_214, %c0_215, %c4_216] : memref<1x2x22x22xf32, #tpu.memory_space<vmem>>, vector<1x1x16x16xf32>
    %324 = vector.shape_cast %323 : vector<1x1x16x16xf32> to vector<16x16xf32>
    %325 = vector.broadcast %322 : f32 to vector<16x16xf32>
    %326 = arith.mulf %325, %324 : vector<16x16xf32>
    %327 = arith.addf %321, %326 : vector<16x16xf32>
    %c54 = arith.constant 54 : index
    %328 = memref.load %arg2[%c54] : memref<98xf32, #tpu.memory_space<smem>>
    %c0_217 = arith.constant 0 : index
    %c1_218 = arith.constant 1 : index
    %c0_219 = arith.constant 0 : index
    %c5_220 = arith.constant 5 : index
    %329 = vector.load %arg1[%c0_217, %c1_218, %c0_219, %c5_220] : memref<1x2x22x22xf32, #tpu.memory_space<vmem>>, vector<1x1x16x16xf32>
    %330 = vector.shape_cast %329 : vector<1x1x16x16xf32> to vector<16x16xf32>
    %331 = vector.broadcast %328 : f32 to vector<16x16xf32>
    %332 = arith.mulf %331, %330 : vector<16x16xf32>
    %333 = arith.addf %327, %332 : vector<16x16xf32>
    %c55 = arith.constant 55 : index
    %334 = memref.load %arg2[%c55] : memref<98xf32, #tpu.memory_space<smem>>
    %c0_221 = arith.constant 0 : index
    %c1_222 = arith.constant 1 : index
    %c0_223 = arith.constant 0 : index
    %c6_224 = arith.constant 6 : index
    %335 = vector.load %arg1[%c0_221, %c1_222, %c0_223, %c6_224] : memref<1x2x22x22xf32, #tpu.memory_space<vmem>>, vector<1x1x16x16xf32>
    %336 = vector.shape_cast %335 : vector<1x1x16x16xf32> to vector<16x16xf32>
    %337 = vector.broadcast %334 : f32 to vector<16x16xf32>
    %338 = arith.mulf %337, %336 : vector<16x16xf32>
    %339 = arith.addf %333, %338 : vector<16x16xf32>
    %c56 = arith.constant 56 : index
    %340 = memref.load %arg2[%c56] : memref<98xf32, #tpu.memory_space<smem>>
    %c0_225 = arith.constant 0 : index
    %c1_226 = arith.constant 1 : index
    %c1_227 = arith.constant 1 : index
    %c0_228 = arith.constant 0 : index
    %341 = vector.load %arg1[%c0_225, %c1_226, %c1_227, %c0_228] : memref<1x2x22x22xf32, #tpu.memory_space<vmem>>, vector<1x1x16x16xf32>
    %342 = vector.shape_cast %341 : vector<1x1x16x16xf32> to vector<16x16xf32>
    %343 = vector.broadcast %340 : f32 to vector<16x16xf32>
    %344 = arith.mulf %343, %342 : vector<16x16xf32>
    %345 = arith.addf %339, %344 : vector<16x16xf32>
    %c57 = arith.constant 57 : index
    %346 = memref.load %arg2[%c57] : memref<98xf32, #tpu.memory_space<smem>>
    %c0_229 = arith.constant 0 : index
    %c1_230 = arith.constant 1 : index
    %c1_231 = arith.constant 1 : index
    %c1_232 = arith.constant 1 : index
    %347 = vector.load %arg1[%c0_229, %c1_230, %c1_231, %c1_232] : memref<1x2x22x22xf32, #tpu.memory_space<vmem>>, vector<1x1x16x16xf32>
    %348 = vector.shape_cast %347 : vector<1x1x16x16xf32> to vector<16x16xf32>
    %349 = vector.broadcast %346 : f32 to vector<16x16xf32>
    %350 = arith.mulf %349, %348 : vector<16x16xf32>
    %351 = arith.addf %345, %350 : vector<16x16xf32>
    %c58 = arith.constant 58 : index
    %352 = memref.load %arg2[%c58] : memref<98xf32, #tpu.memory_space<smem>>
    %c0_233 = arith.constant 0 : index
    %c1_234 = arith.constant 1 : index
    %c1_235 = arith.constant 1 : index
    %c2_236 = arith.constant 2 : index
    %353 = vector.load %arg1[%c0_233, %c1_234, %c1_235, %c2_236] : memref<1x2x22x22xf32, #tpu.memory_space<vmem>>, vector<1x1x16x16xf32>
    %354 = vector.shape_cast %353 : vector<1x1x16x16xf32> to vector<16x16xf32>
    %355 = vector.broadcast %352 : f32 to vector<16x16xf32>
    %356 = arith.mulf %355, %354 : vector<16x16xf32>
    %357 = arith.addf %351, %356 : vector<16x16xf32>
    %c59 = arith.constant 59 : index
    %358 = memref.load %arg2[%c59] : memref<98xf32, #tpu.memory_space<smem>>
    %c0_237 = arith.constant 0 : index
    %c1_238 = arith.constant 1 : index
    %c1_239 = arith.constant 1 : index
    %c3_240 = arith.constant 3 : index
    %359 = vector.load %arg1[%c0_237, %c1_238, %c1_239, %c3_240] : memref<1x2x22x22xf32, #tpu.memory_space<vmem>>, vector<1x1x16x16xf32>
    %360 = vector.shape_cast %359 : vector<1x1x16x16xf32> to vector<16x16xf32>
    %361 = vector.broadcast %358 : f32 to vector<16x16xf32>
    %362 = arith.mulf %361, %360 : vector<16x16xf32>
    %363 = arith.addf %357, %362 : vector<16x16xf32>
    %c60 = arith.constant 60 : index
    %364 = memref.load %arg2[%c60] : memref<98xf32, #tpu.memory_space<smem>>
    %c0_241 = arith.constant 0 : index
    %c1_242 = arith.constant 1 : index
    %c1_243 = arith.constant 1 : index
    %c4_244 = arith.constant 4 : index
    %365 = vector.load %arg1[%c0_241, %c1_242, %c1_243, %c4_244] : memref<1x2x22x22xf32, #tpu.memory_space<vmem>>, vector<1x1x16x16xf32>
    %366 = vector.shape_cast %365 : vector<1x1x16x16xf32> to vector<16x16xf32>
    %367 = vector.broadcast %364 : f32 to vector<16x16xf32>
    %368 = arith.mulf %367, %366 : vector<16x16xf32>
    %369 = arith.addf %363, %368 : vector<16x16xf32>
    %c61 = arith.constant 61 : index
    %370 = memref.load %arg2[%c61] : memref<98xf32, #tpu.memory_space<smem>>
    %c0_245 = arith.constant 0 : index
    %c1_246 = arith.constant 1 : index
    %c1_247 = arith.constant 1 : index
    %c5_248 = arith.constant 5 : index
    %371 = vector.load %arg1[%c0_245, %c1_246, %c1_247, %c5_248] : memref<1x2x22x22xf32, #tpu.memory_space<vmem>>, vector<1x1x16x16xf32>
    %372 = vector.shape_cast %371 : vector<1x1x16x16xf32> to vector<16x16xf32>
    %373 = vector.broadcast %370 : f32 to vector<16x16xf32>
    %374 = arith.mulf %373, %372 : vector<16x16xf32>
    %375 = arith.addf %369, %374 : vector<16x16xf32>
    %c62 = arith.constant 62 : index
    %376 = memref.load %arg2[%c62] : memref<98xf32, #tpu.memory_space<smem>>
    %c0_249 = arith.constant 0 : index
    %c1_250 = arith.constant 1 : index
    %c1_251 = arith.constant 1 : index
    %c6_252 = arith.constant 6 : index
    %377 = vector.load %arg1[%c0_249, %c1_250, %c1_251, %c6_252] : memref<1x2x22x22xf32, #tpu.memory_space<vmem>>, vector<1x1x16x16xf32>
    %378 = vector.shape_cast %377 : vector<1x1x16x16xf32> to vector<16x16xf32>
    %379 = vector.broadcast %376 : f32 to vector<16x16xf32>
    %380 = arith.mulf %379, %378 : vector<16x16xf32>
    %381 = arith.addf %375, %380 : vector<16x16xf32>
    %c63 = arith.constant 63 : index
    %382 = memref.load %arg2[%c63] : memref<98xf32, #tpu.memory_space<smem>>
    %c0_253 = arith.constant 0 : index
    %c1_254 = arith.constant 1 : index
    %c2_255 = arith.constant 2 : index
    %c0_256 = arith.constant 0 : index
    %383 = vector.load %arg1[%c0_253, %c1_254, %c2_255, %c0_256] : memref<1x2x22x22xf32, #tpu.memory_space<vmem>>, vector<1x1x16x16xf32>
    %384 = vector.shape_cast %383 : vector<1x1x16x16xf32> to vector<16x16xf32>
    %385 = vector.broadcast %382 : f32 to vector<16x16xf32>
    %386 = arith.mulf %385, %384 : vector<16x16xf32>
    %387 = arith.addf %381, %386 : vector<16x16xf32>
    %c64 = arith.constant 64 : index
    %388 = memref.load %arg2[%c64] : memref<98xf32, #tpu.memory_space<smem>>
    %c0_257 = arith.constant 0 : index
    %c1_258 = arith.constant 1 : index
    %c2_259 = arith.constant 2 : index
    %c1_260 = arith.constant 1 : index
    %389 = vector.load %arg1[%c0_257, %c1_258, %c2_259, %c1_260] : memref<1x2x22x22xf32, #tpu.memory_space<vmem>>, vector<1x1x16x16xf32>
    %390 = vector.shape_cast %389 : vector<1x1x16x16xf32> to vector<16x16xf32>
    %391 = vector.broadcast %388 : f32 to vector<16x16xf32>
    %392 = arith.mulf %391, %390 : vector<16x16xf32>
    %393 = arith.addf %387, %392 : vector<16x16xf32>
    %c65 = arith.constant 65 : index
    %394 = memref.load %arg2[%c65] : memref<98xf32, #tpu.memory_space<smem>>
    %c0_261 = arith.constant 0 : index
    %c1_262 = arith.constant 1 : index
    %c2_263 = arith.constant 2 : index
    %c2_264 = arith.constant 2 : index
    %395 = vector.load %arg1[%c0_261, %c1_262, %c2_263, %c2_264] : memref<1x2x22x22xf32, #tpu.memory_space<vmem>>, vector<1x1x16x16xf32>
    %396 = vector.shape_cast %395 : vector<1x1x16x16xf32> to vector<16x16xf32>
    %397 = vector.broadcast %394 : f32 to vector<16x16xf32>
    %398 = arith.mulf %397, %396 : vector<16x16xf32>
    %399 = arith.addf %393, %398 : vector<16x16xf32>
    %c66 = arith.constant 66 : index
    %400 = memref.load %arg2[%c66] : memref<98xf32, #tpu.memory_space<smem>>
    %c0_265 = arith.constant 0 : index
    %c1_266 = arith.constant 1 : index
    %c2_267 = arith.constant 2 : index
    %c3_268 = arith.constant 3 : index
    %401 = vector.load %arg1[%c0_265, %c1_266, %c2_267, %c3_268] : memref<1x2x22x22xf32, #tpu.memory_space<vmem>>, vector<1x1x16x16xf32>
    %402 = vector.shape_cast %401 : vector<1x1x16x16xf32> to vector<16x16xf32>
    %403 = vector.broadcast %400 : f32 to vector<16x16xf32>
    %404 = arith.mulf %403, %402 : vector<16x16xf32>
    %405 = arith.addf %399, %404 : vector<16x16xf32>
    %c67 = arith.constant 67 : index
    %406 = memref.load %arg2[%c67] : memref<98xf32, #tpu.memory_space<smem>>
    %c0_269 = arith.constant 0 : index
    %c1_270 = arith.constant 1 : index
    %c2_271 = arith.constant 2 : index
    %c4_272 = arith.constant 4 : index
    %407 = vector.load %arg1[%c0_269, %c1_270, %c2_271, %c4_272] : memref<1x2x22x22xf32, #tpu.memory_space<vmem>>, vector<1x1x16x16xf32>
    %408 = vector.shape_cast %407 : vector<1x1x16x16xf32> to vector<16x16xf32>
    %409 = vector.broadcast %406 : f32 to vector<16x16xf32>
    %410 = arith.mulf %409, %408 : vector<16x16xf32>
    %411 = arith.addf %405, %410 : vector<16x16xf32>
    %c68 = arith.constant 68 : index
    %412 = memref.load %arg2[%c68] : memref<98xf32, #tpu.memory_space<smem>>
    %c0_273 = arith.constant 0 : index
    %c1_274 = arith.constant 1 : index
    %c2_275 = arith.constant 2 : index
    %c5_276 = arith.constant 5 : index
    %413 = vector.load %arg1[%c0_273, %c1_274, %c2_275, %c5_276] : memref<1x2x22x22xf32, #tpu.memory_space<vmem>>, vector<1x1x16x16xf32>
    %414 = vector.shape_cast %413 : vector<1x1x16x16xf32> to vector<16x16xf32>
    %415 = vector.broadcast %412 : f32 to vector<16x16xf32>
    %416 = arith.mulf %415, %414 : vector<16x16xf32>
    %417 = arith.addf %411, %416 : vector<16x16xf32>
    %c69 = arith.constant 69 : index
    %418 = memref.load %arg2[%c69] : memref<98xf32, #tpu.memory_space<smem>>
    %c0_277 = arith.constant 0 : index
    %c1_278 = arith.constant 1 : index
    %c2_279 = arith.constant 2 : index
    %c6_280 = arith.constant 6 : index
    %419 = vector.load %arg1[%c0_277, %c1_278, %c2_279, %c6_280] : memref<1x2x22x22xf32, #tpu.memory_space<vmem>>, vector<1x1x16x16xf32>
    %420 = vector.shape_cast %419 : vector<1x1x16x16xf32> to vector<16x16xf32>
    %421 = vector.broadcast %418 : f32 to vector<16x16xf32>
    %422 = arith.mulf %421, %420 : vector<16x16xf32>
    %423 = arith.addf %417, %422 : vector<16x16xf32>
    %c70 = arith.constant 70 : index
    %424 = memref.load %arg2[%c70] : memref<98xf32, #tpu.memory_space<smem>>
    %c0_281 = arith.constant 0 : index
    %c1_282 = arith.constant 1 : index
    %c3_283 = arith.constant 3 : index
    %c0_284 = arith.constant 0 : index
    %425 = vector.load %arg1[%c0_281, %c1_282, %c3_283, %c0_284] : memref<1x2x22x22xf32, #tpu.memory_space<vmem>>, vector<1x1x16x16xf32>
    %426 = vector.shape_cast %425 : vector<1x1x16x16xf32> to vector<16x16xf32>
    %427 = vector.broadcast %424 : f32 to vector<16x16xf32>
    %428 = arith.mulf %427, %426 : vector<16x16xf32>
    %429 = arith.addf %423, %428 : vector<16x16xf32>
    %c71 = arith.constant 71 : index
    %430 = memref.load %arg2[%c71] : memref<98xf32, #tpu.memory_space<smem>>
    %c0_285 = arith.constant 0 : index
    %c1_286 = arith.constant 1 : index
    %c3_287 = arith.constant 3 : index
    %c1_288 = arith.constant 1 : index
    %431 = vector.load %arg1[%c0_285, %c1_286, %c3_287, %c1_288] : memref<1x2x22x22xf32, #tpu.memory_space<vmem>>, vector<1x1x16x16xf32>
    %432 = vector.shape_cast %431 : vector<1x1x16x16xf32> to vector<16x16xf32>
    %433 = vector.broadcast %430 : f32 to vector<16x16xf32>
    %434 = arith.mulf %433, %432 : vector<16x16xf32>
    %435 = arith.addf %429, %434 : vector<16x16xf32>
    %c72 = arith.constant 72 : index
    %436 = memref.load %arg2[%c72] : memref<98xf32, #tpu.memory_space<smem>>
    %c0_289 = arith.constant 0 : index
    %c1_290 = arith.constant 1 : index
    %c3_291 = arith.constant 3 : index
    %c2_292 = arith.constant 2 : index
    %437 = vector.load %arg1[%c0_289, %c1_290, %c3_291, %c2_292] : memref<1x2x22x22xf32, #tpu.memory_space<vmem>>, vector<1x1x16x16xf32>
    %438 = vector.shape_cast %437 : vector<1x1x16x16xf32> to vector<16x16xf32>
    %439 = vector.broadcast %436 : f32 to vector<16x16xf32>
    %440 = arith.mulf %439, %438 : vector<16x16xf32>
    %441 = arith.addf %435, %440 : vector<16x16xf32>
    %c73 = arith.constant 73 : index
    %442 = memref.load %arg2[%c73] : memref<98xf32, #tpu.memory_space<smem>>
    %c0_293 = arith.constant 0 : index
    %c1_294 = arith.constant 1 : index
    %c3_295 = arith.constant 3 : index
    %c3_296 = arith.constant 3 : index
    %443 = vector.load %arg1[%c0_293, %c1_294, %c3_295, %c3_296] : memref<1x2x22x22xf32, #tpu.memory_space<vmem>>, vector<1x1x16x16xf32>
    %444 = vector.shape_cast %443 : vector<1x1x16x16xf32> to vector<16x16xf32>
    %445 = vector.broadcast %442 : f32 to vector<16x16xf32>
    %446 = arith.mulf %445, %444 : vector<16x16xf32>
    %447 = arith.addf %441, %446 : vector<16x16xf32>
    %c74 = arith.constant 74 : index
    %448 = memref.load %arg2[%c74] : memref<98xf32, #tpu.memory_space<smem>>
    %c0_297 = arith.constant 0 : index
    %c1_298 = arith.constant 1 : index
    %c3_299 = arith.constant 3 : index
    %c4_300 = arith.constant 4 : index
    %449 = vector.load %arg1[%c0_297, %c1_298, %c3_299, %c4_300] : memref<1x2x22x22xf32, #tpu.memory_space<vmem>>, vector<1x1x16x16xf32>
    %450 = vector.shape_cast %449 : vector<1x1x16x16xf32> to vector<16x16xf32>
    %451 = vector.broadcast %448 : f32 to vector<16x16xf32>
    %452 = arith.mulf %451, %450 : vector<16x16xf32>
    %453 = arith.addf %447, %452 : vector<16x16xf32>
    %c75 = arith.constant 75 : index
    %454 = memref.load %arg2[%c75] : memref<98xf32, #tpu.memory_space<smem>>
    %c0_301 = arith.constant 0 : index
    %c1_302 = arith.constant 1 : index
    %c3_303 = arith.constant 3 : index
    %c5_304 = arith.constant 5 : index
    %455 = vector.load %arg1[%c0_301, %c1_302, %c3_303, %c5_304] : memref<1x2x22x22xf32, #tpu.memory_space<vmem>>, vector<1x1x16x16xf32>
    %456 = vector.shape_cast %455 : vector<1x1x16x16xf32> to vector<16x16xf32>
    %457 = vector.broadcast %454 : f32 to vector<16x16xf32>
    %458 = arith.mulf %457, %456 : vector<16x16xf32>
    %459 = arith.addf %453, %458 : vector<16x16xf32>
    %c76 = arith.constant 76 : index
    %460 = memref.load %arg2[%c76] : memref<98xf32, #tpu.memory_space<smem>>
    %c0_305 = arith.constant 0 : index
    %c1_306 = arith.constant 1 : index
    %c3_307 = arith.constant 3 : index
    %c6_308 = arith.constant 6 : index
    %461 = vector.load %arg1[%c0_305, %c1_306, %c3_307, %c6_308] : memref<1x2x22x22xf32, #tpu.memory_space<vmem>>, vector<1x1x16x16xf32>
    %462 = vector.shape_cast %461 : vector<1x1x16x16xf32> to vector<16x16xf32>
    %463 = vector.broadcast %460 : f32 to vector<16x16xf32>
    %464 = arith.mulf %463, %462 : vector<16x16xf32>
    %465 = arith.addf %459, %464 : vector<16x16xf32>
    %c77 = arith.constant 77 : index
    %466 = memref.load %arg2[%c77] : memref<98xf32, #tpu.memory_space<smem>>
    %c0_309 = arith.constant 0 : index
    %c1_310 = arith.constant 1 : index
    %c4_311 = arith.constant 4 : index
    %c0_312 = arith.constant 0 : index
    %467 = vector.load %arg1[%c0_309, %c1_310, %c4_311, %c0_312] : memref<1x2x22x22xf32, #tpu.memory_space<vmem>>, vector<1x1x16x16xf32>
    %468 = vector.shape_cast %467 : vector<1x1x16x16xf32> to vector<16x16xf32>
    %469 = vector.broadcast %466 : f32 to vector<16x16xf32>
    %470 = arith.mulf %469, %468 : vector<16x16xf32>
    %471 = arith.addf %465, %470 : vector<16x16xf32>
    %c78 = arith.constant 78 : index
    %472 = memref.load %arg2[%c78] : memref<98xf32, #tpu.memory_space<smem>>
    %c0_313 = arith.constant 0 : index
    %c1_314 = arith.constant 1 : index
    %c4_315 = arith.constant 4 : index
    %c1_316 = arith.constant 1 : index
    %473 = vector.load %arg1[%c0_313, %c1_314, %c4_315, %c1_316] : memref<1x2x22x22xf32, #tpu.memory_space<vmem>>, vector<1x1x16x16xf32>
    %474 = vector.shape_cast %473 : vector<1x1x16x16xf32> to vector<16x16xf32>
    %475 = vector.broadcast %472 : f32 to vector<16x16xf32>
    %476 = arith.mulf %475, %474 : vector<16x16xf32>
    %477 = arith.addf %471, %476 : vector<16x16xf32>
    %c79 = arith.constant 79 : index
    %478 = memref.load %arg2[%c79] : memref<98xf32, #tpu.memory_space<smem>>
    %c0_317 = arith.constant 0 : index
    %c1_318 = arith.constant 1 : index
    %c4_319 = arith.constant 4 : index
    %c2_320 = arith.constant 2 : index
    %479 = vector.load %arg1[%c0_317, %c1_318, %c4_319, %c2_320] : memref<1x2x22x22xf32, #tpu.memory_space<vmem>>, vector<1x1x16x16xf32>
    %480 = vector.shape_cast %479 : vector<1x1x16x16xf32> to vector<16x16xf32>
    %481 = vector.broadcast %478 : f32 to vector<16x16xf32>
    %482 = arith.mulf %481, %480 : vector<16x16xf32>
    %483 = arith.addf %477, %482 : vector<16x16xf32>
    %c80 = arith.constant 80 : index
    %484 = memref.load %arg2[%c80] : memref<98xf32, #tpu.memory_space<smem>>
    %c0_321 = arith.constant 0 : index
    %c1_322 = arith.constant 1 : index
    %c4_323 = arith.constant 4 : index
    %c3_324 = arith.constant 3 : index
    %485 = vector.load %arg1[%c0_321, %c1_322, %c4_323, %c3_324] : memref<1x2x22x22xf32, #tpu.memory_space<vmem>>, vector<1x1x16x16xf32>
    %486 = vector.shape_cast %485 : vector<1x1x16x16xf32> to vector<16x16xf32>
    %487 = vector.broadcast %484 : f32 to vector<16x16xf32>
    %488 = arith.mulf %487, %486 : vector<16x16xf32>
    %489 = arith.addf %483, %488 : vector<16x16xf32>
    %c81 = arith.constant 81 : index
    %490 = memref.load %arg2[%c81] : memref<98xf32, #tpu.memory_space<smem>>
    %c0_325 = arith.constant 0 : index
    %c1_326 = arith.constant 1 : index
    %c4_327 = arith.constant 4 : index
    %c4_328 = arith.constant 4 : index
    %491 = vector.load %arg1[%c0_325, %c1_326, %c4_327, %c4_328] : memref<1x2x22x22xf32, #tpu.memory_space<vmem>>, vector<1x1x16x16xf32>
    %492 = vector.shape_cast %491 : vector<1x1x16x16xf32> to vector<16x16xf32>
    %493 = vector.broadcast %490 : f32 to vector<16x16xf32>
    %494 = arith.mulf %493, %492 : vector<16x16xf32>
    %495 = arith.addf %489, %494 : vector<16x16xf32>
    %c82 = arith.constant 82 : index
    %496 = memref.load %arg2[%c82] : memref<98xf32, #tpu.memory_space<smem>>
    %c0_329 = arith.constant 0 : index
    %c1_330 = arith.constant 1 : index
    %c4_331 = arith.constant 4 : index
    %c5_332 = arith.constant 5 : index
    %497 = vector.load %arg1[%c0_329, %c1_330, %c4_331, %c5_332] : memref<1x2x22x22xf32, #tpu.memory_space<vmem>>, vector<1x1x16x16xf32>
    %498 = vector.shape_cast %497 : vector<1x1x16x16xf32> to vector<16x16xf32>
    %499 = vector.broadcast %496 : f32 to vector<16x16xf32>
    %500 = arith.mulf %499, %498 : vector<16x16xf32>
    %501 = arith.addf %495, %500 : vector<16x16xf32>
    %c83 = arith.constant 83 : index
    %502 = memref.load %arg2[%c83] : memref<98xf32, #tpu.memory_space<smem>>
    %c0_333 = arith.constant 0 : index
    %c1_334 = arith.constant 1 : index
    %c4_335 = arith.constant 4 : index
    %c6_336 = arith.constant 6 : index
    %503 = vector.load %arg1[%c0_333, %c1_334, %c4_335, %c6_336] : memref<1x2x22x22xf32, #tpu.memory_space<vmem>>, vector<1x1x16x16xf32>
    %504 = vector.shape_cast %503 : vector<1x1x16x16xf32> to vector<16x16xf32>
    %505 = vector.broadcast %502 : f32 to vector<16x16xf32>
    %506 = arith.mulf %505, %504 : vector<16x16xf32>
    %507 = arith.addf %501, %506 : vector<16x16xf32>
    %c84 = arith.constant 84 : index
    %508 = memref.load %arg2[%c84] : memref<98xf32, #tpu.memory_space<smem>>
    %c0_337 = arith.constant 0 : index
    %c1_338 = arith.constant 1 : index
    %c5_339 = arith.constant 5 : index
    %c0_340 = arith.constant 0 : index
    %509 = vector.load %arg1[%c0_337, %c1_338, %c5_339, %c0_340] : memref<1x2x22x22xf32, #tpu.memory_space<vmem>>, vector<1x1x16x16xf32>
    %510 = vector.shape_cast %509 : vector<1x1x16x16xf32> to vector<16x16xf32>
    %511 = vector.broadcast %508 : f32 to vector<16x16xf32>
    %512 = arith.mulf %511, %510 : vector<16x16xf32>
    %513 = arith.addf %507, %512 : vector<16x16xf32>
    %c85 = arith.constant 85 : index
    %514 = memref.load %arg2[%c85] : memref<98xf32, #tpu.memory_space<smem>>
    %c0_341 = arith.constant 0 : index
    %c1_342 = arith.constant 1 : index
    %c5_343 = arith.constant 5 : index
    %c1_344 = arith.constant 1 : index
    %515 = vector.load %arg1[%c0_341, %c1_342, %c5_343, %c1_344] : memref<1x2x22x22xf32, #tpu.memory_space<vmem>>, vector<1x1x16x16xf32>
    %516 = vector.shape_cast %515 : vector<1x1x16x16xf32> to vector<16x16xf32>
    %517 = vector.broadcast %514 : f32 to vector<16x16xf32>
    %518 = arith.mulf %517, %516 : vector<16x16xf32>
    %519 = arith.addf %513, %518 : vector<16x16xf32>
    %c86 = arith.constant 86 : index
    %520 = memref.load %arg2[%c86] : memref<98xf32, #tpu.memory_space<smem>>
    %c0_345 = arith.constant 0 : index
    %c1_346 = arith.constant 1 : index
    %c5_347 = arith.constant 5 : index
    %c2_348 = arith.constant 2 : index
    %521 = vector.load %arg1[%c0_345, %c1_346, %c5_347, %c2_348] : memref<1x2x22x22xf32, #tpu.memory_space<vmem>>, vector<1x1x16x16xf32>
    %522 = vector.shape_cast %521 : vector<1x1x16x16xf32> to vector<16x16xf32>
    %523 = vector.broadcast %520 : f32 to vector<16x16xf32>
    %524 = arith.mulf %523, %522 : vector<16x16xf32>
    %525 = arith.addf %519, %524 : vector<16x16xf32>
    %c87 = arith.constant 87 : index
    %526 = memref.load %arg2[%c87] : memref<98xf32, #tpu.memory_space<smem>>
    %c0_349 = arith.constant 0 : index
    %c1_350 = arith.constant 1 : index
    %c5_351 = arith.constant 5 : index
    %c3_352 = arith.constant 3 : index
    %527 = vector.load %arg1[%c0_349, %c1_350, %c5_351, %c3_352] : memref<1x2x22x22xf32, #tpu.memory_space<vmem>>, vector<1x1x16x16xf32>
    %528 = vector.shape_cast %527 : vector<1x1x16x16xf32> to vector<16x16xf32>
    %529 = vector.broadcast %526 : f32 to vector<16x16xf32>
    %530 = arith.mulf %529, %528 : vector<16x16xf32>
    %531 = arith.addf %525, %530 : vector<16x16xf32>
    %c88 = arith.constant 88 : index
    %532 = memref.load %arg2[%c88] : memref<98xf32, #tpu.memory_space<smem>>
    %c0_353 = arith.constant 0 : index
    %c1_354 = arith.constant 1 : index
    %c5_355 = arith.constant 5 : index
    %c4_356 = arith.constant 4 : index
    %533 = vector.load %arg1[%c0_353, %c1_354, %c5_355, %c4_356] : memref<1x2x22x22xf32, #tpu.memory_space<vmem>>, vector<1x1x16x16xf32>
    %534 = vector.shape_cast %533 : vector<1x1x16x16xf32> to vector<16x16xf32>
    %535 = vector.broadcast %532 : f32 to vector<16x16xf32>
    %536 = arith.mulf %535, %534 : vector<16x16xf32>
    %537 = arith.addf %531, %536 : vector<16x16xf32>
    %c89 = arith.constant 89 : index
    %538 = memref.load %arg2[%c89] : memref<98xf32, #tpu.memory_space<smem>>
    %c0_357 = arith.constant 0 : index
    %c1_358 = arith.constant 1 : index
    %c5_359 = arith.constant 5 : index
    %c5_360 = arith.constant 5 : index
    %539 = vector.load %arg1[%c0_357, %c1_358, %c5_359, %c5_360] : memref<1x2x22x22xf32, #tpu.memory_space<vmem>>, vector<1x1x16x16xf32>
    %540 = vector.shape_cast %539 : vector<1x1x16x16xf32> to vector<16x16xf32>
    %541 = vector.broadcast %538 : f32 to vector<16x16xf32>
    %542 = arith.mulf %541, %540 : vector<16x16xf32>
    %543 = arith.addf %537, %542 : vector<16x16xf32>
    %c90 = arith.constant 90 : index
    %544 = memref.load %arg2[%c90] : memref<98xf32, #tpu.memory_space<smem>>
    %c0_361 = arith.constant 0 : index
    %c1_362 = arith.constant 1 : index
    %c5_363 = arith.constant 5 : index
    %c6_364 = arith.constant 6 : index
    %545 = vector.load %arg1[%c0_361, %c1_362, %c5_363, %c6_364] : memref<1x2x22x22xf32, #tpu.memory_space<vmem>>, vector<1x1x16x16xf32>
    %546 = vector.shape_cast %545 : vector<1x1x16x16xf32> to vector<16x16xf32>
    %547 = vector.broadcast %544 : f32 to vector<16x16xf32>
    %548 = arith.mulf %547, %546 : vector<16x16xf32>
    %549 = arith.addf %543, %548 : vector<16x16xf32>
    %c91 = arith.constant 91 : index
    %550 = memref.load %arg2[%c91] : memref<98xf32, #tpu.memory_space<smem>>
    %c0_365 = arith.constant 0 : index
    %c1_366 = arith.constant 1 : index
    %c6_367 = arith.constant 6 : index
    %c0_368 = arith.constant 0 : index
    %551 = vector.load %arg1[%c0_365, %c1_366, %c6_367, %c0_368] : memref<1x2x22x22xf32, #tpu.memory_space<vmem>>, vector<1x1x16x16xf32>
    %552 = vector.shape_cast %551 : vector<1x1x16x16xf32> to vector<16x16xf32>
    %553 = vector.broadcast %550 : f32 to vector<16x16xf32>
    %554 = arith.mulf %553, %552 : vector<16x16xf32>
    %555 = arith.addf %549, %554 : vector<16x16xf32>
    %c92 = arith.constant 92 : index
    %556 = memref.load %arg2[%c92] : memref<98xf32, #tpu.memory_space<smem>>
    %c0_369 = arith.constant 0 : index
    %c1_370 = arith.constant 1 : index
    %c6_371 = arith.constant 6 : index
    %c1_372 = arith.constant 1 : index
    %557 = vector.load %arg1[%c0_369, %c1_370, %c6_371, %c1_372] : memref<1x2x22x22xf32, #tpu.memory_space<vmem>>, vector<1x1x16x16xf32>
    %558 = vector.shape_cast %557 : vector<1x1x16x16xf32> to vector<16x16xf32>
    %559 = vector.broadcast %556 : f32 to vector<16x16xf32>
    %560 = arith.mulf %559, %558 : vector<16x16xf32>
    %561 = arith.addf %555, %560 : vector<16x16xf32>
    %c93 = arith.constant 93 : index
    %562 = memref.load %arg2[%c93] : memref<98xf32, #tpu.memory_space<smem>>
    %c0_373 = arith.constant 0 : index
    %c1_374 = arith.constant 1 : index
    %c6_375 = arith.constant 6 : index
    %c2_376 = arith.constant 2 : index
    %563 = vector.load %arg1[%c0_373, %c1_374, %c6_375, %c2_376] : memref<1x2x22x22xf32, #tpu.memory_space<vmem>>, vector<1x1x16x16xf32>
    %564 = vector.shape_cast %563 : vector<1x1x16x16xf32> to vector<16x16xf32>
    %565 = vector.broadcast %562 : f32 to vector<16x16xf32>
    %566 = arith.mulf %565, %564 : vector<16x16xf32>
    %567 = arith.addf %561, %566 : vector<16x16xf32>
    %c94 = arith.constant 94 : index
    %568 = memref.load %arg2[%c94] : memref<98xf32, #tpu.memory_space<smem>>
    %c0_377 = arith.constant 0 : index
    %c1_378 = arith.constant 1 : index
    %c6_379 = arith.constant 6 : index
    %c3_380 = arith.constant 3 : index
    %569 = vector.load %arg1[%c0_377, %c1_378, %c6_379, %c3_380] : memref<1x2x22x22xf32, #tpu.memory_space<vmem>>, vector<1x1x16x16xf32>
    %570 = vector.shape_cast %569 : vector<1x1x16x16xf32> to vector<16x16xf32>
    %571 = vector.broadcast %568 : f32 to vector<16x16xf32>
    %572 = arith.mulf %571, %570 : vector<16x16xf32>
    %573 = arith.addf %567, %572 : vector<16x16xf32>
    %c95 = arith.constant 95 : index
    %574 = memref.load %arg2[%c95] : memref<98xf32, #tpu.memory_space<smem>>
    %c0_381 = arith.constant 0 : index
    %c1_382 = arith.constant 1 : index
    %c6_383 = arith.constant 6 : index
    %c4_384 = arith.constant 4 : index
    %575 = vector.load %arg1[%c0_381, %c1_382, %c6_383, %c4_384] : memref<1x2x22x22xf32, #tpu.memory_space<vmem>>, vector<1x1x16x16xf32>
    %576 = vector.shape_cast %575 : vector<1x1x16x16xf32> to vector<16x16xf32>
    %577 = vector.broadcast %574 : f32 to vector<16x16xf32>
    %578 = arith.mulf %577, %576 : vector<16x16xf32>
    %579 = arith.addf %573, %578 : vector<16x16xf32>
    %c96 = arith.constant 96 : index
    %580 = memref.load %arg2[%c96] : memref<98xf32, #tpu.memory_space<smem>>
    %c0_385 = arith.constant 0 : index
    %c1_386 = arith.constant 1 : index
    %c6_387 = arith.constant 6 : index
    %c5_388 = arith.constant 5 : index
    %581 = vector.load %arg1[%c0_385, %c1_386, %c6_387, %c5_388] : memref<1x2x22x22xf32, #tpu.memory_space<vmem>>, vector<1x1x16x16xf32>
    %582 = vector.shape_cast %581 : vector<1x1x16x16xf32> to vector<16x16xf32>
    %583 = vector.broadcast %580 : f32 to vector<16x16xf32>
    %584 = arith.mulf %583, %582 : vector<16x16xf32>
    %585 = arith.addf %579, %584 : vector<16x16xf32>
    %c97 = arith.constant 97 : index
    %586 = memref.load %arg2[%c97] : memref<98xf32, #tpu.memory_space<smem>>
    %c0_389 = arith.constant 0 : index
    %c1_390 = arith.constant 1 : index
    %c6_391 = arith.constant 6 : index
    %c6_392 = arith.constant 6 : index
    %587 = vector.load %arg1[%c0_389, %c1_390, %c6_391, %c6_392] : memref<1x2x22x22xf32, #tpu.memory_space<vmem>>, vector<1x1x16x16xf32>
    %588 = vector.shape_cast %587 : vector<1x1x16x16xf32> to vector<16x16xf32>
    %589 = vector.broadcast %586 : f32 to vector<16x16xf32>
    %590 = arith.mulf %589, %588 : vector<16x16xf32>
    %591 = arith.addf %585, %590 : vector<16x16xf32>
    %592 = arith.negf %591 : vector<16x16xf32>
    %593 = math.exp %592 : vector<16x16xf32>
    %cst_393 = arith.constant 1.000000e+00 : f32
    %594 = vector.broadcast %cst_393 : f32 to vector<16x16xf32>
    %595 = arith.addf %594, %593 : vector<16x16xf32>
    %596 = arith.divf %594, %595 : vector<16x16xf32>
    %c0_394 = arith.constant 0 : index
    %c0_395 = arith.constant 0 : index
    %c0_396 = arith.constant 0 : index
    %c0_397 = arith.constant 0 : index
    %597 = vector.load %arg4[%c0_394, %c0_395, %c0_396, %c0_397] : memref<1x1x16x16xf32, #tpu.memory_space<vmem>>, vector<1x1x16x16xf32>
    %598 = vector.shape_cast %597 : vector<1x1x16x16xf32> to vector<16x16xf32>
    %599 = vector.shape_cast %596 : vector<16x16xf32> to vector<1x1x16x16xf32>
    tpu.vector_store %arg4[%c0_394, %c0_395, %c0_396, %c0_397], %599 {strides = array<i32>} : memref<1x1x16x16xf32, #tpu.memory_space<vmem>>, vector<1x1x16x16xf32>,
    return
  }
  func.func @transform_0(%arg0: i32) -> (i32, i32, i32, i32) {
    %c0_i32 = arith.constant 0 : i32
    %c0_i32_0 = arith.constant 0 : i32
    %c0_i32_1 = arith.constant 0 : i32
    %c0_i32_2 = arith.constant 0 : i32
    return %arg0, %c0_i32, %c0_i32_0, %c0_i32_1 : i32, i32, i32, i32
  }
  func.func @transform_1(%arg0: i32) -> i32 {
    %c0_i32 = arith.constant 0 : i32
    %c0_i32_0 = arith.constant 0 : i32
    return %c0_i32 : i32
  }
  func.func @transform_2(%arg0: i32) -> i32 {
    %c0_i32 = arith.constant 0 : i32
    %c0_i32_0 = arith.constant 0 : i32
    return %c0_i32 : i32
  }
  func.func @transform_3(%arg0: i32) -> (i32, i32, i32, i32) {
    %c0_i32 = arith.constant 0 : i32
    %c0_i32_0 = arith.constant 0 : i32
    %c0_i32_1 = arith.constant 0 : i32
    %c0_i32_2 = arith.constant 0 : i32
    return %arg0, %c0_i32, %c0_i32_0, %c0_i32_1 : i32, i32, i32, i32
  }
}

</mosaic_0001>

<bundles_post_ra>
// kernel: cbam_forward.5
= control target key start
LH: loop header
LB: loop body
LE: loop exit
PB: predicated region body
PF: predicated region fallthrough
CT: control target
= control target key end

     0   :  { %s412_s12 = smov 0   ;;  %s440_s0 = inlined_call_operand.vmem [shape: f32[2,32,256], index: 0, kind: input, shape index: {}]   ;;  %s441_s1 = inlined_call_operand.vmem [shape: f32[2,32,1], index: 1, kind: input, shape index: {}]   ;;  %s442_s2 = inlined_call_operand.vmem [shape: f32[2,1,256], index: 2, kind: input, shape index: {}]   ;;  %s443_s3 = inlined_call_operand.vmem [shape: f32[2,32,256], index: 3, kind: output, shape index: {}]  }
   0x1 LB: > { %s355_s13 = sadd.s32 4294967295, %s389_s12   ;;  %p359_p0 = scmp.ge.s32.totalorder %s389_s12, 1  ;;  %s389_s12 = sphi %s412_s12, %s13_s12  }
   0x2   : > { %p156_p1 = scmp.lt.s32.totalorder %s389_s12, 3 }
   0x4   : > { %p157_p2 = pnand %p359_p0, %p156_p1 }
   0x5   : > { %p189_p3 = scmp.lt.s32.totalorder (!%p157_p2), %s355_s13, 1  ;;  %v391_v0 = vmov (!%p157_p2), 0   ;;  %v250_v5 = vlaneseq (!%p157_p2) }
   0x6   : > { %160 = sbr.rel (%p157_p2) target bundleno = 155 (0x9b), region = 32  ;;  %382 = vset.pattern.permute.xlu1 (!%p157_p2), %v391_v0  ;;  %381 = vset.pattern.permute.xlu0 (!%p157_p2), %v391_v0 }
   0x7   : > { %v251_v6 = vshrl.u32 (!%p157_p2), %v250_v5, 7 }
   0x9   : > { %v252_v7 = vsub.s32 (!%p157_p2), 0, %v251_v6  ;;  %v256_v8 = vsub.s32 (!%p157_p2), 1, %v251_v6 }
   0xd   : > { %s445_s13 = smov (!%p189_p3, %s355_s13), 1 }
   0xe   : > { %s370_s14 = sshll.u32 %s445_s13, 5  ;;  %s364_s18 = sshll.u32 %s445_s13, 1 }
   0xf   : > { %s198_s17 = scalar_lea.vmem %s441_s1, %s370_s14  ;;  %s369_s19 = sshll.u32 %s445_s13, 6 }
  0x10   : > { %v218_v1 = vld [vmem:[%s198_s17 + $0x10] sm:$0xff]  ;;  %v216_v2 = vld [vmem:[%s198_s17] sm:$0xff]  ;;  %v219_v3 = vld [vmem:[%s198_s17 + $0x18] sm:$0xff]  ;;  %s202_s22 = scalar_lea.vmem %s442_s2, %s364_s18  ;;  %s193_s25 = scalar_lea.vmem %s440_s0, %s369_s19 }
  0x11   : > { %232 = vperm.xlu1 %382, %v218_v1   ;;  %222 = vperm.xlu0 %381, %v216_v2   ;;  %v217_v4 = vld [vmem:[%s198_s17 + $0x8] sm:$0xff]  ;;  %v248_v9 = vld [vmem:[%s202_s22] sm:$0x3]  ;;  %v214_v22 = vld [vmem:[%s193_s25 + $0x30] sm:$0xff]  ;;  %s207_s28 = scalar_lea.vmem %s443_s3, %s369_s19 }
  0x12   : > { %v212_v10 = vld [vmem:[%s193_s25 + $0x20] sm:$0xff]  ;;  %v213_v11 = vld [vmem:[%s193_s25 + $0x28] sm:$0xff]  ;;  %v253_v14 = vrot.slane %v248_v9, %v252_v7  ;;  %v257_v15 = vrot.slane %v248_v9, %v256_v8  ;;  %v215_v23 = vld [vmem:[%s193_s25 + $0x38] sm:$0xff] }
  0x13   : > { %v208_v12 = vld [vmem:[%s193_s25] sm:$0xff]  ;;  %v209_v13 = vld [vmem:[%s193_s25 + $0x8] sm:$0xff]  ;;  %v210_v24 = vld [vmem:[%s193_s25 + $0x10] sm:$0xff] }
  0x14   : > { %v211_v25 = vld [vmem:[%s193_s25 + $0x18] sm:$0xff] }
  0x15   : > { %237 = vperm.xlu1 %382, %v219_v3   ;;  %227 = vperm.xlu0 %381, %v217_v4  }
  0x90   : > { %v233_v16 = vpop.permute.xlu1 %232  ;;  %v223_v17 = vpop.permute.xlu0 %222 }
  0x91   : > { %v244_v18 = vmul.f32 %v233_v16, %v212_v10  ;;  %v245_v19 = vmul.f32 %v233_v16, %v213_v11  ;;  %v240_v20 = vmul.f32 %v223_v17, %v208_v12  ;;  %v241_v21 = vmul.f32 %v223_v17, %v209_v13 }
  0x93   : > { %v264_v26 = vmul.f32 %v253_v14, %v244_v18  ;;  %v265_v27 = vmul.f32 %v257_v15, %v245_v19  ;;  %v260_v28 = vmul.f32 %v253_v14, %v240_v20  ;;  %v261_v29 = vmul.f32 %v257_v15, %v241_v21 }
  0x94   : > { %v238_v30 = vpop.permute.xlu1 %237  ;;  %v228_v31 = vpop.permute.xlu0 %227 }
  0x95   : > { %272 = vst [vmem:[%s207_s28 + $0x20] sm:$0xff] %v264_v26  ;;  %273 = vst [vmem:[%s207_s28 + $0x28] sm:$0xff] %v265_v27  ;;  %v246_v32 = vmul.f32 %v238_v30, %v214_v22  ;;  %v247_v33 = vmul.f32 %v238_v30, %v215_v23  ;;  %v242_v34 = vmul.f32 %v228_v31, %v210_v24 }
  0x96   : > { %268 = vst [vmem:[%s207_s28] sm:$0xff] %v260_v28  ;;  %269 = vst [vmem:[%s207_s28 + $0x8] sm:$0xff] %v261_v29  ;;  %v243_v35 = vmul.f32 %v228_v31, %v211_v25 }
  0x97   : > { %v266_v36 = vmul.f32 %v253_v14, %v246_v32  ;;  %v267_v37 = vmul.f32 %v257_v15, %v247_v33  ;;  %v262_v38 = vmul.f32 %v253_v14, %v242_v34 }
  0x98   : > { %v263_v39 = vmul.f32 %v257_v15, %v243_v35 }
  0x99   : > { %274 = vst [vmem:[%s207_s28 + $0x30] sm:$0xff] %v266_v36  ;;  %275 = vst [vmem:[%s207_s28 + $0x38] sm:$0xff] %v267_v37 }
  0x9a   : > { %270 = vst [vmem:[%s207_s28 + $0x10] sm:$0xff] %v262_v38  ;;  %271 = vst [vmem:[%s207_s28 + $0x18] sm:$0xff] %v263_v39 }
  0x9b PF: > { %s13_s12 = sadd.s32 1, %s389_s12  }
  0x9c   : > { %p10_p4 = scmp.ge.s32.totalorder %s13_s12, 4  }
  0x9e   :  { %12 = sbr.rel (!%p10_p4) target bundleno = 1 (0x1), region = 68 }

// kernel: cbam_forward.3
= control target key start
LH: loop header
LB: loop body
LE: loop exit
PB: predicated region body
PF: predicated region fallthrough
CT: control target
= control target key end

     0   :  { %s1139_s24 = smov 0   ;;  %s1255_s0 = inlined_call_operand.vmem [shape: f32[2,32,256], index: 0, kind: input, shape index: {}]   ;;  %s1256_s1 = inlined_call_operand.vmem [shape: f32[2,32], index: 1, kind: input, shape index: {}]   ;;  %s1257_s2 = inlined_call_operand.vmem [shape: f32[2,1], index: 2, kind: input, shape index: {}]   ;;  %s1258_s3 = inlined_call_operand.vmem [shape: f32[32,2], index: 3, kind: input, shape index: {}]   ;;  %s1259_s4 = inlined_call_operand.vmem [shape: f32[32,1], index: 4, kind: input, shape index: {}]   ;;  %s1260_s5 = inlined_call_operand.vmem [shape: f32[2,32,1], index: 5, kind: output, shape index: {0}]   ;;  %s1261_s6 = inlined_call_operand.vmem [shape: f32[2,1,256], index: 6, kind: output, shape index: {1}]   ;;  %s1262_s7 = inlined_call_operand.vmem [shape: f32[2,1,256], index: 7, kind: output, shape index: {2}]  }
   0x1 LB: > { %s940_s25 = sadd.s32 4294967295, %s1092_s24   ;;  %p944_p0 = scmp.ge.s32.totalorder %s1092_s24, 1  ;;  %s1092_s24 = sphi %s1139_s24, %s18_s24  }
   0x2   : > { %p242_p1 = scmp.lt.s32.totalorder %s1092_s24, 3 }
   0x4   : > { %p243_p2 = pnand %p944_p0, %p242_p1 }
   0x5   : > { %p282_p3 = scmp.lt.s32.totalorder (!%p243_p2), %s940_s25, 1  ;;  %v1094_v12 = vmov (!%p243_p2), 0.0|0.0   ;;  %vm1095_vm0 = vmmov (!%p243_p2), 0   ;;  %v1096_v13 = vmov (!%p243_p2), 0.0   ;;  %v336_v28 = vld [vmem:[%s1256_s1] sm:$0x3] (!%p243_p2) }
   0x6   : > { %246 = sbr.rel (%p243_p2) target bundleno = 1022 (0x3fe), region = 40  ;;  %1029 = vmatprep.subr.bf16.mxu0 (!%p243_p2), %v1094_v12  ;;  %999 = vmatprep.mubr.msk.f32.mxu0 (!%p243_p2), %vm1095_vm0, %v1096_v13  ;;  %vm346_vm1 = vcmask (!%p243_p2), 261120   ;;  %v338_v29 = vld [vmem:[%s1258_s3] sm:$0xff] (!%p243_p2)  ;;  %vm421_vm2 = vcmask (!%p243_p2), 15360   ;;  %vm434_vm3 = vcmask (!%p243_p2), 1041408   ;;  %v339_v38 = vld [vmem:[%s1258_s3 + $0x8] sm:$0xff] (!%p243_p2) }
   0x7   : > { %1004 = vmatprep.mubr.msk.f32.mxu1 (!%p243_p2), %vm421_vm2, %v338_v29  ;;  %v337_v30 = vld [vmem:[%s1257_s2] sm:$0x3] (!%p243_p2)  ;;  %v340_v41 = vld [vmem:[%s1258_s3 + $0x10] sm:$0xff] (!%p243_p2)  ;;  %v341_v43 = vld [vmem:[%s1258_s3 + $0x18] sm:$0xff] (!%p243_p2)  ;;  %v1097_v50 = vmov (!%p243_p2), 0   ;;  %vm710_vm4 = vcmask (!%p243_p2), 7168  }
   0x8   : > { %1069 = vset.pattern.permute.xlu1 (!%p243_p2), %v1097_v50  ;;  %1068 = vset.pattern.permute.xlu0 (!%p243_p2), %v1097_v50  ;;  %v343_v51 = vld [vmem:[%s1259_s4 + $0x8] sm:$0xff] (!%p243_p2)  ;;  %v342_v52 = vld [vmem:[%s1259_s4] sm:$0xff] (!%p243_p2)  ;;  %v345_v53 = vld [vmem:[%s1259_s4 + $0x18] sm:$0xff] (!%p243_p2) }
   0x9   : > { %v1043_v54 = vadd.f32 (!%p243_p2), %v343_v51, %v343_v51  ;;  %v344_v55 = vld [vmem:[%s1259_s4 + $0x10] sm:$0xff] (!%p243_p2)  ;;  %v1049_v57 = vadd.f32 (!%p243_p2), %v345_v53, %v345_v53  ;;  %v1098_v53 = vmov (!%p243_p2), 1966171168  }
   0xa   : > { %v1051_v58 = vadd.f32 (!%p243_p2), %v344_v55, %v344_v55  ;;  %v767_v55 = vlaneseq (!%p243_p2) }
   0xc   : > { %vm781_vm5 = vcmp.lt.s32.totalorder (!%p243_p2), %v767_v55, 256 }
   0xd   : > { %s1264_s25 = smov (!%p282_p3, %s940_s25), 1 }
   0xe   : > { %s969_s26 = sshll.u32 %s1264_s25, 6  ;;  %s949_s10 = sshll.u32 %s1264_s25, 1 }
   0xf   : > { %s286_s29 = scalar_lea.vmem %s1255_s0, %s969_s26  ;;  %s295_s13 = scalar_lea.vmem %s1261_s6, %s949_s10 }
  0x10   : > { %v1153_v0 = vld [vmem:[%s286_s29 + $0x20] sm:$0xff]  ;;  %v1155_v1 = vld [vmem:[%s286_s29 + $0x28] sm:$0xff]  ;;  %v1163_v5 = vld [vmem:[%s286_s29 + $0x30] sm:$0xff]  ;;  %s299_s16 = scalar_lea.vmem %s1262_s7, %s949_s10 }
  0x11   : > { %v1157_v2 = vld [vmem:[%s286_s29] sm:$0xff]  ;;  %v314_v3 = vadd.f32 %v1155_v1, %v1153_v0  ;;  %v1161_v4 = vld [vmem:[%s286_s29 + $0x8] sm:$0xff]  ;;  %v1165_v6 = vld [vmem:[%s286_s29 + $0x38] sm:$0xff]  ;;  %v330_v17 = vmax.f32 %v1153_v0, %v1155_v1 }
  0x12   : > { %v308_v7 = vadd.f32 %v1161_v4, %v1157_v2  ;;  %v1169_v8 = vld [vmem:[%s286_s29 + $0x10] sm:$0xff]  ;;  %v1171_v9 = vld [vmem:[%s286_s29 + $0x18] sm:$0xff]  ;;  %v317_v10 = vadd.f32 %v1165_v6, %v1163_v5  ;;  %v324_v15 = vmax.f32 %v1157_v2, %v1161_v4  ;;  %v333_v16 = vmax.f32 %v1163_v5, %v1165_v6  ;;  %s970_s29 = sshll.u32 %s1264_s25, 5 }
  0x13   : > { %315 = vadd.xlane.f32.xlu1 %v314_v3  ;;  %v311_v11 = vadd.f32 %v1171_v9, %v1169_v8  ;;  %v327_v14 = vmax.f32 %v1169_v8, %v1171_v9  ;;  %s291_s9 = scalar_lea.vmem %s1260_s5, %s970_s29 }
  0x14   : > { %309 = vadd.xlane.f32.xlu0 %v308_v7 }
  0x17   : > { %318 = vadd.xlane.f32.xlu1 %v317_v10 }
  0x18   : > { %312 = vadd.xlane.f32.xlu0 %v311_v11 }
  0x1b   : > { %328 = vmax.xlane.f32.xlu1 %v327_v14 }
  0x1c   : > { %325 = vmax.xlane.f32.xlu0 %v324_v15 }
  0x1f   : > { %334 = vmax.xlane.f32.xlu1 %v333_v16 }
  0x20   : > { %331 = vmax.xlane.f32.xlu0 %v330_v17 }
  0xa0   : > { %v316_v18 = vpop.xlane.xlu1 %315 }
  0xa1   : > { %v310_v19 = vpop.xlane.xlu0 %309  ;;  %v322_v24 = vmul.f32 0.00390625, %v316_v18 }
  0xa2   : > { %v320_v22 = vmul.f32 0.00390625, %v310_v19 }
  0xa4   : > { %v319_v20 = vpop.xlane.xlu1 %318 }
  0xa5   : > { %v313_v21 = vpop.xlane.xlu0 %312  ;;  %v323_v25 = vmul.f32 0.00390625, %v319_v20 }
  0xa6   : > { %v321_v23 = vmul.f32 0.00390625, %v313_v21 }
  0xa7   : > { %v1033_v27 = vpack.c.bf16 %v323_v25, %v322_v24 }
  0xa8   : > { %v1030_v26 = vpack.c.bf16 %v321_v23, %v320_v22  ;;  %v329_v31 = vpop.xlane.xlu1 %328 }
  0xa9   : > { %v326_v32 = vpop.xlane.xlu0 %325 }
  0xaa   : > { %1031 = vmatpush3.bf16.msra.mxu0 %v1030_v26  ;;  %v1036_v37 = vpack.c.bf16 %v329_v31, %v326_v32 }
  0xab   : > { %1032 = vmatprep.subr.bf16.mxu0 %v1094_v12 }
  0xac   : > { %v335_v39 = vpop.xlane.xlu1 %334 }
  0xad   : > { %v332_v40 = vpop.xlane.xlu0 %331 }
  0xae   : > { %1034 = vmatpush3.bf16.msra.mxu0 %v1033_v27  ;;  %v1039_v42 = vpack.c.bf16 %v335_v39, %v332_v40 }
  0xb1   : > { %1000 = vmatmul.mubr.msk.f32.vlgmr.msra.gmra.mrb[0].mxu0 %vm346_vm1, %v336_v28 }
  0xb2   : > { %1023 = vmatprep.mubr.msk.f32.mxu0 %vm421_vm2, %v338_v29 }
 0x184   : > { %v416_v33 = vpop.f32.mrb[0].mxu0 }
 0x185   : > { %v417_v34 = vadd.f32 %v416_v33, %v337_v30  ;;  %v1001_v35 = vpop.f32.mrb[1].mxu0 }
 0x187   : > { %v420_v36 = vmax.f32 %v417_v34, 0.0 }
 0x189   : > { %1002 = vmatprep.subr.msk.mxu1 %vm434_vm3, %v420_v36 }
 0x18a   : > { %1003 = vmatpush3.msk.msra.mxu1 %vm434_vm3, %v420_v36 }
 0x18b   : > { %1005 = vmatmul.mubr.msk.f32.vlgmr.msra.gmra.mrb[0].mxu1 %vm421_vm2, %v339_v38  ;;  %1035 = vmatprep.subr.bf16.mxu1 %v1094_v12 }
 0x18c   : > { %1037 = vmatpush3.bf16.msra.mxu1 %v1036_v37  ;;  %1007 = vmatprep.mubr.msk.f32.mxu1 %vm421_vm2, %v340_v41 }
 0x18d   : > { %1038 = vmatprep.subr.bf16.mxu1 %v1094_v12 }
 0x18f   : > { %1008 = vmatmul.mubr.msk.f32.gmra.mrb[2].mxu1 %vm421_vm2, %v341_v43 }
 0x190   : > { %1040 = vmatpush3.bf16.msra.mxu1 %v1039_v42  ;;  %1018 = vmatprep.mubr.msk.f32.mxu1 %vm1095_vm0, %v1096_v13 }
 0x193   : > { %1019 = vmatmul.mubr.msk.f32.vlgmr.msra.gmra.mrb[4].mxu1 %vm346_vm1, %v336_v28 }
 0x194   : > { %1026 = vmatprep.mubr.msk.f32.mxu1 %vm421_vm2, %v340_v41 }
 0x25e   : > { %v1006_v44 = vpop.f32.mrb[0].mxu1 }
 0x25f   : > { %v504_v45 = vpop.f32.mrb[1].mxu1  ;;  %v1044_v59 = vadd.f32 %v1043_v54, %v1006_v44  ;;  %v765_v54 = vunpack.c.l.s4 %v1098_v53 }
 0x260   : > { %v505_v56 = vadd.f32 %v504_v45, %v342_v52 }
 0x262   : > { %v1047_v62 = vadd.f32 %v505_v56, %v342_v52 }
 0x266   : > { %v589_v46 = vpop.f32.mrb[4].mxu1 }
 0x267   : > { %v590_v47 = vadd.f32 %v589_v46, %v337_v30  ;;  %v1020_v48 = vpop.f32.mrb[5].mxu1 }
 0x269   : > { %v593_v49 = vmax.f32 %v590_v47, 0.0 }
 0x26b   : > { %1021 = vmatprep.subr.msk.mxu0 %vm434_vm3, %v593_v49  ;;  %1041 = vmatprep.subr.msk.mxu1 %vm434_vm3, %v593_v49 }
 0x26c   : > { %1022 = vmatpush3.msk.msra.mxu0 %vm434_vm3, %v593_v49  ;;  %1042 = vmatpush3.msk.msra.mxu1 %vm434_vm3, %v593_v49 }
 0x26d   : > { %1024 = vmatmul.mubr.msk.f32.vlgmr.msra.gmra.mrb[2].mxu0 %vm421_vm2, %v339_v38  ;;  %1027 = vmatmul.mubr.msk.f32.vlgmr.msra.gmra.mrb[2].mxu1 %vm421_vm2, %v341_v43 }
 0x340   : > { %v1025_v60 = vpop.f32.mrb[2].mxu0  ;;  %v1028_v61 = vpop.f32.mrb[2].mxu1 }
 0x341   : > { %v1045_v63 = vadd.f32 %v1044_v59, %v1025_v60  ;;  %v1050_v3 = vadd.f32 %v1049_v57, %v1028_v61  ;;  %v663_v7 = vpop.f32.mrb[3].mxu0  ;;  %v673_v10 = vpop.f32.mrb[3].mxu1 }
 0x342   : > { %v1048_v11 = vadd.f32 %v1047_v62, %v663_v7  ;;  %v1052_v12 = vadd.f32 %v1051_v58, %v673_v10  ;;  %v766_v62 = vunpack.c.0.s8 %v765_v54 }
 0x343   : > { %v964_v13 = vmul.f32 -1.442695, %v1045_v63  ;;  %v966_v14 = vmul.f32 -1.442695, %v1050_v3  ;;  %v768_v63 = vshrl.u32 %v767_v55, 7 }
 0x344   : > { %v963_v15 = vmul.f32 -1.442695, %v1048_v11  ;;  %v965_v16 = vmul.f32 -1.442695, %v1052_v12 }
 0x345   : > { %1070 = vpow2.f32 %v964_v13 }
 0x346   : > { %1072 = vpow2.f32 %v966_v14 }
 0x347   : > { %1074 = vpow2.f32 %v963_v15 }
 0x348   : > { %1076 = vpow2.f32 %v965_v16  ;;  %v769_v16 = vsub.s32 %v766_v62, %v768_v63 }
 0x34f   : > { %v1071_v17 = vpop.eup %1070 }
 0x350   : > { %v1073_v18 = vpop.eup %1072  ;;  %v699_v19 = vadd.f32 1.0, %v1071_v17 }
 0x351   : > { %v1075_v20 = vpop.eup %1074  ;;  %v701_v21 = vadd.f32 1.0, %v1073_v18 }
 0x352   : > { %v1077_v22 = vpop.eup %1076  ;;  %1078 = vrcp.f32 %v699_v19  ;;  %v698_v23 = vadd.f32 1.0, %v1075_v20 }
 0x353   : > { %1080 = vrcp.f32 %v701_v21  ;;  %v700_v24 = vadd.f32 1.0, %v1077_v22 }
 0x354   : > { %1082 = vrcp.f32 %v698_v23 }
 0x355   : > { %1084 = vrcp.f32 %v700_v24 }
 0x35c   : > { %v1079_v25 = vpop.eup %1078 }
 0x35d   : > { %v1081_v26 = vpop.eup %1080  ;;  %712 = vst.msk [vmem:[%s291_s9 + $0x8] sm:$0xff] %vm710_vm4, %v1079_v25  ;;  %722 = vperm.xlu1 %1069, %v1079_v25  }
 0x35e   : > { %v1083_v27 = vpop.eup %1082  ;;  %714 = vst.msk [vmem:[%s291_s9 + $0x18] sm:$0xff] %vm710_vm4, %v1081_v26 }
 0x35f   : > { %v1085_v28 = vpop.eup %1084  ;;  %711 = vst.msk [vmem:[%s291_s9] sm:$0xff] %vm710_vm4, %v1083_v27  ;;  %717 = vperm.xlu0 %1068, %v1083_v27  }
 0x360   : > { %713 = vst.msk [vmem:[%s291_s9 + $0x10] sm:$0xff] %vm710_vm4, %v1085_v28 }
 0x361   : > { %727 = vperm.xlu1 %1069, %v1085_v28  }
 0x365   : > { %732 = vperm.xlu1 %1069, %v1081_v26  }
 0x3dc   : > { %v723_v29 = vpop.permute.xlu1 %722 }
 0x3dd   : > { %v737_v30 = vmul.f32 %v723_v29, %v1169_v8  ;;  %v738_v31 = vmul.f32 %v723_v29, %v1171_v9 }
 0x3de   : > { %v718_v32 = vpop.permute.xlu0 %717 }
 0x3df   : > { %v735_v33 = vmul.f32 %v718_v32, %v1157_v2  ;;  %v736_v34 = vmul.f32 %v718_v32, %v1161_v4 }
 0x3e0   : > { %v728_v35 = vpop.permute.xlu1 %727 }
 0x3e1   : > { %v784_v36 = vadd.f32 %v737_v30, %v735_v33  ;;  %v793_v37 = vadd.f32 %v738_v31, %v736_v34  ;;  %v739_v38 = vmul.f32 %v728_v35, %v1153_v0  ;;  %v740_v39 = vmul.f32 %v728_v35, %v1155_v1 }
 0x3e3   : > { %v785_v41 = vadd.f32 %v784_v36, %v739_v38  ;;  %v794_v42 = vadd.f32 %v793_v37, %v740_v39  ;;  %v743_v9 = vmax.f32 %v735_v33, %v739_v38  ;;  %v752_v44 = vmax.f32 %v736_v34, %v740_v39 }
 0x3e4   : > { %v733_v40 = vpop.permute.xlu1 %732 }
 0x3e5   : > { %v741_v43 = vmul.f32 %v733_v40, %v1163_v5  ;;  %v742_v8 = vmul.f32 %v733_v40, %v1165_v6 }
 0x3e7   : > { %v744_v45 = vmax.f32 %v737_v30, %v741_v43  ;;  %v753_v2 = vmax.f32 %v738_v31, %v742_v8  ;;  %v786_v46 = vadd.f32 %v785_v41, %v741_v43  ;;  %v795_v4 = vadd.f32 %v794_v42, %v742_v8 }
 0x3e9   : > { %v745_v47 = vmax.f32 %v743_v9, %v744_v45  ;;  %v754_v48 = vmax.f32 %v752_v44, %v753_v2  ;;  %v787_v49 = vrot.slane %v786_v46, 4  ;;  %v796_v50 = vrot.slane %v795_v4, 4 }
 0x3eb   : > { %v746_v0 = vrot.slane %v745_v47, 4  ;;  %v755_v51 = vrot.slane %v754_v48, 4  ;;  %v788_v1 = vadd.f32 %v787_v49, %v786_v46  ;;  %v797_v52 = vadd.f32 %v796_v50, %v795_v4 }
 0x3ed   : > { %v747_v5 = vmax.f32 %v745_v47, %v746_v0  ;;  %v756_v56 = vmax.f32 %v754_v48, %v755_v51  ;;  %v789_v6 = vrot.slane %v788_v1, 2  ;;  %v798_v57 = vrot.slane %v797_v52, 2 }
 0x3ef   : > { %v748_v58 = vrot.slane %v747_v5, 2  ;;  %v757_v59 = vrot.slane %v756_v56, 2  ;;  %v790_v60 = vadd.f32 %v789_v6, %v788_v1  ;;  %v799_v61 = vadd.f32 %v798_v57, %v797_v52 }
 0x3f1   : > { %v749_v3 = vmax.f32 %v747_v5, %v748_v58  ;;  %v758_v7 = vmax.f32 %v756_v56, %v757_v59  ;;  %v791_v10 = vrot.slane %v790_v60, 1  ;;  %v800_v11 = vrot.slane %v799_v61, 1 }
 0x3f3   : > { %v750_v12 = vrot.slane %v749_v3, 1  ;;  %v759_v13 = vrot.slane %v758_v7, 1  ;;  %v792_v14 = vadd.f32 %v791_v10, %v790_v60  ;;  %v801_v15 = vadd.f32 %v800_v11, %v799_v61 }
 0x3f5   : > { %v751_v17 = vmax.f32 %v749_v3, %v750_v12  ;;  %v760_v18 = vmax.f32 %v758_v7, %v759_v13  ;;  %v802_v19 = vmul.f32 0.03125, %v792_v14  ;;  %v803_v20 = vmul.f32 0.03125, %v801_v15 }
 0x3f7   : > { %v763_v21 = vcombine.low %v751_v17, %v760_v18  ;;  %v806_v22 = vcombine.low %v802_v19, %v803_v20 }
 0x3f9   : > { %v770_v23 = vrot.slane %v763_v21, %v769_v16  ;;  %v813_v24 = vrot.slane %v806_v22, %v769_v16 }
 0x3fb   : > { %v777_v25 = vrot.slane %v770_v23, %v769_v16  ;;  %v820_v26 = vrot.slane %v813_v24, %v769_v16 }
 0x3fd   : > { %783 = vst.msk [vmem:[%s295_s13] sm:$0x3] %vm781_vm5, %v777_v25  ;;  %822 = vst.msk [vmem:[%s299_s16] sm:$0x3] %vm781_vm5, %v820_v26 }
 0x3fe PF: > { %s18_s24 = sadd.s32 1, %s1092_s24  }
 0x3ff   : > { %p15_p4 = scmp.ge.s32.totalorder %s18_s24, 4  }
 0x401   :  { %17 = sbr.rel (!%p15_p4) target bundleno = 1 (0x1), region = 94 }

// kernel: cbam_forward.4
= control target key start
LH: loop header
LB: loop body
LE: loop exit
PB: predicated region body
PF: predicated region fallthrough
CT: control target
= control target key end

     0   :  { %s2370_s0 = inlined_call_operand.vmem [shape: f32[2,2,22,22], index: 0, kind: input, shape index: {}]   ;;  %s2371_s1 = inlined_call_operand.vmem [shape: f32[98], index: 1, kind: input, shape index: {}]   ;;  %s2372_s2 = inlined_call_operand.<no memory space> [shape: f32[1], index: 2, kind: input, shape index: {}]   ;;  %s2373_s3 = inlined_call_operand.vmem [shape: f32[2,1,16,16], index: 3, kind: output, shape index: {}]  }
   0x1   :  { %8 = sst [smem:[#allocation2]] %s2372_s2 }
   0x2   :  { %9 = vsyncpa [#allocation4], 0  ;;  %s1777_s14 = smov 0  }
   0x3 LB: > { %s1560_s15 = sadd.s32 4294967295, %s1745_s14   ;;  %p1562_p0 = scmp.ge.s32.totalorder %s1745_s14, 1  ;;  %s1745_s14 = sphi %s1777_s14, %s15_s14  }
   0x4   : > { %p114_p1 = scmp.lt.s32.totalorder %s1745_s14, 3  ;;  %s127_s18 = sshll.u32 %s2371_s1, 4  ;;  %s128_s18 = int_to_ptr.vmem [resolvable:$true] %s127_s18 }
   0x5   : > { %p1695_p3 = scmp.eq.s32.totalorder %s1560_s15, 0  ;;  %s1720_s19 = scalar_lea.vmem %s128_s18, 16 }
   0x6   : > { %p1788_p2 = pnand %p1562_p0, %p114_p1  ;;  %p1721_p6 = scmp.ne.s32.totalorder %s128_s18, %s1720_s19 }
   0x7   : > { %p1728_p10 = scmp.lt.s32.totalorder %s128_s18, %s128_s18  ;;  %p1729_p11 = scmp.lt.s32.totalorder %s1720_s19, %s1720_s19 }
   0x8   : > { %p1691_p4 = pneg %p1788_p2 }
   0x9   : > { %p1730_p12 = por %p1729_p11, %p1728_p10 }
   0xa   : > { %p1692_p5 = pnand %p1695_p3, %p1691_p4 }
   0xc   : > { %p1722_p7 = pneg %p1692_p5 }
   0xe   : > { %p1723_p8 = pnand %p1722_p7, %p1721_p6 }
  0x10   : > { %p1724_p9 = pneg %p1723_p8 }
  0x12   : > { %p1731_p13 = pnand %p1730_p12, %p1724_p9 }
  0x14   : > { %1734 = shalt.err (!%p1731_p13)
}
  0x15   : > { %s1747_s20 = smov [#allocation3]   ;;  %151 = sbr.rel (%p1788_p2) target bundleno = 517 (0x205), region = 32 }
  0x16   : > { %1694 = dma.vmem_to_smem (!%p1692_p5), %s128_s18, 16, %s1747_s20, [#allocation4]  }
  0x1c   : > { %1740 = dma.done.wait (%p1695_p3), [#allocation4], 16  }
  0x1d   : > { %1742 = vsyncadd (%p1695_p3), [#allocation4], 4294967280 }
  0x1e   : > { %157 = sfence }
  0x1f   : > { %p176_p0 = scmp.lt.s32.totalorder %s1560_s15, 1  ;;  %s1571_s21 = sld [smem:[#allocation3 + $0x2]]  ;;  %vm1490_vm0 = vcmask 130048  }
  0x20   : > { %s1570_s22 = sld [smem:[#allocation3 + $0x1]]  ;;  %s1572_s23 = sld [smem:[#allocation3 + $0x3]] }
  0x21   : > { %s2376_s15 = smov (!%p176_p0, %s1560_s15), 1  ;;  %s1573_s28 = sld [smem:[#allocation3 + $0x4]] }
  0x22   : > { %s1686_s24 = smul.u32 48, %s2376_s15  ;;  %s1748_s29 = smov 126  }
  0x23   : > { %s1749_s30 = smov 127   ;;  %s1574_s4 = sld [smem:[#allocation3 + $0x5]] }
  0x24   : > { %s1805_s27 = scalar_lea.vmem %s2370_s0, %s1686_s24  ;;  %s1575_s5 = sld [smem:[#allocation3 + $0x6]] }
  0x25   : > { %v212_v0 = vstv %s1571_s21  ;;  %v1808_v1 = vld [vmem:[%s1805_s27] sm:$0xff]  ;;  %v1811_v2 = vld [vmem:[%s1805_s27 + $0x8] sm:$0xff]  ;;  %s1750_s6 = smov 125   ;;  %s1577_s7 = sld [smem:[#allocation3 + $0x8]] }
  0x26   : > { %v198_v3 = vstv %s1570_s22  ;;  %v213_v4 = vmul.f32 %v212_v0, %v1808_v1  ;;  %v214_v6 = vmul.f32 %v212_v0, %v1811_v2  ;;  %v226_v8 = vstv %s1572_s23  ;;  %s1751_s8 = smov 124   ;;  %s1578_s9 = sld [smem:[#allocation3 + $0x9]]  ;;  %v1836_v20 = vld [vmem:[%s1805_s27 + $0x9] sm:$0xff]  ;;  %v1839_v22 = vld [vmem:[%s1805_s27 + $0x1] sm:$0xff] }
  0x27   : > { %v199_v5 = vmul.f32 %v198_v3, %v1808_v1  ;;  %v200_v7 = vmul.f32 %v198_v3, %v1811_v2  ;;  %v228_v9 = vmul.f32 %v226_v8, %v1811_v2  ;;  %v227_v10 = vmul.f32 %v226_v8, %v1808_v1  ;;  %s1752_s10 = smov 123   ;;  %s1579_s11 = sld [smem:[#allocation3 + $0xa]]  ;;  %v1866_v40 = vld [vmem:[%s1805_s27 + $0xa] sm:$0xff]  ;;  %v1869_v42 = vld [vmem:[%s1805_s27 + $0x2] sm:$0xff] }
  0x28   : > { %217 = vrot.lane.b32.xlu1 %v213_v4, %s1748_s29  ;;  %v240_v11 = vstv %s1573_s28  ;;  %s1753_s12 = smov 122   ;;  %s1580_s13 = sld [smem:[#allocation3 + $0xb]]  ;;  %v1896_v60 = vld [vmem:[%s1805_s27 + $0xb] sm:$0xff]  ;;  %v1899_v62 = vld [vmem:[%s1805_s27 + $0x3] sm:$0xff] }
  0x29   : > { %203 = vrot.lane.b32.xlu0 %v199_v5, %s1749_s30  ;;  %v242_v12 = vmul.f32 %v240_v11, %v1811_v2  ;;  %v241_v13 = vmul.f32 %v240_v11, %v1808_v1  ;;  %v254_v14 = vstv %s1574_s4  ;;  %s1581_s16 = sld [smem:[#allocation3 + $0xc]]  ;;  %s1582_s17 = sld [smem:[#allocation3 + $0xd]] }
  0x2a   : > { %v256_v15 = vmul.f32 %v254_v14, %v1811_v2  ;;  %v255_v16 = vmul.f32 %v254_v14, %v1808_v1  ;;  %v268_v17 = vstv %s1575_s5  ;;  %s1584_s18 = sld [smem:[#allocation3 + $0xf]]  ;;  %s1585_s2 = sld [smem:[#allocation3 + $0x10]] }
  0x2b   : > { %v270_v18 = vmul.f32 %v268_v17, %v1811_v2  ;;  %v269_v19 = vmul.f32 %v268_v17, %v1808_v1  ;;  %v290_v21 = vstv %s1577_s7  ;;  %s1586_s19 = sld [smem:[#allocation3 + $0x11]]  ;;  %s1587_s20 = sld [smem:[#allocation3 + $0x12]] }
  0x2c   : > { %219 = vrot.lane.b32.xlu1 %v214_v6, %s1748_s29  ;;  %v292_v23 = vmul.f32 %v290_v21, %v1836_v20  ;;  %v291_v24 = vmul.f32 %v290_v21, %v1839_v22  ;;  %v304_v25 = vstv %s1578_s9  ;;  %s1588_s21 = sld [smem:[#allocation3 + $0x13]]  ;;  %s1589_s22 = sld [smem:[#allocation3 + $0x14]]  ;;  %v1929_v21 = vld [vmem:[%s1805_s27 + $0x4] sm:$0xff] }
  0x2d   : > { %205 = vrot.lane.b32.xlu0 %v200_v7, %s1749_s30  ;;  %v306_v26 = vmul.f32 %v304_v25, %v1836_v20  ;;  %v305_v27 = vmul.f32 %v304_v25, %v1839_v22  ;;  %v318_v28 = vstv %s1579_s11  ;;  %s1591_s23 = sld [smem:[#allocation3 + $0x16]]  ;;  %s1592_s24 = sld [smem:[#allocation3 + $0x17]] }
  0x2e   : > { %v320_v29 = vmul.f32 %v318_v28, %v1836_v20  ;;  %v319_v30 = vmul.f32 %v318_v28, %v1839_v22  ;;  %v332_v31 = vstv %s1580_s13  ;;  %s1593_s25 = sld [smem:[#allocation3 + $0x18]]  ;;  %s1594_s26 = sld [smem:[#allocation3 + $0x19]] }
  0x2f   : > { %v334_v32 = vmul.f32 %v332_v31, %v1836_v20  ;;  %v333_v33 = vmul.f32 %v332_v31, %v1839_v22  ;;  %v346_v34 = vstv %s1581_s16  ;;  %v360_v37 = vstv %s1582_s17  ;;  %s1595_s28 = sld [smem:[#allocation3 + $0x1a]]  ;;  %s1596_s4 = sld [smem:[#allocation3 + $0x1b]] }
  0x30   : > { %233 = vrot.lane.b32.xlu1 %v228_v9, %s1750_s6  ;;  %v348_v35 = vmul.f32 %v346_v34, %v1836_v20  ;;  %v347_v36 = vmul.f32 %v346_v34, %v1839_v22  ;;  %v362_v38 = vmul.f32 %v360_v37, %v1836_v20  ;;  %v361_v39 = vmul.f32 %v360_v37, %v1839_v22  ;;  %s1598_s5 = sld [smem:[#allocation3 + $0x1d]]  ;;  %s1599_s7 = sld [smem:[#allocation3 + $0x1e]] }
  0x31   : > { %231 = vrot.lane.b32.xlu0 %v227_v10, %s1750_s6  ;;  %v382_v41 = vstv %s1584_s18  ;;  %v396_v45 = vstv %s1585_s2  ;;  %v410_v48 = vstv %s1586_s19  ;;  %s1600_s9 = sld [smem:[#allocation3 + $0x1f]]  ;;  %s1601_s11 = sld [smem:[#allocation3 + $0x20]] }
  0x32   : > { %v384_v43 = vmul.f32 %v382_v41, %v1866_v40  ;;  %v383_v44 = vmul.f32 %v382_v41, %v1869_v42  ;;  %v398_v46 = vmul.f32 %v396_v45, %v1866_v40  ;;  %v397_v47 = vmul.f32 %v396_v45, %v1869_v42  ;;  %s1602_s13 = sld [smem:[#allocation3 + $0x21]]  ;;  %s1603_s16 = sld [smem:[#allocation3 + $0x22]] }
  0x33   : > { %v412_v49 = vmul.f32 %v410_v48, %v1866_v40  ;;  %v411_v50 = vmul.f32 %v410_v48, %v1869_v42  ;;  %v424_v51 = vstv %s1587_s20  ;;  %v438_v54 = vstv %s1588_s21  ;;  %s189_s17 = sld [smem:[#allocation3]]  ;;  %s1605_s18 = sld [smem:[#allocation3 + $0x24]] }
  0x34   : > { %247 = vrot.lane.b32.xlu1 %v242_v12, %s1751_s8  ;;  %v426_v52 = vmul.f32 %v424_v51, %v1866_v40  ;;  %v425_v53 = vmul.f32 %v424_v51, %v1869_v42  ;;  %v440_v55 = vmul.f32 %v438_v54, %v1866_v40  ;;  %v439_v56 = vmul.f32 %v438_v54, %v1869_v42  ;;  %s186_s2 = sld [smem:[#allocation2]]  ;;  %s1606_s19 = sld [smem:[#allocation3 + $0x25]] }
  0x35   : > { %245 = vrot.lane.b32.xlu0 %v241_v13, %s1751_s8  ;;  %v452_v57 = vstv %s1589_s22  ;;  %v474_v61 = vstv %s1591_s23  ;;  %v488_v3 = vstv %s1592_s24  ;;  %s1607_s20 = sld [smem:[#allocation3 + $0x26]]  ;;  %s1608_s21 = sld [smem:[#allocation3 + $0x27]] }
  0x36   : > { %v454_v58 = vmul.f32 %v452_v57, %v1866_v40  ;;  %v453_v59 = vmul.f32 %v452_v57, %v1869_v42  ;;  %v476_v63 = vmul.f32 %v474_v61, %v1896_v60  ;;  %v475_v0 = vmul.f32 %v474_v61, %v1899_v62  ;;  %s1971_s22 = sld [smem:[#allocation3 + $0x7]]  ;;  %s1973_s23 = sld [smem:[#allocation3 + $0x28]] }
  0x37   : > { %v490_v4 = vmul.f32 %v488_v3, %v1896_v60  ;;  %v489_v5 = vmul.f32 %v488_v3, %v1899_v62  ;;  %v502_v6 = vstv %s1593_s25  ;;  %v516_v9 = vstv %s1594_s26  ;;  %s1979_s24 = sld [smem:[#allocation3 + $0x29]]  ;;  %s1987_s25 = sld [smem:[#allocation3 + $0x2b]] }
  0x38   : > { %261 = vrot.lane.b32.xlu1 %v256_v15, %s1752_s10  ;;  %v504_v7 = vmul.f32 %v502_v6, %v1896_v60  ;;  %v503_v8 = vmul.f32 %v502_v6, %v1899_v62  ;;  %v518_v10 = vmul.f32 %v516_v9, %v1896_v60  ;;  %v517_v11 = vmul.f32 %v516_v9, %v1899_v62  ;;  %s1613_s26 = sld [smem:[#allocation3 + $0x2c]] }
  0x39   : > { %259 = vrot.lane.b32.xlu0 %v255_v16, %s1752_s10  ;;  %v530_v12 = vstv %s1595_s28  ;;  %v544_v15 = vstv %s1596_s4  ;;  %v580_v25 = vstv %s1599_s7  ;;  %s1614_s28 = sld [smem:[#allocation3 + $0x2d]]  ;;  %s1615_s4 = sld [smem:[#allocation3 + $0x2e]] }
  0x3a   : > { %v532_v13 = vmul.f32 %v530_v12, %v1896_v60  ;;  %v531_v14 = vmul.f32 %v530_v12, %v1899_v62  ;;  %v546_v16 = vmul.f32 %v544_v15, %v1896_v60  ;;  %v545_v17 = vmul.f32 %v544_v15, %v1899_v62  ;;  %s2017_s7 = sld [smem:[#allocation3 + $0x2f]] }
  0x3b   : > { %v594_v28 = vstv %s1600_s9  ;;  %v608_v31 = vstv %s1601_s11  ;;  %v622_v34 = vstv %s1602_s13  ;;  %v636_v37 = vstv %s1603_s16  ;;  %s2023_s9 = sld [smem:[#allocation3 + $0x30]]  ;;  %s2031_s11 = sld [smem:[#allocation3 + $0x32]] }
  0x3c   : > { %275 = vrot.lane.b32.xlu1 %v270_v18, %s1753_s12  ;;  %v1926_v18 = vld [vmem:[%s1805_s27 + $0xc] sm:$0xff]  ;;  %v637_v41 = vmul.f32 %v636_v37, %v1929_v21  ;;  %v658_v45 = vstv %s1605_s18  ;;  %v700_v6 = vstv %s1608_s21  ;;  %s1622_s13 = sld [smem:[#allocation3 + $0x33]]  ;;  %s1623_s16 = sld [smem:[#allocation3 + $0x34]] }
  0x3d   : > { %273 = vrot.lane.b32.xlu0 %v269_v19, %s1753_s12  ;;  %v566_v19 = vstv %s1598_s5  ;;  %v714_v15 = vstv %s1973_s23  ;;  %s2015_s5 = sld [smem:[#allocation3 + $0xe]]  ;;  %s2059_s18 = sld [smem:[#allocation3 + $0x15]] }
  0x3e   : > { %s1631_s21 = sld [smem:[#allocation3 + $0x3a]]  ;;  %s1633_s23 = sld [smem:[#allocation3 + $0x3c]] }
  0x40   : > { %297 = vrot.lane.b32.xlu1 %v292_v23, %s1749_s30  ;;  %v568_v23 = vmul.f32 %v566_v19, %v1926_v18 }
  0x41   : > { %295 = vrot.lane.b32.xlu0 %v291_v24, %s1749_s30  ;;  %v567_v24 = vmul.f32 %v566_v19, %v1929_v21 }
  0x44   : > { %311 = vrot.lane.b32.xlu1 %v306_v26, %s1748_s29  ;;  %v582_v26 = vmul.f32 %v580_v25, %v1926_v18 }
  0x45   : > { %309 = vrot.lane.b32.xlu0 %v305_v27, %s1748_s29  ;;  %v581_v27 = vmul.f32 %v580_v25, %v1929_v21 }
  0x48   : > { %325 = vrot.lane.b32.xlu1 %v320_v29, %s1750_s6  ;;  %v596_v29 = vmul.f32 %v594_v28, %v1926_v18 }
  0x49   : > { %323 = vrot.lane.b32.xlu0 %v319_v30, %s1750_s6  ;;  %v595_v30 = vmul.f32 %v594_v28, %v1929_v21 }
  0x4c   : > { %339 = vrot.lane.b32.xlu1 %v334_v32, %s1751_s8  ;;  %v610_v32 = vmul.f32 %v608_v31, %v1926_v18 }
  0x4d   : > { %337 = vrot.lane.b32.xlu0 %v333_v33, %s1751_s8  ;;  %v609_v33 = vmul.f32 %v608_v31, %v1929_v21 }
  0x50   : > { %353 = vrot.lane.b32.xlu1 %v348_v35, %s1752_s10  ;;  %v624_v35 = vmul.f32 %v622_v34, %v1926_v18 }
  0x51   : > { %351 = vrot.lane.b32.xlu0 %v347_v36, %s1752_s10  ;;  %v623_v36 = vmul.f32 %v622_v34, %v1929_v21 }
  0x54   : > { %367 = vrot.lane.b32.xlu1 %v362_v38, %s1753_s12  ;;  %v192_v38 = vstv %s189_s17  ;;  %s1624_s17 = sld [smem:[#allocation3 + $0x35]] }
  0x55   : > { %365 = vrot.lane.b32.xlu0 %v361_v39, %s1753_s12  ;;  %v638_v39 = vmul.f32 %v636_v37, %v1926_v18 }
  0x58   : > { %389 = vrot.lane.b32.xlu1 %v384_v43, %s1749_s30  ;;  %v194_v43 = vmul.f32 %v192_v38, %v1811_v2 }
  0x59   : > { %387 = vrot.lane.b32.xlu0 %v383_v44, %s1749_s30  ;;  %v1957_v44 = vld [vmem:[%s1805_s27 + $0xd] sm:$0xff] }
  0x5a   : > { %v660_v51 = vmul.f32 %v658_v45, %v1957_v44  ;;  %v716_v25 = vmul.f32 %v714_v15, %v1957_v44 }
  0x5c   : > { %403 = vrot.lane.b32.xlu1 %v398_v46, %s1748_s29  ;;  %v1960_v46 = vld [vmem:[%s1805_s27 + $0x5] sm:$0xff] }
  0x5d   : > { %401 = vrot.lane.b32.xlu0 %v397_v47, %s1748_s29 }
  0x60   : > { %417 = vrot.lane.b32.xlu1 %v412_v49, %s1750_s6  ;;  %v193_v49 = vmul.f32 %v192_v38, %v1808_v1  ;;  %v2001_v38 = vld [vmem:[%s1805_s27 + $0xe] sm:$0xff] }
  0x61   : > { %415 = vrot.lane.b32.xlu0 %v411_v50, %s1750_s6  ;;  %v187_v50 = vstv %s186_s2  ;;  %s2061_s2 = sld [smem:[#allocation3 + $0x36]] }
  0x62   : > { %v196_v2 = vadd.f32 %v194_v43, %v187_v50 }
  0x64   : > { %431 = vrot.lane.b32.xlu1 %v426_v52, %s1751_s8  ;;  %v659_v52 = vmul.f32 %v658_v45, %v1960_v46 }
  0x65   : > { %429 = vrot.lane.b32.xlu0 %v425_v53, %s1751_s8  ;;  %v672_v53 = vstv %s1606_s19  ;;  %s2067_s19 = sld [smem:[#allocation3 + $0x37]] }
  0x66   : > { %v674_v1 = vmul.f32 %v672_v53, %v1957_v44  ;;  %v673_v57 = vmul.f32 %v672_v53, %v1960_v46 }
  0x68   : > { %445 = vrot.lane.b32.xlu1 %v440_v55, %s1752_s10 }
  0x69   : > { %443 = vrot.lane.b32.xlu0 %v439_v56, %s1752_s10  ;;  %v195_v56 = vadd.f32 %v193_v49, %v187_v50 }
  0x6c   : > { %459 = vrot.lane.b32.xlu1 %v454_v58, %s1753_s12 }
  0x6d   : > { %457 = vrot.lane.b32.xlu0 %v453_v59, %s1753_s12  ;;  %v686_v59 = vstv %s1607_s20  ;;  %s2075_s20 = sld [smem:[#allocation3 + $0x39]] }
  0x6e   : > { %v688_v3 = vmul.f32 %v686_v59, %v1957_v44 }
  0x70   : > { %481 = vrot.lane.b32.xlu1 %v476_v63, %s1749_s30 }
  0x71   : > { %479 = vrot.lane.b32.xlu0 %v475_v0, %s1749_s30 }
  0x74   : > { %495 = vrot.lane.b32.xlu1 %v490_v4, %s1748_s29  ;;  %v687_v4 = vmul.f32 %v686_v59, %v1960_v46 }
  0x75   : > { %493 = vrot.lane.b32.xlu0 %v489_v5, %s1748_s29 }
  0x78   : > { %509 = vrot.lane.b32.xlu1 %v504_v7, %s1750_s6 }
  0x79   : > { %507 = vrot.lane.b32.xlu0 %v503_v8, %s1750_s6 }
  0x7c   : > { %523 = vrot.lane.b32.xlu1 %v518_v10, %s1751_s8  ;;  %v702_v10 = vmul.f32 %v700_v6, %v1957_v44 }
  0x7d   : > { %521 = vrot.lane.b32.xlu0 %v517_v11, %s1751_s8  ;;  %v701_v11 = vmul.f32 %v700_v6, %v1960_v46 }
  0x80   : > { %537 = vrot.lane.b32.xlu1 %v532_v13, %s1752_s10 }
  0x81   : > { %535 = vrot.lane.b32.xlu0 %v531_v14, %s1752_s10  ;;  %v284_v14 = vstv %s1971_s22  ;;  %s1632_s22 = sld [smem:[#allocation3 + $0x3b]] }
  0x84   : > { %551 = vrot.lane.b32.xlu1 %v546_v16, %s1753_s12 }
  0x85   : > { %549 = vrot.lane.b32.xlu0 %v545_v17, %s1753_s12 }
  0x88   : > { %573 = vrot.lane.b32.xlu1 %v568_v23, %s1749_s30 }
  0x89   : > { %571 = vrot.lane.b32.xlu0 %v567_v24, %s1749_s30  ;;  %v286_v24 = vmul.f32 %v284_v14, %v1836_v20 }
  0x8c   : > { %587 = vrot.lane.b32.xlu1 %v582_v26, %s1748_s29  ;;  %v715_v26 = vmul.f32 %v714_v15, %v1960_v46 }
  0x8d   : > { %585 = vrot.lane.b32.xlu0 %v581_v27, %s1748_s29 }
  0x90   : > { %601 = vrot.lane.b32.xlu1 %v596_v29, %s1750_s6  ;;  %v285_v29 = vmul.f32 %v284_v14, %v1839_v22  ;;  %v2005_v22 = vld [vmem:[%s1805_s27 + $0x6] sm:$0xff] }
  0x91   : > { %599 = vrot.lane.b32.xlu0 %v595_v30, %s1750_s6  ;;  %v728_v30 = vstv %s1979_s24  ;;  %s2103_s24 = sld [smem:[#allocation3 + $0x1c]] }
  0x92   : > { %v730_v20 = vmul.f32 %v728_v30, %v1957_v44 }
  0x94   : > { %615 = vrot.lane.b32.xlu1 %v610_v32, %s1751_s8 }
  0x95   : > { %613 = vrot.lane.b32.xlu0 %v609_v33, %s1751_s8 }
  0x98   : > { %629 = vrot.lane.b32.xlu1 %v624_v35, %s1752_s10  ;;  %v729_v35 = vmul.f32 %v728_v30, %v1960_v46 }
  0x99   : > { %627 = vrot.lane.b32.xlu0 %v623_v36, %s1752_s10 }
  0x9a   : > { %v218_v47 = vpop.permute.xlu1 %217 }
  0x9b   : > { %v204_v48 = vpop.permute.xlu0 %203 }
  0x9c   : > { %643 = vrot.lane.b32.xlu1 %v638_v39, %s1753_s12  ;;  %v209_v0 = vadd.f32 %v204_v48, %v195_v56  ;;  %v750_v39 = vstv %s1987_s25  ;;  %v764_v48 = vstv %s1613_s26  ;;  %s2105_s25 = sld [smem:[#allocation3 + $0x3d]]  ;;  %s2111_s26 = sld [smem:[#allocation3 + $0x3e]] }
  0x9d   : > { %641 = vrot.lane.b32.xlu0 %v637_v41, %s1753_s12  ;;  %v752_v45 = vmul.f32 %v750_v39, %v2001_v38 }
  0x9e   : > { %v220_v54 = vpop.permute.xlu1 %219  ;;  %v223_v9 = vadd.f32 %v218_v47, %v209_v0  ;;  %v751_v47 = vmul.f32 %v750_v39, %v2005_v22 }
  0x9f   : > { %v206_v55 = vpop.permute.xlu0 %205 }
  0xa0   : > { %665 = vrot.lane.b32.xlu1 %v660_v51, %s1749_s30  ;;  %v210_v58 = vadd.f32 %v206_v55, %v196_v2  ;;  %v766_v51 = vmul.f32 %v764_v48, %v2001_v38  ;;  %v778_v2 = vstv %s1614_s28  ;;  %s2119_s28 = sld [smem:[#allocation3 + $0x40]] }
  0xa1   : > { %663 = vrot.lane.b32.xlu0 %v659_v52, %s1749_s30  ;;  %v765_v52 = vmul.f32 %v764_v48, %v2005_v22  ;;  %v780_v55 = vmul.f32 %v778_v2, %v2001_v38  ;;  %v779_v56 = vmul.f32 %v778_v2, %v2005_v22  ;;  %v885_v2 = vstv %s1624_s17  ;;  %s2163_s17 = sld [smem:[#allocation3 + $0x48]] }
  0xa2   : > { %v234_v61 = vpop.permute.xlu1 %233  ;;  %v224_v5 = vadd.f32 %v220_v54, %v210_v58  ;;  %v792_v58 = vstv %s1615_s4  ;;  %s1640_s4 = sld [smem:[#allocation3 + $0x41]] }
  0xa3   : > { %v232_v63 = vpop.permute.xlu0 %231 }
  0xa4   : > { %679 = vrot.lane.b32.xlu1 %v674_v1, %s1748_s29  ;;  %v238_v12 = vadd.f32 %v234_v61, %v224_v5  ;;  %v237_v13 = vadd.f32 %v232_v63, %v223_v9 }
  0xa5   : > { %677 = vrot.lane.b32.xlu0 %v673_v57, %s1748_s29 }
  0xa6   : > { %v248_v7 = vpop.permute.xlu1 %247 }
  0xa7   : > { %v246_v8 = vpop.permute.xlu0 %245  ;;  %v252_v19 = vadd.f32 %v248_v7, %v238_v12  ;;  %v376_v7 = vstv %s2015_s5  ;;  %s1641_s5 = sld [smem:[#allocation3 + $0x42]] }
  0xa8   : > { %693 = vrot.lane.b32.xlu1 %v688_v3, %s1750_s6  ;;  %v251_v23 = vadd.f32 %v246_v8, %v237_v13  ;;  %v794_v3 = vmul.f32 %v792_v58, %v2001_v38  ;;  %v806_v8 = vstv %s2017_s7  ;;  %v378_v13 = vmul.f32 %v376_v7, %v1866_v40  ;;  %s1642_s7 = sld [smem:[#allocation3 + $0x43]] }
  0xa9   : > { %691 = vrot.lane.b32.xlu0 %v687_v4, %s1750_s6  ;;  %v793_v4 = vmul.f32 %v792_v58, %v2005_v22  ;;  %v808_v14 = vmul.f32 %v806_v8, %v2001_v38  ;;  %v807_v15 = vmul.f32 %v806_v8, %v2005_v22 }
  0xaa   : > { %v262_v16 = vpop.permute.xlu1 %261 }
  0xab   : > { %v260_v17 = vpop.permute.xlu0 %259  ;;  %v266_v27 = vadd.f32 %v262_v16, %v252_v19  ;;  %v377_v19 = vmul.f32 %v376_v7, %v1869_v42  ;;  %v2049_v42 = vld [vmem:[%s1805_s27 + $0x18] sm:$0xff] }
  0xac   : > { %707 = vrot.lane.b32.xlu1 %v702_v10, %s1751_s8  ;;  %v265_v28 = vadd.f32 %v260_v17, %v251_v23  ;;  %v820_v23 = vstv %s2023_s9  ;;  %s1643_s9 = sld [smem:[#allocation3 + $0x44]] }
  0xad   : > { %705 = vrot.lane.b32.xlu0 %v701_v11, %s1751_s8  ;;  %v822_v40 = vmul.f32 %v820_v23, %v2001_v38 }
  0xae   : > { %v276_v31 = vpop.permute.xlu1 %275 }
  0xaf   : > { %v274_v32 = vpop.permute.xlu0 %273  ;;  %v280_v33 = vadd.f32 %v276_v31, %v266_v27  ;;  %v2045_v31 = vld [vmem:[%s1805_s27 + $0x20] sm:$0xff] }
  0xb0   : > { %v279_v34 = vadd.f32 %v274_v32, %v265_v28  ;;  %721 = vrot.lane.b32.xlu1 %v716_v25, %s1752_s10  ;;  %v821_v28 = vmul.f32 %v820_v23, %v2005_v22  ;;  %v843_v32 = vstv %s2031_s11  ;;  %s1644_s11 = sld [smem:[#allocation3 + $0x45]] }
  0xb1   : > { %719 = vrot.lane.b32.xlu0 %v715_v26, %s1752_s10  ;;  %v288_v36 = vadd.f32 %v286_v24, %v280_v33 }
  0xb2   : > { %v287_v37 = vadd.f32 %v285_v29, %v279_v34  ;;  %v298_v41 = vpop.permute.xlu1 %297 }
  0xb3   : > { %v296_v43 = vpop.permute.xlu0 %295  ;;  %v302_v1 = vadd.f32 %v298_v41, %v288_v36  ;;  %v857_v36 = vstv %s1622_s13  ;;  %s2155_s13 = sld [smem:[#allocation3 + $0x23]] }
  0xb4   : > { %735 = vrot.lane.b32.xlu1 %v730_v20, %s1753_s12  ;;  %v301_v57 = vadd.f32 %v296_v43, %v287_v37  ;;  %v845_v20 = vmul.f32 %v2045_v31, %v843_v32  ;;  %v859_v41 = vmul.f32 %v2045_v31, %v857_v36  ;;  %v858_v43 = vmul.f32 %v2049_v42, %v857_v36 }
  0xb5   : > { %733 = vrot.lane.b32.xlu0 %v729_v35, %s1753_s12  ;;  %v844_v35 = vmul.f32 %v2049_v42, %v843_v32 }
  0xb6   : > { %v312_v49 = vpop.permute.xlu1 %311 }
  0xb7   : > { %v310_v50 = vpop.permute.xlu0 %309  ;;  %v316_v63 = vadd.f32 %v312_v49, %v302_v1  ;;  %v887_v1 = vmul.f32 %v2045_v31, %v885_v2 }
  0xb8   : > { %757 = vrot.lane.b32.xlu1 %v752_v45, %s1749_s30  ;;  %v315_v0 = vadd.f32 %v310_v50, %v301_v57  ;;  %v871_v45 = vstv %s1623_s16  ;;  %v886_v57 = vmul.f32 %v2049_v42, %v885_v2  ;;  %s2157_s16 = sld [smem:[#allocation3 + $0x47]] }
  0xb9   : > { %755 = vrot.lane.b32.xlu0 %v751_v47, %s1749_s30  ;;  %v873_v49 = vmul.f32 %v2045_v31, %v871_v45  ;;  %v872_v50 = vmul.f32 %v2049_v42, %v871_v45  ;;  %v977_v45 = vstv %s1633_s23  ;;  %s2216_s23 = sld [smem:[#allocation3 + $0x4f]] }
  0xba   : > { %v326_v53 = vpop.permute.xlu1 %325 }
  0xbb   : > { %v324_v54 = vpop.permute.xlu0 %323  ;;  %v330_v5 = vadd.f32 %v326_v53, %v316_v63  ;;  %v899_v63 = vstv %s2061_s2  ;;  %s1651_s2 = sld [smem:[#allocation3 + $0x4a]] }
  0xbc   : > { %771 = vrot.lane.b32.xlu1 %v766_v51, %s1748_s29  ;;  %v329_v6 = vadd.f32 %v324_v54, %v315_v0  ;;  %v901_v7 = vmul.f32 %v2045_v31, %v899_v63  ;;  %v900_v8 = vmul.f32 %v2049_v42, %v899_v63 }
  0xbd   : > { %769 = vrot.lane.b32.xlu0 %v765_v52, %s1748_s29 }
  0xbe   : > { %v340_v59 = vpop.permute.xlu1 %339 }
  0xbf   : > { %v338_v61 = vpop.permute.xlu0 %337  ;;  %v344_v11 = vadd.f32 %v340_v59, %v330_v5 }
  0xc0   : > { %785 = vrot.lane.b32.xlu1 %v780_v55, %s1750_s6  ;;  %v343_v12 = vadd.f32 %v338_v61, %v329_v6  ;;  %v468_v61 = vstv %s2059_s18  ;;  %s2177_s18 = sld [smem:[#allocation3 + $0x49]] }
  0xc1   : > { %783 = vrot.lane.b32.xlu0 %v779_v56, %s1750_s6  ;;  %v470_v6 = vmul.f32 %v468_v61, %v1896_v60 }
  0xc2   : > { %v354_v9 = vpop.permute.xlu1 %353 }
  0xc3   : > { %v352_v10 = vpop.permute.xlu0 %351  ;;  %v358_v16 = vadd.f32 %v354_v9, %v344_v11  ;;  %v469_v11 = vmul.f32 %v468_v61, %v1899_v62  ;;  %v2093_v62 = vld [vmem:[%s1805_s27 + $0x19] sm:$0xff] }
  0xc4   : > { %799 = vrot.lane.b32.xlu1 %v794_v3, %s1751_s8  ;;  %v357_v17 = vadd.f32 %v352_v10, %v343_v12  ;;  %v913_v12 = vstv %s2067_s19  ;;  %s2191_s19 = sld [smem:[#allocation3 + $0x2a]] }
  0xc5   : > { %797 = vrot.lane.b32.xlu0 %v793_v4, %s1751_s8  ;;  %v915_v60 = vmul.f32 %v2045_v31, %v913_v12 }
  0xc6   : > { %v368_v24 = vpop.permute.xlu1 %367 }
  0xc7   : > { %v366_v25 = vpop.permute.xlu0 %365  ;;  %v372_v26 = vadd.f32 %v368_v24, %v358_v16  ;;  %v2089_v24 = vld [vmem:[%s1805_s27 + $0x21] sm:$0xff] }
  0xc8   : > { %v371_v27 = vadd.f32 %v366_v25, %v357_v17  ;;  %813 = vrot.lane.b32.xlu1 %v808_v14, %s1752_s10  ;;  %v914_v17 = vmul.f32 %v2049_v42, %v913_v12  ;;  %v935_v25 = vstv %s2075_s20  ;;  %s2193_s20 = sld [smem:[#allocation3 + $0x4b]] }
  0xc9   : > { %811 = vrot.lane.b32.xlu0 %v807_v15, %s1752_s10  ;;  %v380_v29 = vadd.f32 %v378_v13, %v372_v26 }
  0xca   : > { %v379_v30 = vadd.f32 %v377_v19, %v371_v27  ;;  %v390_v33 = vpop.permute.xlu1 %389 }
  0xcb   : > { %v388_v34 = vpop.permute.xlu0 %387  ;;  %v394_v51 = vadd.f32 %v390_v33, %v380_v29  ;;  %v949_v29 = vstv %s1631_s21  ;;  %s2199_s21 = sld [smem:[#allocation3 + $0x4c]] }
  0xcc   : > { %827 = vrot.lane.b32.xlu1 %v822_v40, %s1753_s12  ;;  %v393_v52 = vadd.f32 %v388_v34, %v379_v30  ;;  %v937_v40 = vmul.f32 %v2089_v24, %v935_v25  ;;  %v951_v33 = vmul.f32 %v2089_v24, %v949_v29  ;;  %v950_v34 = vmul.f32 %v2093_v62, %v949_v29 }
  0xcd   : > { %825 = vrot.lane.b32.xlu0 %v821_v28, %s1753_s12  ;;  %v936_v28 = vmul.f32 %v2093_v62, %v935_v25 }
  0xce   : > { %v404_v37 = vpop.permute.xlu1 %403 }
  0xcf   : > { %v402_v39 = vpop.permute.xlu0 %401  ;;  %v408_v55 = vadd.f32 %v404_v37, %v394_v51  ;;  %v979_v51 = vmul.f32 %v2089_v24, %v977_v45 }
  0xd0   : > { %850 = vrot.lane.b32.xlu1 %v845_v20, %s1749_s30  ;;  %v407_v56 = vadd.f32 %v402_v39, %v393_v52  ;;  %v963_v20 = vstv %s1632_s22  ;;  %v978_v52 = vmul.f32 %v2093_v62, %v977_v45  ;;  %s2207_s22 = sld [smem:[#allocation3 + $0x4e]] }
  0xd1   : > { %848 = vrot.lane.b32.xlu0 %v844_v35, %s1749_s30  ;;  %v965_v37 = vmul.f32 %v2089_v24, %v963_v20  ;;  %v964_v39 = vmul.f32 %v2093_v62, %v963_v20 }
  0xd2   : > { %v418_v47 = vpop.permute.xlu1 %417 }
  0xd3   : > { %v416_v48 = vpop.permute.xlu0 %415  ;;  %v422_v58 = vadd.f32 %v418_v47, %v408_v55  ;;  %v991_v55 = vstv %s2105_s25  ;;  %s1660_s25 = sld [smem:[#allocation3 + $0x51]] }
  0xd4   : > { %864 = vrot.lane.b32.xlu1 %v859_v41, %s1748_s29  ;;  %v421_v59 = vadd.f32 %v416_v48, %v407_v56  ;;  %v993_v61 = vmul.f32 %v2089_v24, %v991_v55  ;;  %v992_v63 = vmul.f32 %v2093_v62, %v991_v55 }
  0xd5   : > { %862 = vrot.lane.b32.xlu0 %v858_v43, %s1748_s29 }
  0xd6   : > { %v432_v53 = vpop.permute.xlu1 %431 }
  0xd7   : > { %v430_v54 = vpop.permute.xlu0 %429  ;;  %v436_v4 = vadd.f32 %v432_v53, %v422_v58 }
  0xd8   : > { %878 = vrot.lane.b32.xlu1 %v873_v49, %s1750_s6  ;;  %v435_v5 = vadd.f32 %v430_v54, %v421_v59  ;;  %v560_v54 = vstv %s2103_s24  ;;  %s1659_s24 = sld [smem:[#allocation3 + $0x50]] }
  0xd9   : > { %876 = vrot.lane.b32.xlu0 %v872_v50, %s1750_s6  ;;  %v562_v59 = vmul.f32 %v560_v54, %v1926_v18 }
  0xda   : > { %v446_v0 = vpop.permute.xlu1 %445 }
  0xdb   : > { %v444_v3 = vpop.permute.xlu0 %443  ;;  %v450_v9 = vadd.f32 %v446_v0, %v436_v4  ;;  %v561_v4 = vmul.f32 %v560_v54, %v1929_v21  ;;  %v2137_v21 = vld [vmem:[%s1805_s27 + $0x1a] sm:$0xff] }
  0xdc   : > { %892 = vrot.lane.b32.xlu1 %v887_v1, %s1751_s8  ;;  %v449_v10 = vadd.f32 %v444_v3, %v435_v5  ;;  %v1005_v5 = vstv %s2111_s26  ;;  %s1661_s26 = sld [smem:[#allocation3 + $0x52]] }
  0xdd   : > { %890 = vrot.lane.b32.xlu0 %v886_v57, %s1751_s8  ;;  %v1007_v18 = vmul.f32 %v2089_v24, %v1005_v5 }
  0xde   : > { %v460_v13 = vpop.permute.xlu1 %459 }
  0xdf   : > { %v458_v14 = vpop.permute.xlu0 %457  ;;  %v464_v15 = vadd.f32 %v460_v13, %v450_v9  ;;  %v2133_v13 = vld [vmem:[%s1805_s27 + $0x22] sm:$0xff] }
  0xe0   : > { %v463_v16 = vadd.f32 %v458_v14, %v449_v10  ;;  %906 = vrot.lane.b32.xlu1 %v901_v7, %s1752_s10  ;;  %v1006_v10 = vmul.f32 %v2093_v62, %v1005_v5  ;;  %v1027_v14 = vstv %s2119_s28  ;;  %s1618_s28 = sld [smem:[#allocation3 + $0x31]] }
  0xe1   : > { %904 = vrot.lane.b32.xlu0 %v900_v8, %s1752_s10  ;;  %v472_v19 = vadd.f32 %v470_v6, %v464_v15 }
  0xe2   : > { %v471_v23 = vadd.f32 %v469_v11, %v463_v16  ;;  %v482_v26 = vpop.permute.xlu1 %481 }
  0xe3   : > { %v480_v27 = vpop.permute.xlu0 %479  ;;  %v486_v41 = vadd.f32 %v482_v26, %v472_v19  ;;  %v1041_v19 = vstv %s1640_s4  ;;  %s2242_s4 = sld [smem:[#allocation3 + $0x53]] }
  0xe4   : > { %920 = vrot.lane.b32.xlu1 %v915_v60, %s1753_s12  ;;  %v485_v43 = vadd.f32 %v480_v27, %v471_v23  ;;  %v1029_v60 = vmul.f32 %v2133_v13, %v1027_v14  ;;  %v1043_v26 = vmul.f32 %v2133_v13, %v1041_v19  ;;  %v1042_v27 = vmul.f32 %v2137_v21, %v1041_v19 }
  0xe5   : > { %918 = vrot.lane.b32.xlu0 %v914_v17, %s1753_s12  ;;  %v1028_v17 = vmul.f32 %v2137_v21, %v1027_v14 }
  0xe6   : > { %v496_v30 = vpop.permute.xlu1 %495 }
  0xe7   : > { %v494_v32 = vpop.permute.xlu0 %493  ;;  %v500_v49 = vadd.f32 %v496_v30, %v486_v41 }
  0xe8   : > { %942 = vrot.lane.b32.xlu1 %v937_v40, %s1749_s30  ;;  %v499_v50 = vadd.f32 %v494_v32, %v485_v43  ;;  %v1055_v40 = vstv %s1641_s5  ;;  %s2248_s5 = sld [smem:[#allocation3 + $0x55]] }
  0xe9   : > { %940 = vrot.lane.b32.xlu0 %v936_v28, %s1749_s30  ;;  %v1057_v30 = vmul.f32 %v2133_v13, %v1055_v40  ;;  %v1056_v32 = vmul.f32 %v2137_v21, %v1055_v40  ;;  %v1161_v40 = vstv %s1651_s2  ;;  %s1677_s2 = sld [smem:[#allocation3 + $0x5e]] }
  0xea   : > { %v510_v35 = vpop.permute.xlu1 %509 }
  0xeb   : > { %v508_v36 = vpop.permute.xlu0 %507  ;;  %v514_v2 = vadd.f32 %v510_v35, %v500_v49 }
  0xec   : > { %956 = vrot.lane.b32.xlu1 %v951_v33, %s1748_s29  ;;  %v513_v53 = vadd.f32 %v508_v36, %v499_v50  ;;  %v1069_v33 = vstv %s1642_s7  ;;  %s2257_s7 = sld [smem:[#allocation3 + $0x56]] }
  0xed   : > { %954 = vrot.lane.b32.xlu0 %v950_v34, %s1748_s29  ;;  %v1071_v35 = vmul.f32 %v2133_v13, %v1069_v33  ;;  %v1070_v36 = vmul.f32 %v2137_v21, %v1069_v33 }
  0xee   : > { %v524_v47 = vpop.permute.xlu1 %523 }
  0xef   : > { %v522_v48 = vpop.permute.xlu0 %521  ;;  %v528_v57 = vadd.f32 %v524_v47, %v514_v2 }
  0xf0   : > { %970 = vrot.lane.b32.xlu1 %v965_v37, %s1750_s6  ;;  %v527_v58 = vadd.f32 %v522_v48, %v513_v53  ;;  %v1083_v37 = vstv %s1643_s9  ;;  %s1668_s9 = sld [smem:[#allocation3 + $0x57]] }
  0xf1   : > { %968 = vrot.lane.b32.xlu0 %v964_v39, %s1750_s6  ;;  %v1085_v47 = vmul.f32 %v2133_v13, %v1083_v37  ;;  %v1084_v48 = vmul.f32 %v2137_v21, %v1083_v37  ;;  %v1175_v37 = vstv %s2193_s20  ;;  %s1680_s20 = sld [smem:[#allocation3 + $0x61]] }
  0xf2   : > { %v538_v56 = vpop.permute.xlu1 %537 }
  0xf3   : > { %v536_v1 = vpop.permute.xlu0 %535  ;;  %v542_v0 = vadd.f32 %v538_v56, %v528_v57 }
  0xf4   : > { %984 = vrot.lane.b32.xlu1 %v979_v51, %s1751_s8  ;;  %v541_v3 = vadd.f32 %v536_v1, %v527_v58  ;;  %v1097_v51 = vstv %s1644_s11  ;;  %v652_v58 = vstv %s2155_s13  ;;  %s1669_s11 = sld [smem:[#allocation3 + $0x58]]  ;;  %s1670_s13 = sld [smem:[#allocation3 + $0x59]] }
  0xf5   : > { %982 = vrot.lane.b32.xlu0 %v978_v52, %s1751_s8  ;;  %v1099_v55 = vmul.f32 %v2133_v13, %v1097_v51  ;;  %v1098_v56 = vmul.f32 %v2137_v21, %v1097_v51 }
  0xf6   : > { %v552_v6 = vpop.permute.xlu1 %551 }
  0xf7   : > { %v550_v7 = vpop.permute.xlu0 %549  ;;  %v556_v8 = vadd.f32 %v552_v6, %v542_v0  ;;  %v654_v6 = vmul.f32 %v652_v58, %v1957_v44 }
  0xf8   : > { %v555_v9 = vadd.f32 %v550_v7, %v541_v3  ;;  %998 = vrot.lane.b32.xlu1 %v993_v61, %s1752_s10  ;;  %v1119_v61 = vstv %s2157_s16  ;;  %s1671_s16 = sld [smem:[#allocation3 + $0x5a]] }
  0xf9   : > { %996 = vrot.lane.b32.xlu0 %v992_v63, %s1752_s10  ;;  %v564_v11 = vadd.f32 %v562_v59, %v556_v8  ;;  %v2171_v59 = vld [vmem:[%s1805_s27 + $0x23] sm:$0xff]  ;;  %v2175_v63 = vld [vmem:[%s1805_s27 + $0x1b] sm:$0xff] }
  0xfa   : > { %v563_v12 = vadd.f32 %v561_v4, %v555_v9  ;;  %v574_v15 = vpop.permute.xlu1 %573  ;;  %v1121_v7 = vmul.f32 %v2171_v59, %v1119_v61  ;;  %v1120_v8 = vmul.f32 %v2175_v63, %v1119_v61  ;;  %v1163_v33 = vmul.f32 %v2171_v59, %v1161_v40  ;;  %v2223_v61 = vld [vmem:[%s1805_s27 + $0x24] sm:$0xff] }
  0xfb   : > { %v572_v16 = vpop.permute.xlu0 %571  ;;  %v578_v43 = vadd.f32 %v574_v15, %v564_v11  ;;  %v1133_v11 = vstv %s2163_s17  ;;  %s1675_s17 = sld [smem:[#allocation3 + $0x5c]] }
  0xfc   : > { %1012 = vrot.lane.b32.xlu1 %v1007_v18, %s1753_s12  ;;  %v577_v45 = vadd.f32 %v572_v16, %v563_v12  ;;  %v653_v18 = vmul.f32 %v652_v58, %v1960_v46  ;;  %v1135_v44 = vmul.f32 %v2171_v59, %v1133_v11  ;;  %v1134_v15 = vmul.f32 %v2175_v63, %v1133_v11 }
  0xfd   : > { %1010 = vrot.lane.b32.xlu0 %v1006_v10, %s1753_s12 }
  0xfe   : > { %v588_v23 = vpop.permute.xlu1 %587 }
  0xff   : > { %v586_v25 = vpop.permute.xlu0 %585  ;;  %v592_v49 = vadd.f32 %v588_v23, %v578_v43 }
 0x100   : > { %1034 = vrot.lane.b32.xlu1 %v1029_v60, %s1749_s30  ;;  %v591_v50 = vadd.f32 %v586_v25, %v577_v45 }
 0x101   : > { %1032 = vrot.lane.b32.xlu0 %v1028_v17, %s1749_s30  ;;  %v1147_v17 = vstv %s2177_s18  ;;  %s1676_s18 = sld [smem:[#allocation3 + $0x5d]] }
 0x102   : > { %v602_v28 = vpop.permute.xlu1 %601  ;;  %v1149_v23 = vmul.f32 %v2171_v59, %v1147_v17  ;;  %v1148_v25 = vmul.f32 %v2175_v63, %v1147_v17 }
 0x103   : > { %v600_v29 = vpop.permute.xlu0 %599  ;;  %v606_v53 = vadd.f32 %v602_v28, %v592_v49  ;;  %v1176_v49 = vmul.f32 %v2175_v63, %v1175_v37 }
 0x104   : > { %1048 = vrot.lane.b32.xlu1 %v1043_v26, %s1748_s29  ;;  %v605_v54 = vadd.f32 %v600_v29, %v591_v50 }
 0x105   : > { %1046 = vrot.lane.b32.xlu0 %v1042_v27, %s1748_s29 }
 0x106   : > { %v616_v34 = vpop.permute.xlu1 %615 }
 0x107   : > { %v614_v20 = vpop.permute.xlu0 %613  ;;  %v620_v1 = vadd.f32 %v616_v34, %v606_v53  ;;  %v1162_v34 = vmul.f32 %v2175_v63, %v1161_v40 }
 0x108   : > { %1062 = vrot.lane.b32.xlu1 %v1057_v30, %s1750_s6  ;;  %v619_v57 = vadd.f32 %v614_v20, %v605_v54 }
 0x109   : > { %1060 = vrot.lane.b32.xlu0 %v1056_v32, %s1750_s6 }
 0x10a   : > { %v630_v39 = vpop.permute.xlu1 %629 }
 0x10b   : > { %v628_v41 = vpop.permute.xlu0 %627  ;;  %v634_v4 = vadd.f32 %v630_v39, %v620_v1 }
 0x10c   : > { %1076 = vrot.lane.b32.xlu1 %v1071_v35, %s1751_s8  ;;  %v633_v5 = vadd.f32 %v628_v41, %v619_v57 }
 0x10d   : > { %1074 = vrot.lane.b32.xlu0 %v1070_v36, %s1751_s8  ;;  %v744_v36 = vstv %s2191_s19  ;;  %s1678_s19 = sld [smem:[#allocation3 + $0x5f]] }
 0x10e   : > { %v644_v52 = vpop.permute.xlu1 %643 }
 0x10f   : > { %v642_v2 = vpop.permute.xlu0 %641  ;;  %v648_v9 = vadd.f32 %v644_v52, %v634_v4  ;;  %v745_v52 = vmul.f32 %v744_v36, %v2005_v22  ;;  %v1211_v22 = vstv %s2207_s22 }
 0x110   : > { %1090 = vrot.lane.b32.xlu1 %v1085_v47, %s1752_s10  ;;  %v647_v10 = vadd.f32 %v642_v2, %v633_v5  ;;  %v746_v47 = vmul.f32 %v744_v36, %v2001_v38  ;;  %v1189_v2 = vstv %s2199_s21  ;;  %s1685_s21 = sshll.u32 %s2376_s15, 4 }
 0x111   : > { %1088 = vrot.lane.b32.xlu0 %v1084_v48, %s1752_s10  ;;  %v656_v16 = vadd.f32 %v654_v6, %v648_v9  ;;  %v1177_v48 = vmul.f32 %v2171_v59, %v1175_v37  ;;  %v1191_v38 = vmul.f32 %v2171_v59, %v1189_v2  ;;  %v1190_v1 = vmul.f32 %v2175_v63, %v1189_v2 }
 0x112   : > { %v666_v0 = vpop.permute.xlu1 %665  ;;  %v655_v60 = vadd.f32 %v653_v18, %v647_v10  ;;  %v1225_v9 = vstv %s2216_s23 }
 0x113   : > { %v664_v3 = vpop.permute.xlu0 %663  ;;  %v670_v26 = vadd.f32 %v666_v0, %v656_v16  ;;  %v2227_v0 = vld [vmem:[%s1805_s27 + $0x1c] sm:$0xff] }
 0x114   : > { %1104 = vrot.lane.b32.xlu1 %v1099_v55, %s1753_s12  ;;  %v669_v27 = vadd.f32 %v664_v3, %v655_v60 }
 0x115   : > { %1102 = vrot.lane.b32.xlu0 %v1098_v56, %s1753_s12 }
 0x116   : > { %v680_v12 = vpop.permute.xlu1 %679 }
 0x117   : > { %v678_v14 = vpop.permute.xlu0 %677  ;;  %v684_v30 = vadd.f32 %v680_v12, %v670_v26 }
 0x118   : > { %1126 = vrot.lane.b32.xlu1 %v1121_v7, %s1749_s30  ;;  %v683_v32 = vadd.f32 %v678_v14, %v669_v27  ;;  %v1213_v7 = vmul.f32 %v2223_v61, %v1211_v22  ;;  %v1227_v14 = vmul.f32 %v2223_v61, %v1225_v9 }
 0x119   : > { %1124 = vrot.lane.b32.xlu0 %v1120_v8, %s1749_s30  ;;  %v1212_v8 = vmul.f32 %v2227_v0, %v1211_v22  ;;  %v1317_v22 = vstv %s2257_s7 }
 0x11a   : > { %v694_v46 = vpop.permute.xlu1 %693 }
 0x11b   : > { %v692_v19 = vpop.permute.xlu0 %691  ;;  %v698_v20 = vadd.f32 %v694_v46, %v684_v30 }
 0x11c   : > { %1140 = vrot.lane.b32.xlu1 %v1135_v44, %s1748_s29  ;;  %v697_v35 = vadd.f32 %v692_v19, %v683_v32  ;;  %v1226_v44 = vmul.f32 %v2227_v0, %v1225_v9  ;;  %v1267_v32 = vstv %s1661_s26  ;;  %v1331_v9 = vstv %s1668_s9 }
 0x11d   : > { %1138 = vrot.lane.b32.xlu0 %v1134_v15, %s1748_s29  ;;  %v1239_v15 = vstv %s1659_s24  ;;  %v1269_v37 = vmul.f32 %v2223_v61, %v1267_v32  ;;  %s185_s24 = scalar_lea.vmem %s2373_s3, %s1685_s21 }
 0x11e   : > { %v708_v28 = vpop.permute.xlu1 %707  ;;  %v1241_v19 = vmul.f32 %v2223_v61, %v1239_v15 }
 0x11f   : > { %v706_v29 = vpop.permute.xlu0 %705  ;;  %v712_v43 = vadd.f32 %v708_v28, %v698_v20  ;;  %v837_v20 = vstv %s1618_s28 }
 0x120   : > { %1154 = vrot.lane.b32.xlu1 %v1149_v23, %s1750_s6  ;;  %v711_v45 = vadd.f32 %v706_v29, %v697_v35  ;;  %v1240_v23 = vmul.f32 %v2227_v0, %v1239_v15  ;;  %v1345_v15 = vstv %s1669_s11 }
 0x121   : > { %1152 = vrot.lane.b32.xlu0 %v1148_v25, %s1750_s6  ;;  %v1253_v25 = vstv %s1660_s25 }
 0x122   : > { %v722_v39 = vpop.permute.xlu1 %721  ;;  %v1255_v29 = vmul.f32 %v2223_v61, %v1253_v25  ;;  %v1254_v30 = vmul.f32 %v2227_v0, %v1253_v25  ;;  %v1359_v25 = vstv %s1670_s13 }
 0x123   : > { %v720_v41 = vpop.permute.xlu0 %719  ;;  %v726_v50 = vadd.f32 %v722_v39, %v712_v43  ;;  %v1268_v39 = vmul.f32 %v2227_v0, %v1267_v32  ;;  %v838_v43 = vmul.f32 %v2049_v42, %v837_v20  ;;  %v1303_v42 = vstv %s2248_s5 }
 0x124   : > { %1168 = vrot.lane.b32.xlu1 %v1163_v33, %s1751_s8  ;;  %v725_v51 = vadd.f32 %v720_v41, %v711_v45  ;;  %v839_v41 = vmul.f32 %v2045_v31, %v837_v20  ;;  %v1281_v45 = vstv %s2242_s4  ;;  %v2308_v20 = vld [vmem:[%s1805_s27 + $0x26] sm:$0xff] }
 0x125   : > { %1166 = vrot.lane.b32.xlu0 %v1162_v34, %s1751_s8 }
 0x126   : > { %v736_v53 = vpop.permute.xlu1 %735 }
 0x127   : > { %v734_v54 = vpop.permute.xlu0 %733  ;;  %v740_v55 = vadd.f32 %v736_v53, %v726_v50  ;;  %v2264_v53 = vld [vmem:[%s1805_s27 + $0x25] sm:$0xff] }
 0x128   : > { %v739_v56 = vadd.f32 %v734_v54, %v725_v51  ;;  %1182 = vrot.lane.b32.xlu1 %v1177_v48, %s1752_s10  ;;  %v1283_v51 = vmul.f32 %v2223_v61, %v1281_v45  ;;  %v2268_v54 = vld [vmem:[%s1805_s27 + $0x1d] sm:$0xff] }
 0x129   : > { %1180 = vrot.lane.b32.xlu0 %v1176_v49, %s1752_s10  ;;  %v748_v57 = vadd.f32 %v746_v47, %v740_v55 }
 0x12a   : > { %v747_v58 = vadd.f32 %v745_v52, %v739_v56  ;;  %v758_v3 = vpop.permute.xlu1 %757  ;;  %v1282_v52 = vmul.f32 %v2227_v0, %v1281_v45  ;;  %v1409_v45 = vstv %s1676_s18 }
 0x12b   : > { %v756_v4 = vpop.permute.xlu0 %755  ;;  %v762_v5 = vadd.f32 %v758_v3, %v748_v57  ;;  %v1305_v57 = vmul.f32 %v2264_v53, %v1303_v42 }
 0x12c   : > { %v761_v6 = vadd.f32 %v756_v4, %v747_v58  ;;  %1196 = vrot.lane.b32.xlu1 %v1191_v38, %s1753_s12  ;;  %v1304_v58 = vmul.f32 %v2268_v54, %v1303_v42 }
 0x12d   : > { %1194 = vrot.lane.b32.xlu0 %v1190_v1, %s1753_s12 }
 0x12e   : > { %v772_v18 = vpop.permute.xlu1 %771 }
 0x12f   : > { %v770_v10 = vpop.permute.xlu0 %769  ;;  %v776_v11 = vadd.f32 %v772_v18, %v762_v5 }
 0x130   : > { %v775_v12 = vadd.f32 %v770_v10, %v761_v6  ;;  %1218 = vrot.lane.b32.xlu1 %v1213_v7, %s1749_s30  ;;  %v1319_v7 = vmul.f32 %v2264_v53, %v1317_v22 }
 0x131   : > { %1216 = vrot.lane.b32.xlu0 %v1212_v8, %s1749_s30  ;;  %v1318_v8 = vmul.f32 %v2268_v54, %v1317_v22 }
 0x132   : > { %v786_v16 = vpop.permute.xlu1 %785 }
 0x133   : > { %v784_v60 = vpop.permute.xlu0 %783  ;;  %v790_v17 = vadd.f32 %v786_v16, %v776_v11 }
 0x134   : > { %v789_v46 = vadd.f32 %v784_v60, %v775_v12  ;;  %1232 = vrot.lane.b32.xlu1 %v1227_v14, %s1748_s29  ;;  %v1333_v14 = vmul.f32 %v2264_v53, %v1331_v9 }
 0x135   : > { %1230 = vrot.lane.b32.xlu0 %v1226_v44, %s1748_s29  ;;  %v1332_v44 = vmul.f32 %v2268_v54, %v1331_v9 }
 0x136   : > { %v800_v26 = vpop.permute.xlu1 %799 }
 0x137   : > { %v798_v27 = vpop.permute.xlu0 %797  ;;  %v804_v40 = vadd.f32 %v800_v26, %v790_v17 }
 0x138   : > { %v803_v28 = vadd.f32 %v798_v27, %v789_v46  ;;  %1246 = vrot.lane.b32.xlu1 %v1241_v19, %s1750_s6  ;;  %v1347_v19 = vmul.f32 %v2264_v53, %v1345_v15 }
 0x139   : > { %1244 = vrot.lane.b32.xlu0 %v1240_v23, %s1750_s6  ;;  %v1346_v23 = vmul.f32 %v2268_v54, %v1345_v15 }
 0x13a   : > { %v814_v33 = vpop.permute.xlu1 %813 }
 0x13b   : > { %v812_v34 = vpop.permute.xlu0 %811  ;;  %v818_v35 = vadd.f32 %v814_v33, %v804_v40  ;;  %v1361_v40 = vmul.f32 %v2264_v53, %v1359_v25 }
 0x13c   : > { %v817_v36 = vadd.f32 %v812_v34, %v803_v28  ;;  %1260 = vrot.lane.b32.xlu1 %v1255_v29, %s1751_s8  ;;  %v1360_v28 = vmul.f32 %v2268_v54, %v1359_v25  ;;  %v1373_v29 = vstv %s1671_s16 }
 0x13d   : > { %1258 = vrot.lane.b32.xlu0 %v1254_v30, %s1751_s8  ;;  %v1375_v33 = vmul.f32 %v2264_v53, %v1373_v29  ;;  %v1374_v34 = vmul.f32 %v2268_v54, %v1373_v29 }
 0x13e   : > { %v828_v47 = vpop.permute.xlu1 %827 }
 0x13f   : > { %v826_v48 = vpop.permute.xlu0 %825  ;;  %v832_v49 = vadd.f32 %v828_v47, %v818_v35  ;;  %v1395_v35 = vstv %s1675_s17 }
 0x140   : > { %v831_v50 = vadd.f32 %v826_v48, %v817_v36  ;;  %1274 = vrot.lane.b32.xlu1 %v1269_v37, %s1752_s10  ;;  %v2311_v36 = vld [vmem:[%s1805_s27 + $0x1e] sm:$0xff]  ;;  %s1679_s27 = sld [smem:[#allocation3 + $0x60]] }
 0x141   : > { %1272 = vrot.lane.b32.xlu0 %v1268_v39, %s1752_s10  ;;  %v841_v31 = vadd.f32 %v839_v41, %v832_v49  ;;  %v1397_v41 = vmul.f32 %v2308_v20, %v1395_v35  ;;  %v1411_v49 = vmul.f32 %v2308_v20, %v1409_v45 }
 0x142   : > { %v840_v2 = vadd.f32 %v838_v43, %v831_v50  ;;  %v851_v55 = vpop.permute.xlu1 %850  ;;  %v1396_v43 = vmul.f32 %v2311_v36, %v1395_v35  ;;  %v1410_v50 = vmul.f32 %v2311_v36, %v1409_v45 }
 0x143   : > { %v849_v56 = vpop.permute.xlu0 %848  ;;  %v855_v38 = vadd.f32 %v851_v55, %v841_v31  ;;  %v1437_v55 = vstv %s1678_s19 }
 0x144   : > { %v854_v1 = vadd.f32 %v849_v56, %v840_v2  ;;  %1288 = vrot.lane.b32.xlu1 %v1283_v51, %s1753_s12  ;;  %v1423_v51 = vstv %s1677_s2 }
 0x145   : > { %1286 = vrot.lane.b32.xlu0 %v1282_v52, %s1753_s12  ;;  %v1425_v2 = vmul.f32 %v2308_v20, %v1423_v51  ;;  %v1424_v42 = vmul.f32 %v2311_v36, %v1423_v51 }
 0x146   : > { %v865_v3 = vpop.permute.xlu1 %864 }
 0x147   : > { %v863_v4 = vpop.permute.xlu0 %862  ;;  %v869_v5 = vadd.f32 %v865_v3, %v855_v38 }
 0x148   : > { %v868_v6 = vadd.f32 %v863_v4, %v854_v1  ;;  %1310 = vrot.lane.b32.xlu1 %v1305_v57, %s1749_s30  ;;  %v1439_v1 = vmul.f32 %v2308_v20, %v1437_v55  ;;  %v1438_v57 = vmul.f32 %v2311_v36, %v1437_v55 }
 0x149   : > { %1308 = vrot.lane.b32.xlu0 %v1304_v58, %s1749_s30  ;;  %v1451_v58 = vstv %s1679_s27 }
 0x14a   : > { %v879_v18 = vpop.permute.xlu1 %878  ;;  %v1453_v4 = vmul.f32 %v2308_v20, %v1451_v58 }
 0x14b   : > { %v877_v10 = vpop.permute.xlu0 %876  ;;  %v883_v11 = vadd.f32 %v879_v18, %v869_v5  ;;  %v1452_v5 = vmul.f32 %v2311_v36, %v1451_v58 }
 0x14c   : > { %v882_v12 = vadd.f32 %v877_v10, %v868_v6  ;;  %1324 = vrot.lane.b32.xlu1 %v1319_v7, %s1748_s29  ;;  %v1465_v6 = vstv %s1680_s20 }
 0x14d   : > { %1322 = vrot.lane.b32.xlu0 %v1318_v8, %s1748_s29  ;;  %v1467_v9 = vmul.f32 %v2308_v20, %v1465_v6  ;;  %v1466_v18 = vmul.f32 %v2311_v36, %v1465_v6 }
 0x14e   : > { %v893_v16 = vpop.permute.xlu1 %892 }
 0x14f   : > { %v891_v60 = vpop.permute.xlu0 %890  ;;  %v2283_v17 = vadd.f32 %v893_v16, %v883_v11 }
 0x150   : > { %v2285_v46 = vadd.f32 %v891_v60, %v882_v12  ;;  %1338 = vrot.lane.b32.xlu1 %v1333_v14, %s1750_s6 }
 0x151   : > { %1336 = vrot.lane.b32.xlu0 %v1332_v44, %s1750_s6 }
 0x152   : > { %v2291_v26 = vpop.permute.xlu1 %906 }
 0x153   : > { %v2293_v27 = vpop.permute.xlu0 %904  ;;  %v911_v15 = vadd.f32 %v2291_v26, %v2283_v17 }
 0x154   : > { %1352 = vrot.lane.b32.xlu1 %v1347_v19, %s1751_s8  ;;  %v910_v16 = vadd.f32 %v2293_v27, %v2285_v46 }
 0x155   : > { %1350 = vrot.lane.b32.xlu0 %v1346_v23, %s1751_s8 }
 0x156   : > { %v2299_v30 = vpop.permute.xlu1 %920 }
 0x157   : > { %v2301_v32 = vpop.permute.xlu0 %918  ;;  %v925_v25 = vadd.f32 %v2299_v30, %v911_v15 }
 0x158   : > { %1366 = vrot.lane.b32.xlu1 %v1361_v40, %s1752_s10 }
 0x159   : > { %1364 = vrot.lane.b32.xlu0 %v1360_v28, %s1752_s10  ;;  %v924_v28 = vadd.f32 %v2301_v32, %v910_v16 }
 0x15a   : > { %v2313_v37 = vpop.permute.xlu1 %942 }
 0x15b   : > { %v2315_v39 = vpop.permute.xlu0 %940 }
 0x15c   : > { %1380 = vrot.lane.b32.xlu1 %v1375_v33, %s1753_s12 }
 0x15d   : > { %1378 = vrot.lane.b32.xlu0 %v1374_v34, %s1753_s12 }
 0x15e   : > { %v957_v47 = vpop.permute.xlu1 %956 }
 0x15f   : > { %v955_v48 = vpop.permute.xlu0 %954 }
 0x160   : > { %1402 = vrot.lane.b32.xlu1 %v1397_v41, %s1749_s30 }
 0x161   : > { %1400 = vrot.lane.b32.xlu0 %v1396_v43, %s1749_s30  ;;  %s1636_s30 = sld [smem:[#allocation3 + $0x3f]] }
 0x162   : > { %v971_v52 = vpop.permute.xlu1 %970 }
 0x163   : > { %v969_v31 = vpop.permute.xlu0 %968 }
 0x164   : > { %1416 = vrot.lane.b32.xlu1 %v1411_v49, %s1748_s29 }
 0x165   : > { %1414 = vrot.lane.b32.xlu0 %v1410_v50, %s1748_s29  ;;  %s1627_s29 = sld [smem:[#allocation3 + $0x38]] }
 0x166   : > { %v985_v56 = vpop.permute.xlu1 %984 }
 0x167   : > { %v983_v38 = vpop.permute.xlu0 %982  ;;  %v1021_v32 = vstv %s1636_s30 }
 0x168   : > { %1430 = vrot.lane.b32.xlu1 %v1425_v2, %s1750_s6  ;;  %v1023_v58 = vmul.f32 %v2133_v13, %v1021_v32 }
 0x169   : > { %1428 = vrot.lane.b32.xlu0 %v1424_v42, %s1750_s6  ;;  %s1645_s6 = sld [smem:[#allocation3 + $0x46]] }
 0x16a   : > { %v999_v22 = vpop.permute.xlu1 %998 }
 0x16b   : > { %v997_v3 = vpop.permute.xlu0 %996  ;;  %v929_v44 = vstv %s1627_s29 }
 0x16c   : > { %1444 = vrot.lane.b32.xlu1 %v1439_v1, %s1751_s8  ;;  %v931_v23 = vmul.f32 %v2089_v24, %v929_v44  ;;  %v930_v40 = vmul.f32 %v2093_v62, %v929_v44 }
 0x16d   : > { %1442 = vrot.lane.b32.xlu0 %v1438_v57, %s1751_s8  ;;  %s1654_s8 = sld [smem:[#allocation3 + $0x4d]] }
 0x16e   : > { %v1013_v7 = vpop.permute.xlu1 %1012  ;;  %v933_v34 = vadd.f32 %v931_v23, %v925_v25  ;;  %v932_v35 = vadd.f32 %v930_v40, %v924_v28 }
 0x16f   : > { %v1011_v8 = vpop.permute.xlu0 %1010 }
 0x170   : > { %1458 = vrot.lane.b32.xlu1 %v1453_v4, %s1752_s10  ;;  %v947_v26 = vadd.f32 %v2313_v37, %v933_v34  ;;  %v946_v46 = vadd.f32 %v2315_v39, %v932_v35  ;;  %v1022_v37 = vmul.f32 %v2137_v21, %v1021_v32  ;;  %v1113_v21 = vstv %s1645_s6 }
 0x171   : > { %1456 = vrot.lane.b32.xlu0 %v1452_v5, %s1752_s10  ;;  %s1663_s10 = sld [smem:[#allocation3 + $0x54]] }
 0x172   : > { %v1035_v10 = vpop.permute.xlu1 %1034  ;;  %v961_v27 = vadd.f32 %v957_v47, %v947_v26  ;;  %v960_v43 = vadd.f32 %v955_v48, %v946_v46 }
 0x173   : > { %v1033_v11 = vpop.permute.xlu0 %1032 }
 0x174   : > { %1472 = vrot.lane.b32.xlu1 %v1467_v9, %s1753_s12  ;;  %v975_v30 = vadd.f32 %v971_v52, %v961_v27  ;;  %v974_v49 = vadd.f32 %v969_v31, %v960_v43 }
 0x175   : > { %1470 = vrot.lane.b32.xlu0 %v1466_v18, %s1753_s12  ;;  %s1672_s12 = sld [smem:[#allocation3 + $0x5b]] }
 0x176   : > { %v1049_v12 = vpop.permute.xlu1 %1048  ;;  %v989_v62 = vadd.f32 %v985_v56, %v975_v30  ;;  %v988_v50 = vadd.f32 %v983_v38, %v974_v49 }
 0x177   : > { %v1047_v14 = vpop.permute.xlu0 %1046 }
 0x178   : > { %v1003_v42 = vadd.f32 %v999_v22, %v989_v62  ;;  %v1002_v55 = vadd.f32 %v997_v3, %v988_v50 }
 0x17a   : > { %v1063_v60 = vpop.permute.xlu1 %1062  ;;  %v1017_v1 = vadd.f32 %v1013_v7, %v1003_v42  ;;  %v1016_v57 = vadd.f32 %v1011_v8, %v1002_v55 }
 0x17b   : > { %v1061_v19 = vpop.permute.xlu0 %1060 }
 0x17c   : > { %v1025_v48 = vadd.f32 %v1023_v58, %v1017_v1  ;;  %v1024_v4 = vadd.f32 %v1022_v37, %v1016_v57 }
 0x17e   : > { %v1077_v29 = vpop.permute.xlu1 %1076  ;;  %v1039_v31 = vadd.f32 %v1035_v10, %v1025_v48  ;;  %v1038_v56 = vadd.f32 %v1033_v11, %v1024_v4  ;;  %v1115_v10 = vmul.f32 %v2171_v59, %v1113_v21  ;;  %v1114_v11 = vmul.f32 %v2175_v63, %v1113_v21 }
 0x17f   : > { %v1075_v33 = vpop.permute.xlu0 %1074  ;;  %v1205_v59 = vstv %s1654_s8 }
 0x180   : > { %v1053_v9 = vadd.f32 %v1049_v12, %v1039_v31  ;;  %v1052_v22 = vadd.f32 %v1047_v14, %v1038_v56  ;;  %v1207_v42 = vmul.f32 %v2223_v61, %v1205_v59 }
 0x182   : > { %v1091_v41 = vpop.permute.xlu1 %1090  ;;  %v1067_v3 = vadd.f32 %v1063_v60, %v1053_v9  ;;  %v1066_v7 = vadd.f32 %v1061_v19, %v1052_v22 }
 0x183   : > { %v1089_v17 = vpop.permute.xlu0 %1088 }
 0x184   : > { %v1081_v13 = vadd.f32 %v1077_v29, %v1067_v3  ;;  %v1080_v44 = vadd.f32 %v1075_v33, %v1066_v7 }
 0x186   : > { %v1105_v24 = vpop.permute.xlu1 %1104  ;;  %v1095_v15 = vadd.f32 %v1091_v41, %v1081_v13  ;;  %v1094_v16 = vadd.f32 %v1089_v17, %v1080_v44 }
 0x187   : > { %v1103_v45 = vpop.permute.xlu0 %1102 }
 0x188   : > { %v1109_v40 = vadd.f32 %v1105_v24, %v1095_v15  ;;  %v1108_v28 = vadd.f32 %v1103_v45, %v1094_v16 }
 0x18a   : > { %v1127_v51 = vpop.permute.xlu1 %1126  ;;  %v1117_v14 = vadd.f32 %v1115_v10, %v1109_v40  ;;  %v1116_v60 = vadd.f32 %v1114_v11, %v1108_v28 }
 0x18b   : > { %v1125_v2 = vpop.permute.xlu0 %1124 }
 0x18c   : > { %v1131_v29 = vadd.f32 %v1127_v51, %v1117_v14  ;;  %v1130_v33 = vadd.f32 %v1125_v2, %v1116_v60  ;;  %v1206_v51 = vmul.f32 %v2227_v0, %v1205_v59  ;;  %v1297_v0 = vstv %s1663_s10 }
 0x18d   : > { %v1299_v44 = vmul.f32 %v2264_v53, %v1297_v0  ;;  %v1298_v21 = vmul.f32 %v2268_v54, %v1297_v0  ;;  %v1389_v53 = vstv %s1672_s12 }
 0x18e   : > { %v1141_v39 = vpop.permute.xlu1 %1140 }
 0x18f   : > { %v1139_v47 = vpop.permute.xlu0 %1138  ;;  %v1145_v26 = vadd.f32 %v1141_v39, %v1131_v29 }
 0x190   : > { %v1144_v41 = vadd.f32 %v1139_v47, %v1130_v33 }
 0x192   : > { %v1155_v5 = vpop.permute.xlu1 %1154 }
 0x193   : > { %v1153_v52 = vpop.permute.xlu0 %1152  ;;  %v1159_v27 = vadd.f32 %v1155_v5, %v1145_v26 }
 0x194   : > { %v1158_v43 = vadd.f32 %v1153_v52, %v1144_v41 }
 0x196   : > { %v1169_v38 = vpop.permute.xlu1 %1168 }
 0x197   : > { %v1167_v6 = vpop.permute.xlu0 %1166  ;;  %v1173_v24 = vadd.f32 %v1169_v38, %v1159_v27 }
 0x198   : > { %v1172_v45 = vadd.f32 %v1167_v6, %v1158_v43  ;;  %v1391_v43 = vmul.f32 %v2308_v20, %v1389_v53 }
 0x19a   : > { %v1183_v8 = vpop.permute.xlu1 %1182 }
 0x19b   : > { %v1181_v18 = vpop.permute.xlu0 %1180  ;;  %v1187_v49 = vadd.f32 %v1183_v8, %v1173_v24  ;;  %v1390_v24 = vmul.f32 %v2311_v36, %v1389_v53 }
 0x19c   : > { %v1186_v62 = vadd.f32 %v1181_v18, %v1172_v45 }
 0x19e   : > { %v1197_v23 = vpop.permute.xlu1 %1196 }
 0x19f   : > { %v1195_v25 = vpop.permute.xlu0 %1194  ;;  %v1201_v50 = vadd.f32 %v1197_v23, %v1187_v49 }
 0x1a0   : > { %v1200_v32 = vadd.f32 %v1195_v25, %v1186_v62 }
 0x1a1   : > { %v1209_v1 = vadd.f32 %v1207_v42, %v1201_v50 }
 0x1a2   : > { %v1219_v34 = vpop.permute.xlu1 %1218  ;;  %v1208_v57 = vadd.f32 %v1206_v51, %v1200_v32 }
 0x1a3   : > { %v1217_v12 = vpop.permute.xlu0 %1216  ;;  %v1223_v39 = vadd.f32 %v1219_v34, %v1209_v1 }
 0x1a4   : > { %v1222_v47 = vadd.f32 %v1217_v12, %v1208_v57 }
 0x1a6   : > { %v1233_v19 = vpop.permute.xlu1 %1232 }
 0x1a7   : > { %v1231_v35 = vpop.permute.xlu0 %1230  ;;  %v1237_v5 = vadd.f32 %v1233_v19, %v1223_v39 }
 0x1a8   : > { %v1236_v52 = vadd.f32 %v1231_v35, %v1222_v47 }
 0x1aa   : > { %v1247_v17 = vpop.permute.xlu1 %1246 }
 0x1ab   : > { %v1245_v46 = vpop.permute.xlu0 %1244  ;;  %v1251_v31 = vadd.f32 %v1247_v17, %v1237_v5 }
 0x1ac   : > { %v1250_v56 = vadd.f32 %v1245_v46, %v1236_v52 }
 0x1ae   : > { %v1261_v30 = vpop.permute.xlu1 %1260 }
 0x1af   : > { %v1259_v63 = vpop.permute.xlu0 %1258  ;;  %v1265_v61 = vadd.f32 %v1261_v30, %v1251_v31 }
 0x1b0   : > { %v1264_v9 = vadd.f32 %v1259_v63, %v1250_v56 }
 0x1b2   : > { %v1275_v2 = vpop.permute.xlu1 %1274 }
 0x1b3   : > { %v1273_v55 = vpop.permute.xlu0 %1272  ;;  %v1279_v22 = vadd.f32 %v1275_v2, %v1265_v61 }
 0x1b4   : > { %v1278_v3 = vadd.f32 %v1273_v55, %v1264_v9 }
 0x1b6   : > { %v1289_v58 = vpop.permute.xlu1 %1288 }
 0x1b7   : > { %v1287_v37 = vpop.permute.xlu0 %1286  ;;  %v1293_v18 = vadd.f32 %v1289_v58, %v1279_v22 }
 0x1b8   : > { %v1292_v13 = vadd.f32 %v1287_v37, %v1278_v3 }
 0x1b9   : > { %v1301_v23 = vadd.f32 %v1299_v44, %v1293_v18 }
 0x1ba   : > { %v1311_v48 = vpop.permute.xlu1 %1310  ;;  %v1300_v25 = vadd.f32 %v1298_v21, %v1292_v13 }
 0x1bb   : > { %v1309_v4 = vpop.permute.xlu0 %1308  ;;  %v1315_v10 = vadd.f32 %v1311_v48, %v1301_v23 }
 0x1bc   : > { %v1314_v11 = vadd.f32 %v1309_v4, %v1300_v25 }
 0x1be   : > { %v1325_v38 = vpop.permute.xlu1 %1324 }
 0x1bf   : > { %v1323_v6 = vpop.permute.xlu0 %1322  ;;  %v1329_v34 = vadd.f32 %v1325_v38, %v1315_v10 }
 0x1c0   : > { %v1328_v12 = vadd.f32 %v1323_v6, %v1314_v11 }
 0x1c2   : > { %v1339_v7 = vpop.permute.xlu1 %1338 }
 0x1c3   : > { %v1337_v8 = vpop.permute.xlu0 %1336  ;;  %v1343_v19 = vadd.f32 %v1339_v7, %v1329_v34 }
 0x1c4   : > { %v1342_v35 = vadd.f32 %v1337_v8, %v1328_v12 }
 0x1c6   : > { %v1353_v15 = vpop.permute.xlu1 %1352 }
 0x1c7   : > { %v1351_v16 = vpop.permute.xlu0 %1350  ;;  %v1357_v29 = vadd.f32 %v1353_v15, %v1343_v19 }
 0x1c8   : > { %v1356_v33 = vadd.f32 %v1351_v16, %v1342_v35 }
 0x1ca   : > { %v1367_v40 = vpop.permute.xlu1 %1366 }
 0x1cb   : > { %v1365_v28 = vpop.permute.xlu0 %1364  ;;  %v1371_v41 = vadd.f32 %v1367_v40, %v1357_v29 }
 0x1cc   : > { %v1370_v17 = vadd.f32 %v1365_v28, %v1356_v33 }
 0x1ce   : > { %v1381_v14 = vpop.permute.xlu1 %1380 }
 0x1cf   : > { %v1379_v60 = vpop.permute.xlu0 %1378  ;;  %v1385_v46 = vadd.f32 %v1381_v14, %v1371_v41 }
 0x1d0   : > { %v1384_v27 = vadd.f32 %v1379_v60, %v1370_v17 }
 0x1d1   : > { %v1393_v30 = vadd.f32 %v1391_v43, %v1385_v46 }
 0x1d2   : > { %v1403_v26 = vpop.permute.xlu1 %1402  ;;  %v1392_v63 = vadd.f32 %v1390_v24, %v1384_v27 }
 0x1d3   : > { %v1401_v54 = vpop.permute.xlu0 %1400  ;;  %v1407_v50 = vadd.f32 %v1403_v26, %v1393_v30 }
 0x1d4   : > { %v1406_v32 = vadd.f32 %v1401_v54, %v1392_v63 }
 0x1d6   : > { %v1417_v45 = vpop.permute.xlu1 %1416 }
 0x1d7   : > { %v1415_v59 = vpop.permute.xlu0 %1414  ;;  %v1421_v2 = vadd.f32 %v1417_v45, %v1407_v50 }
 0x1d8   : > { %v1420_v55 = vadd.f32 %v1415_v59, %v1406_v32 }
 0x1da   : > { %v1431_v49 = vpop.permute.xlu1 %1430 }
 0x1db   : > { %v1429_v62 = vpop.permute.xlu0 %1428  ;;  %v1435_v1 = vadd.f32 %v1431_v49, %v1421_v2 }
 0x1dc   : > { %v1434_v57 = vadd.f32 %v1429_v62, %v1420_v55 }
 0x1de   : > { %v1445_v42 = vpop.permute.xlu1 %1444 }
 0x1df   : > { %v1443_v51 = vpop.permute.xlu0 %1442  ;;  %v1449_v39 = vadd.f32 %v1445_v42, %v1435_v1 }
 0x1e0   : > { %v1448_v20 = vadd.f32 %v1443_v51, %v1434_v57 }
 0x1e2   : > { %v1459_v58 = vpop.permute.xlu1 %1458 }
 0x1e3   : > { %v1457_v37 = vpop.permute.xlu0 %1456  ;;  %v1463_v47 = vadd.f32 %v1459_v58, %v1449_v39 }
 0x1e4   : > { %v1462_v36 = vadd.f32 %v1457_v37, %v1448_v20 }
 0x1e6   : > { %v1473_v48 = vpop.permute.xlu1 %1472 }
 0x1e7   : > { %v1471_v4 = vpop.permute.xlu0 %1470  ;;  %v1477_v5 = vadd.f32 %v1473_v48, %v1463_v47 }
 0x1e8   : > { %v1476_v52 = vadd.f32 %v1471_v4, %v1462_v36 }
 0x1e9   : > { %v1682_v31 = vmul.f32 -1.442695, %v1477_v5 }
 0x1ea   : > { %v1681_v56 = vmul.f32 -1.442695, %v1476_v52 }
 0x1eb   : > { %1712 = vpow2.f32 %v1682_v31 }
 0x1ec   : > { %1714 = vpow2.f32 %v1681_v56 }
 0x1f5   : > { %v1713_v38 = vpop.eup %1712 }
 0x1f6   : > { %v1715_v6 = vpop.eup %1714  ;;  %v1485_v61 = vadd.f32 1.0, %v1713_v38 }
 0x1f7   : > { %v1484_v9 = vadd.f32 1.0, %v1715_v6 }
 0x1f8   : > { %1716 = vrcp.f32 %v1485_v61 }
 0x1f9   : > { %1718 = vrcp.f32 %v1484_v9 }
 0x202   : > { %v1717_v0 = vpop.eup %1716 }
 0x203   : > { %v1719_v22 = vpop.eup %1718  ;;  %1492 = vst.msk [vmem:[%s185_s24 + $0x8] sm:$0xff] %vm1490_vm0, %v1717_v0 }
 0x204   : > { %1491 = vst.msk [vmem:[%s185_s24] sm:$0xff] %vm1490_vm0, %v1719_v22 }
 0x205 PF: > { %s15_s14 = sadd.s32 1, %s1745_s14  }
 0x206   : > { %p12_p1 = scmp.ge.s32.totalorder %s15_s14, 4  }
 0x208   :  { %14 = sbr.rel (!%p12_p1) target bundleno = 3 (0x3), region = 68 }
 0x20f   :  { %1514 = vsyncpa [#allocation4], 1 }
 0x210   :  { %1516 = vsyncpa [#allocation4 + $0x1], 1 }

</bundles_post_ra>
